<compile_context>
chip_gen: v6e
topology: v6e:2x2x1
jax: 0.10.0
libtpu: 0.0.40
codegen_flags: <defaults>
</compile_context>

<pallas_src>
import jax
import jax.numpy as jnp
from jax.experimental import pallas as pl
from jax.experimental.pallas import tpu as pltpu

# ----------------------- synthetic model sizes --------------------------
LATENT_D = 32            # VPoser latent dim
HIDDEN = 512             # VPoser decoder hidden
NUM_BODY_JOINTS = 21     # VPoser-decoded body joints
NUM_JOINTS = 55          # SMPL-X: global + 21 body + jaw + 2 eyes + 30 hand
NUM_VERTS = 512          # synthetic vertex count (real SMPL-X: 10475)
NUM_BETAS = 10
NUM_EXPR = 10
POSE_DIM = 6 + LATENT_D  # 38
OUT6 = NUM_BODY_JOINTS * 6       # 126
OUT6_PAD = 128                   # lane-dense padded MLP output
PF_DIM = (NUM_JOINTS - 1) * 9    # 486 pose-feature dim

# simple deterministic kinematic tree (parent[j] < j)
PARENTS = tuple([-1] + [(j - 1) // 3 for j in range(1, NUM_JOINTS)])


# ============================ Pallas kernels =============================

def _vposer_mlp_kernel(z_ref, w1_ref, b1_ref, w2_ref, b2_ref, w3_ref, b3_ref,
                       o_ref):
    """VPoser decoder MLP: latent(32) -> 512 -> 512 -> 128 (padded 21*6)."""
    h = jnp.dot(z_ref[...].astype(jnp.bfloat16), w1_ref[...],
                preferred_element_type=jnp.float32) + b1_ref[...]
    h = jnp.where(h > 0, h, 0.01 * h)          # LeakyReLU (dropout = id, eval)
    h = jnp.dot(h.astype(jnp.bfloat16), w2_ref[...],
                preferred_element_type=jnp.float32) + b2_ref[...]
    h = jnp.where(h > 0, h, 0.01 * h)
    o_ref[...] = jnp.dot(h.astype(jnp.bfloat16), w3_ref[...],
                         preferred_element_type=jnp.float32) + b3_ref[...]


def _lbs_kernel(pf_ref, a12_ref, transl_ref, vshaped_ref, posedirs_ref,
                lbsw_ref, o_ref):
    """Batched SMPL-X LBS over all F frames in one shot.

    pf_ref      : (F, 486)      f32   pose features (rot - I), frame-major
    a12_ref     : (12*F, 55)    f32   A[f, j, i, k] laid out row = (4i+k)*F + f
    transl_ref  : (3, F, 1)     f32
    vshaped_ref : (3, V)        f32   shaped template, coordinate-major
    posedirs_ref: (486, 3*V)    bf16  columns ordered [c*V + v]
    lbsw_ref    : (55, V)       bf16  lbs weights transposed
    o_ref       : (3, F, V)     f32   vertices, coordinate-major (lane-dense V)
    """
    F = pf_ref.shape[0]
    V = lbsw_ref.shape[1]

    # Pose blendshape offsets for every frame at once: (F,486)@(486,3V).
    offs = jnp.dot(pf_ref[...].astype(jnp.bfloat16), posedirs_ref[...],
                   preferred_element_type=jnp.float32)          # (F, 3V)
    # Per-vertex skinning transform entries for every frame: (12F,55)@(55,V).
    tmat = jnp.dot(a12_ref[...].astype(jnp.bfloat16), lbsw_ref[...],
                   preferred_element_type=jnp.float32)          # (12F, V)

    vx = vshaped_ref[0:1, :] + offs[:, 0:V]                     # (F, V)
    vy = vshaped_ref[1:2, :] + offs[:, V:2 * V]
    vz = vshaped_ref[2:3, :] + offs[:, 2 * V:3 * V]

    for i in range(3):                                          # static unroll
        r0 = tmat[(4 * i + 0) * F:(4 * i + 1) * F, :]
        r1 = tmat[(4 * i + 1) * F:(4 * i + 2) * F, :]
        r2 = tmat[(4 * i + 2) * F:(4 * i + 3) * F, :]
        r3 = tmat[(4 * i + 3) * F:(4 * i + 4) * F, :]
        o_ref[i] = r0 * vx + r1 * vy + r2 * vz + r3 + transl_ref[i]


# ============================ kernel wrappers ============================

def vposer_decode(z, p):
    """z: (N, 32) -> (N, 128) padded continuous rotation representation."""
    N = z.shape[0]
    return pl.pallas_call(
        _vposer_mlp_kernel,
        out_shape=jax.ShapeDtypeStruct((N, OUT6_PAD), jnp.float32),
        grid=(1,),
        in_specs=[
            pl.BlockSpec((N, LATENT_D), lambda i: (0, 0)),
            pl.BlockSpec((LATENT_D, HIDDEN), lambda i: (0, 0)),
            pl.BlockSpec((1, HIDDEN), lambda i: (0, 0)),
            pl.BlockSpec((HIDDEN, HIDDEN), lambda i: (0, 0)),
            pl.BlockSpec((1, HIDDEN), lambda i: (0, 0)),
            pl.BlockSpec((HIDDEN, OUT6_PAD), lambda i: (0, 0)),
            pl.BlockSpec((1, OUT6_PAD), lambda i: (0, 0)),
        ],
        out_specs=pl.BlockSpec((N, OUT6_PAD), lambda i: (0, 0)),
        compiler_params=pltpu.CompilerParams(
            dimension_semantics=("arbitrary",)),
    )(z, p["w1"], p["b1"], p["w2"], p["b2"], p["w3"], p["b3"])


def lbs_pallas(pf, a12, transl3, v_shaped3, posedirs_b, lbs_wT_b):
    """Batched LBS: returns vertices in (3, F, V) coordinate-major layout."""
    F = pf.shape[0]
    V = lbs_wT_b.shape[1]
    return pl.pallas_call(
        _lbs_kernel,
        out_shape=jax.ShapeDtypeStruct((3, F, V), jnp.float32),
        grid=(1,),
        in_specs=[
            pl.BlockSpec((F, PF_DIM), lambda i: (0, 0)),
            pl.BlockSpec((12 * F, NUM_JOINTS), lambda i: (0, 0)),
            pl.BlockSpec((3, F, 1), lambda i: (0, 0, 0)),
            pl.BlockSpec((3, V), lambda i: (0, 0)),
            pl.BlockSpec((PF_DIM, 3 * V), lambda i: (0, 0)),
            pl.BlockSpec((NUM_JOINTS, V), lambda i: (0, 0)),
        ],
        out_specs=pl.BlockSpec((3, F, V), lambda i: (0, 0, 0)),
        compiler_params=pltpu.CompilerParams(
            dimension_semantics=("arbitrary",)),
    )(pf, a12, transl3, v_shaped3, posedirs_b, lbs_wT_b)


# ============================ plain-JAX glue =============================

def rodrigues(aa):
    """axis-angle (..., 3) -> rotation matrices (..., 3, 3)."""
    angle = jnp.sqrt(jnp.sum(aa * aa, axis=-1, keepdims=True) + 1e-16)
    axis = aa / angle
    c = jnp.cos(angle)[..., None]
    s = jnp.sin(angle)[..., None]
    x, y, z = axis[..., 0], axis[..., 1], axis[..., 2]
    zero = jnp.zeros_like(x)
    K = jnp.stack([zero, -z, y, z, zero, -x, -y, x, zero],
                  axis=-1).reshape(aa.shape[:-1] + (3, 3))
    eye = jnp.eye(3, dtype=aa.dtype)
    return eye + s * K + (1.0 - c) * jnp.matmul(K, K)


def rotmat_to_aa(R):
    """rotation matrices (..., 3, 3) -> axis-angle (..., 3)."""
    trace = R[..., 0, 0] + R[..., 1, 1] + R[..., 2, 2]
    cos = jnp.clip((trace - 1.0) / 2.0, -1.0 + 1e-7, 1.0 - 1e-7)
    angle = jnp.arccos(cos)
    rx = R[..., 2, 1] - R[..., 1, 2]
    ry = R[..., 0, 2] - R[..., 2, 0]
    rz = R[..., 1, 0] - R[..., 0, 1]
    axis = jnp.stack([rx, ry, rz], axis=-1)
    scale = angle / (2.0 * jnp.sin(angle) + 1e-8)
    return axis * scale[..., None]


def cont6d_to_rotmat(x6):
    """VPoser ContinousRotReprDecoder: (..., 6) -> (..., 3, 3)."""
    m = x6.reshape(x6.shape[:-1] + (3, 2))
    a1, a2 = m[..., 0], m[..., 1]
    b1 = a1 / jnp.linalg.norm(a1, axis=-1, keepdims=True)
    dot = jnp.sum(b1 * a2, axis=-1, keepdims=True)
    b2u = a2 - dot * b1
    b2 = b2u / jnp.linalg.norm(b2u, axis=-1, keepdims=True)
    b3 = jnp.cross(b1, b2)
    return jnp.stack([b1, b2, b3], axis=-1)


def batch_rigid_transform(rot_mats, joints):
    """rot_mats: (J,3,3), joints: (J,3) -> relative transforms A: (J,4,4)."""
    parents = jnp.array(PARENTS, dtype=jnp.int32)
    rel_joints = joints.at[1:].add(-joints[jnp.array(PARENTS[1:], jnp.int32)])
    bottom = jnp.broadcast_to(jnp.array([0.0, 0.0, 0.0, 1.0], jnp.float32),
                              (NUM_JOINTS, 1, 4))
    T_local = jnp.concatenate(
        [jnp.concatenate([rot_mats, rel_joints[:, :, None]], axis=-1), bottom],
        axis=1)                                                   # (J,4,4)

    def step(acc, j):
        t = acc[parents[j]] @ T_local[j]
        return acc.at[j].set(t), None

    acc0 = jnp.zeros((NUM_JOINTS, 4, 4), jnp.float32).at[0].set(T_local[0])
    transforms, _ = jax.lax.scan(step, acc0, jnp.arange(1, NUM_JOINTS))
    joints_h = jnp.concatenate(
        [joints, jnp.zeros((NUM_JOINTS, 1), jnp.float32)], axis=-1)
    corr = transforms @ joints_h[..., None]                       # (J,4,1)
    rel = transforms - jnp.pad(corr, ((0, 0), (0, 0), (3, 0)))
    return rel


@jax.jit
def _process_pose_sequences(poses_all, vposer_params, smplx_params):
    """poses_all: (F, 38) -> vertices (F, V, 3).  F = all frames batched."""
    F = poses_all.shape[0]
    z = poses_all[:, 6:]                                    # pose_embedding
    x6_pad = vposer_decode(z, vposer_params)                # Pallas MLP (F,128)
    x6 = x6_pad[:, :OUT6]                                   # (F, 126)
    R = cont6d_to_rotmat(x6.reshape(F * NUM_BODY_JOINTS, 6))
    body_aa = rotmat_to_aa(R).reshape(F, NUM_BODY_JOINTS, 3)    # output_type='aa'
    global_orient = poses_all[:, :3]
    transl = poses_all[:, 3:6]

    # jaw / eyes / hands are zeros (create_* defaults, zero hand-PCA coeffs)
    full_pose = jnp.concatenate(
        [global_orient[:, None, :], body_aa,
         jnp.zeros((F, NUM_JOINTS - 1 - NUM_BODY_JOINTS, 3), jnp.float32)],
        axis=1)                                             # (F, 55, 3)
    rot = rodrigues(full_pose)                              # (F, 55, 3, 3)
    A = jax.vmap(batch_rigid_transform, in_axes=(0, None))(
        rot, smplx_params["joints_rest"])                   # (F, 55, 4, 4)

    # pose features (rot[1:] - I), frame-major
    pf = (rot[:, 1:] - jnp.eye(3, dtype=jnp.float32)).reshape(F, PF_DIM)
    # A entries laid out for a single (12F,55)@(55,V) MXU matmul:
    # row index = (4*i + k)*F + f  ->  A[f, j, i, k]
    a12 = (A[:, :, :3, :].reshape(F, NUM_JOINTS, 12)
           .transpose(2, 0, 1).reshape(12 * F, NUM_JOINTS))
    transl3 = transl.T.reshape(3, F, 1)

    verts_3fv = lbs_pallas(pf, a12, transl3,
                           smplx_params["v_shaped3"],
                           smplx_params["posedirs_b"],
                           smplx_params["lbs_wT_b"])        # Pallas LBS (3,F,V)
    return jnp.transpose(verts_3fv, (1, 2, 0))              # (F, V, 3)


def save_smplx_forward(poses_input, poses_label, poses_predict, gazes,
                       scene_points, vposer_params, smplx_params,
                       prefix="epoch0"):
    # TODO(synk): file export (os.makedirs, trimesh .obj / .ply) is host I/O
    # with no Pallas equivalent; we return the computed arrays instead.
    del prefix
    T = poses_input.shape[1]
    # Batch the three sequences into a single F = 3*T pass (one MLP launch,
    # one LBS launch), then split the results.
    poses_all = jnp.concatenate(
        [poses_input[0], poses_label[0], poses_predict[0]], axis=0)
    verts = _process_pose_sequences(poses_all, vposer_params, smplx_params)
    return {
        "input_vertices": verts[:T],
        "gt_vertices": verts[T:2 * T],
        "predict_vertices": verts[2 * T:],
        "gaze_points": gazes[0],
        "scene_points": scene_points[0],
    }


# ========================= deterministic params ==========================

def init_params(key):
    ks = jax.random.split(key, 8)
    # VPoser decoder weights (bf16 for the MXU; biases stay f32).
    w3_raw = 0.02 * jax.random.normal(ks[2], (HIDDEN, OUT6), jnp.float32)
    w3_pad = jnp.pad(w3_raw, ((0, 0), (0, OUT6_PAD - OUT6)))
    # bias = identity 6D rotation rep per joint (keeps decode well-posed)
    b3_raw = jnp.tile(jnp.array([[1., 0., 0., 1., 0., 0.]], jnp.float32),
                      (1, NUM_BODY_JOINTS))
    b3_pad = jnp.pad(b3_raw, ((0, 0), (0, OUT6_PAD - OUT6)))
    vposer = {
        "w1": (0.05 * jax.random.normal(ks[0], (LATENT_D, HIDDEN),
                                        jnp.float32)).astype(jnp.bfloat16),
        "b1": jnp.zeros((1, HIDDEN), jnp.float32),
        "w2": (0.05 * jax.random.normal(ks[1], (HIDDEN, HIDDEN),
                                        jnp.float32)).astype(jnp.bfloat16),
        "b2": jnp.zeros((1, HIDDEN), jnp.float32),
        "w3": w3_pad.astype(jnp.bfloat16),
        "b3": b3_pad,
    }

    v_template = 0.3 * jax.random.normal(ks[3], (NUM_VERTS, 3), jnp.float32)
    shapedirs = 0.01 * jax.random.normal(
        ks[4], (NUM_VERTS, 3, NUM_BETAS + NUM_EXPR), jnp.float32)
    # posedirs in coordinate-major column order: (486, 3, V) -> (486, 3V)
    posedirs = 0.01 * jax.random.normal(
        ks[5], (PF_DIM, 3, NUM_VERTS), jnp.float32)
    j_reg = jax.random.uniform(ks[6], (NUM_JOINTS, NUM_VERTS), jnp.float32)
    j_reg = j_reg / jnp.sum(j_reg, axis=1, keepdims=True)
    lbs_w = jax.random.uniform(ks[7], (NUM_VERTS, NUM_JOINTS), jnp.float32)
    lbs_w = lbs_w / jnp.sum(lbs_w, axis=1, keepdims=True)

    # betas / expression created as zeros (create_betas / create_expression)
    shape_coefs = jnp.zeros((NUM_BETAS + NUM_EXPR,), jnp.float32)
    v_shaped = v_template + jnp.einsum("vdk,k->vd", shapedirs, shape_coefs)
    joints_rest = j_reg @ v_shaped

    smplx = {
        "v_shaped3": v_shaped.T,                                  # (3, V) f32
        "posedirs_b": posedirs.reshape(PF_DIM, 3 * NUM_VERTS)
                              .astype(jnp.bfloat16),              # (486,3V) bf16
        "lbs_wT_b": lbs_w.T.astype(jnp.bfloat16),                 # (55, V) bf16
        "joints_rest": joints_rest,                               # (55, 3) f32
    }
    return vposer, smplx


# ================================ main ===================================

if __name__ == "__main__":
    B, T, G, P = 2, 8, 16, 256
    key = jax.random.PRNGKey(0)
    k_param, k1, k2, k3, k4, k5 = jax.random.split(key, 6)

    vposer_params, smplx_params = init_params(k_param)

    poses_input = 0.5 * jax.random.normal(k1, (B, T, POSE_DIM), jnp.float32)
    poses_label = 0.5 * jax.random.normal(k2, (B, T, POSE_DIM), jnp.float32)
    poses_predict = 0.5 * jax.random.normal(k3, (B, T, POSE_DIM), jnp.float32)
    gazes = jax.random.normal(k4, (B, T, G, 3), jnp.float32)
    scene_points = jax.random.normal(k5, (B, P, 3), jnp.float32)

    out = save_smplx_forward(poses_input, poses_label, poses_predict, gazes,
                             scene_points, vposer_params, smplx_params,
                             prefix="epoch0")
    out = jax.block_until_ready(out)

    for name in ("input_vertices", "gt_vertices", "predict_vertices"):
        v = out[name]
        assert v.shape == (T, NUM_VERTS, 3), (name, v.shape)
        assert bool(jnp.all(jnp.isfinite(v))), name

    print("KERNEL_OK")
</pallas_src>

<mosaic_0001>
module attributes {stable_mosaic.version = 11 : i64} {
  func.func @_vposer_mlp_kernel(%arg0: i32, %arg1: memref<24x32xf32, #tpu.memory_space<vmem>>, %arg2: memref<32x512xbf16, #tpu.memory_space<vmem>>, %arg3: memref<1x512xf32, #tpu.memory_space<vmem>>, %arg4: memref<512x512xbf16, #tpu.memory_space<vmem>>, %arg5: memref<1x512xf32, #tpu.memory_space<vmem>>, %arg6: memref<512x128xbf16, #tpu.memory_space<vmem>>, %arg7: memref<1x128xf32, #tpu.memory_space<vmem>>, %arg8: memref<24x128xf32, #tpu.memory_space<vmem>>) attributes {dimension_semantics = [#tpu.dimension_semantics<arbitrary>], iteration_bounds = array<i64: 1>, scalar_prefetch = 0 : i64, scratch_operands = 0 : i64, tpu.core_type = #tpu.core_type<tc>, window_params = [{pipeline_mode = #tpu.pipeline_mode<synchronous>, transform_indices = @transform_0, window_bounds = array<i64: 24, 32>}, {pipeline_mode = #tpu.pipeline_mode<synchronous>, transform_indices = @transform_1, window_bounds = array<i64: 32, 512>}, {pipeline_mode = #tpu.pipeline_mode<synchronous>, transform_indices = @transform_2, window_bounds = array<i64: 1, 512>}, {pipeline_mode = #tpu.pipeline_mode<synchronous>, transform_indices = @transform_3, window_bounds = array<i64: 512, 512>}, {pipeline_mode = #tpu.pipeline_mode<synchronous>, transform_indices = @transform_4, window_bounds = array<i64: 1, 512>}, {pipeline_mode = #tpu.pipeline_mode<synchronous>, transform_indices = @transform_5, window_bounds = array<i64: 512, 128>}, {pipeline_mode = #tpu.pipeline_mode<synchronous>, transform_indices = @transform_6, window_bounds = array<i64: 1, 128>}, {pipeline_mode = #tpu.pipeline_mode<synchronous>, transform_indices = @transform_7, window_bounds = array<i64: 24, 128>}]} {
    %c0 = arith.constant 0 : index
    %c0_0 = arith.constant 0 : index
    %0 = vector.load %arg1[%c0, %c0_0] : memref<24x32xf32, #tpu.memory_space<vmem>>, vector<24x32xf32>
    %1 = arith.truncf %0 : vector<24x32xf32> to vector<24x32xbf16>
    %c0_1 = arith.constant 0 : index
    %c0_2 = arith.constant 0 : index
    %2 = vector.load %arg2[%c0_1, %c0_2] : memref<32x512xbf16, #tpu.memory_space<vmem>>, vector<32x512xbf16>
    %cst = arith.constant dense<0.000000e+00> : vector<24x512xf32>
    %3 = tpu.matmul %1, %2, %cst {dimension_numbers = #tpu.dot_dimension_numbers<[1], [0], [0], [1], [0, 0, 1, 1], [], []>} : vector<24x32xbf16>, vector<32x512xbf16>, vector<24x512xf32> -> vector<24x512xf32>
    %c0_3 = arith.constant 0 : index
    %c0_4 = arith.constant 0 : index
    %4 = vector.load %arg3[%c0_3, %c0_4] : memref<1x512xf32, #tpu.memory_space<vmem>>, vector<1x512xf32>
    %5 = vector.broadcast %4 : vector<1x512xf32> to vector<24x512xf32>
    %6 = arith.addf %3, %5 : vector<24x512xf32>
    %cst_5 = arith.constant 0.000000e+00 : f32
    %7 = vector.broadcast %cst_5 : f32 to vector<24x512xf32>
    %8 = arith.cmpf ogt, %6, %7 : vector<24x512xf32>
    %cst_6 = arith.constant 0.00999999977 : f32
    %9 = vector.broadcast %cst_6 : f32 to vector<24x512xf32>
    %10 = arith.mulf %9, %6 : vector<24x512xf32>
    %11 = arith.select %8, %6, %10 : vector<24x512xi1>, vector<24x512xf32>
    %12 = arith.truncf %11 : vector<24x512xf32> to vector<24x512xbf16>
    %c0_7 = arith.constant 0 : index
    %c0_8 = arith.constant 0 : index
    %13 = vector.load %arg4[%c0_7, %c0_8] : memref<512x512xbf16, #tpu.memory_space<vmem>>, vector<512x512xbf16>
    %cst_9 = arith.constant dense<0.000000e+00> : vector<24x512xf32>
    %14 = tpu.matmul %12, %13, %cst_9 {dimension_numbers = #tpu.dot_dimension_numbers<[1], [0], [0], [1], [0, 0, 1, 1], [], []>} : vector<24x512xbf16>, vector<512x512xbf16>, vector<24x512xf32> -> vector<24x512xf32>
    %c0_10 = arith.constant 0 : index
    %c0_11 = arith.constant 0 : index
    %15 = vector.load %arg5[%c0_10, %c0_11] : memref<1x512xf32, #tpu.memory_space<vmem>>, vector<1x512xf32>
    %16 = vector.broadcast %15 : vector<1x512xf32> to vector<24x512xf32>
    %17 = arith.addf %14, %16 : vector<24x512xf32>
    %cst_12 = arith.constant 0.000000e+00 : f32
    %18 = vector.broadcast %cst_12 : f32 to vector<24x512xf32>
    %19 = arith.cmpf ogt, %17, %18 : vector<24x512xf32>
    %cst_13 = arith.constant 0.00999999977 : f32
    %20 = vector.broadcast %cst_13 : f32 to vector<24x512xf32>
    %21 = arith.mulf %20, %17 : vector<24x512xf32>
    %22 = arith.select %19, %17, %21 : vector<24x512xi1>, vector<24x512xf32>
    %23 = arith.truncf %22 : vector<24x512xf32> to vector<24x512xbf16>
    %c0_14 = arith.constant 0 : index
    %c0_15 = arith.constant 0 : index
    %24 = vector.load %arg6[%c0_14, %c0_15] : memref<512x128xbf16, #tpu.memory_space<vmem>>, vector<512x128xbf16>
    %cst_16 = arith.constant dense<0.000000e+00> : vector<24x128xf32>
    %25 = tpu.matmul %23, %24, %cst_16 {dimension_numbers = #tpu.dot_dimension_numbers<[1], [0], [0], [1], [0, 0, 1, 1], [], []>} : vector<24x512xbf16>, vector<512x128xbf16>, vector<24x128xf32> -> vector<24x128xf32>
    %c0_17 = arith.constant 0 : index
    %c0_18 = arith.constant 0 : index
    %26 = vector.load %arg7[%c0_17, %c0_18] : memref<1x128xf32, #tpu.memory_space<vmem>>, vector<1x128xf32>
    %27 = vector.broadcast %26 : vector<1x128xf32> to vector<24x128xf32>
    %28 = arith.addf %25, %27 : vector<24x128xf32>
    %c0_19 = arith.constant 0 : index
    %c0_20 = arith.constant 0 : index
    %29 = vector.load %arg8[%c0_19, %c0_20] : memref<24x128xf32, #tpu.memory_space<vmem>>, vector<24x128xf32>
    tpu.vector_store %arg8[%c0_19, %c0_20], %28 {strides = array<i32>} : memref<24x128xf32, #tpu.memory_space<vmem>>, vector<24x128xf32>,
    return
  }
  func.func @transform_0(%arg0: i32) -> (i32, i32) {
    %c0_i32 = arith.constant 0 : i32
    %c0_i32_0 = arith.constant 0 : i32
    %c0_i32_1 = arith.constant 0 : i32
    return %c0_i32, %c0_i32_0 : i32, i32
  }
  func.func @transform_1(%arg0: i32) -> (i32, i32) {
    %c0_i32 = arith.constant 0 : i32
    %c0_i32_0 = arith.constant 0 : i32
    %c0_i32_1 = arith.constant 0 : i32
    return %c0_i32, %c0_i32_0 : i32, i32
  }
  func.func @transform_2(%arg0: i32) -> (i32, i32) {
    %c0_i32 = arith.constant 0 : i32
    %c0_i32_0 = arith.constant 0 : i32
    %c0_i32_1 = arith.constant 0 : i32
    return %c0_i32, %c0_i32_0 : i32, i32
  }
  func.func @transform_3(%arg0: i32) -> (i32, i32) {
    %c0_i32 = arith.constant 0 : i32
    %c0_i32_0 = arith.constant 0 : i32
    %c0_i32_1 = arith.constant 0 : i32
    return %c0_i32, %c0_i32_0 : i32, i32
  }
  func.func @transform_4(%arg0: i32) -> (i32, i32) {
    %c0_i32 = arith.constant 0 : i32
    %c0_i32_0 = arith.constant 0 : i32
    %c0_i32_1 = arith.constant 0 : i32
    return %c0_i32, %c0_i32_0 : i32, i32
  }
  func.func @transform_5(%arg0: i32) -> (i32, i32) {
    %c0_i32 = arith.constant 0 : i32
    %c0_i32_0 = arith.constant 0 : i32
    %c0_i32_1 = arith.constant 0 : i32
    return %c0_i32, %c0_i32_0 : i32, i32
  }
  func.func @transform_6(%arg0: i32) -> (i32, i32) {
    %c0_i32 = arith.constant 0 : i32
    %c0_i32_0 = arith.constant 0 : i32
    %c0_i32_1 = arith.constant 0 : i32
    return %c0_i32, %c0_i32_0 : i32, i32
  }
  func.func @transform_7(%arg0: i32) -> (i32, i32) {
    %c0_i32 = arith.constant 0 : i32
    %c0_i32_0 = arith.constant 0 : i32
    %c0_i32_1 = arith.constant 0 : i32
    return %c0_i32, %c0_i32_0 : i32, i32
  }
}

module attributes {stable_mosaic.version = 11 : i64} {
  func.func @_lbs_kernel(%arg0: i32, %arg1: memref<24x486xf32, #tpu.memory_space<vmem>>, %arg2: memref<288x55xf32, #tpu.memory_space<vmem>>, %arg3: memref<3x24x1xf32, #tpu.memory_space<vmem>>, %arg4: memref<3x512xf32, #tpu.memory_space<vmem>>, %arg5: memref<486x1536xbf16, #tpu.memory_space<vmem>>, %arg6: memref<55x512xbf16, #tpu.memory_space<vmem>>, %arg7: memref<3x24x512xf32, #tpu.memory_space<vmem>>) attributes {dimension_semantics = [#tpu.dimension_semantics<arbitrary>], iteration_bounds = array<i64: 1>, scalar_prefetch = 0 : i64, scratch_operands = 0 : i64, tpu.core_type = #tpu.core_type<tc>, window_params = [{pipeline_mode = #tpu.pipeline_mode<synchronous>, transform_indices = @transform_0, window_bounds = array<i64: 24, 486>}, {pipeline_mode = #tpu.pipeline_mode<synchronous>, transform_indices = @transform_1, window_bounds = array<i64: 288, 55>}, {pipeline_mode = #tpu.pipeline_mode<synchronous>, transform_indices = @transform_2, window_bounds = array<i64: 3, 24, 1>}, {pipeline_mode = #tpu.pipeline_mode<synchronous>, transform_indices = @transform_3, window_bounds = array<i64: 3, 512>}, {pipeline_mode = #tpu.pipeline_mode<synchronous>, transform_indices = @transform_4, window_bounds = array<i64: 486, 1536>}, {pipeline_mode = #tpu.pipeline_mode<synchronous>, transform_indices = @transform_5, window_bounds = array<i64: 55, 512>}, {pipeline_mode = #tpu.pipeline_mode<synchronous>, transform_indices = @transform_6, window_bounds = array<i64: 3, 24, 512>}]} {
    %c0 = arith.constant 0 : index
    %c0_0 = arith.constant 0 : index
    %0 = vector.load %arg1[%c0, %c0_0] : memref<24x486xf32, #tpu.memory_space<vmem>>, vector<24x486xf32>
    %1 = arith.truncf %0 : vector<24x486xf32> to vector<24x486xbf16>
    %c0_1 = arith.constant 0 : index
    %c0_2 = arith.constant 0 : index
    %2 = vector.load %arg5[%c0_1, %c0_2] : memref<486x1536xbf16, #tpu.memory_space<vmem>>, vector<486x1536xbf16>
    %cst = arith.constant dense<0.000000e+00> : vector<24x1536xf32>
    %3 = tpu.matmul %1, %2, %cst {dimension_numbers = #tpu.dot_dimension_numbers<[1], [0], [0], [1], [0, 0, 1, 1], [], []>} : vector<24x486xbf16>, vector<486x1536xbf16>, vector<24x1536xf32> -> vector<24x1536xf32>
    %c0_3 = arith.constant 0 : index
    %c0_4 = arith.constant 0 : index
    %4 = vector.load %arg2[%c0_3, %c0_4] : memref<288x55xf32, #tpu.memory_space<vmem>>, vector<288x55xf32>
    %5 = arith.truncf %4 : vector<288x55xf32> to vector<288x55xbf16>
    %c0_5 = arith.constant 0 : index
    %c0_6 = arith.constant 0 : index
    %6 = vector.load %arg6[%c0_5, %c0_6] : memref<55x512xbf16, #tpu.memory_space<vmem>>, vector<55x512xbf16>
    %cst_7 = arith.constant dense<0.000000e+00> : vector<288x512xf32>
    %7 = tpu.matmul %5, %6, %cst_7 {dimension_numbers = #tpu.dot_dimension_numbers<[1], [0], [0], [1], [0, 0, 1, 1], [], []>} : vector<288x55xbf16>, vector<55x512xbf16>, vector<288x512xf32> -> vector<288x512xf32>
    %c0_8 = arith.constant 0 : index
    %c0_9 = arith.constant 0 : index
    %8 = vector.load %arg4[%c0_8, %c0_9] : memref<3x512xf32, #tpu.memory_space<vmem>>, vector<1x512xf32>
    %9 = vector.extract_strided_slice %3 {offsets = [0, 0], sizes = [24, 512], strides = [1, 1]} : vector<24x1536xf32> to vector<24x512xf32>
    %10 = vector.broadcast %8 : vector<1x512xf32> to vector<24x512xf32>
    %11 = arith.addf %10, %9 : vector<24x512xf32>
    %c1 = arith.constant 1 : index
    %c0_10 = arith.constant 0 : index
    %12 = vector.load %arg4[%c1, %c0_10] : memref<3x512xf32, #tpu.memory_space<vmem>>, vector<1x512xf32>
    %13 = vector.extract_strided_slice %3 {offsets = [0, 512], sizes = [24, 512], strides = [1, 1]} : vector<24x1536xf32> to vector<24x512xf32>
    %14 = vector.broadcast %12 : vector<1x512xf32> to vector<24x512xf32>
    %15 = arith.addf %14, %13 : vector<24x512xf32>
    %c2 = arith.constant 2 : index
    %c0_11 = arith.constant 0 : index
    %16 = vector.load %arg4[%c2, %c0_11] : memref<3x512xf32, #tpu.memory_space<vmem>>, vector<1x512xf32>
    %17 = vector.extract_strided_slice %3 {offsets = [0, 1024], sizes = [24, 512], strides = [1, 1]} : vector<24x1536xf32> to vector<24x512xf32>
    %18 = vector.broadcast %16 : vector<1x512xf32> to vector<24x512xf32>
    %19 = arith.addf %18, %17 : vector<24x512xf32>
    %20 = vector.extract_strided_slice %7 {offsets = [0, 0], sizes = [24, 512], strides = [1, 1]} : vector<288x512xf32> to vector<24x512xf32>
    %21 = vector.extract_strided_slice %7 {offsets = [24, 0], sizes = [24, 512], strides = [1, 1]} : vector<288x512xf32> to vector<24x512xf32>
    %22 = vector.extract_strided_slice %7 {offsets = [48, 0], sizes = [24, 512], strides = [1, 1]} : vector<288x512xf32> to vector<24x512xf32>
    %23 = vector.extract_strided_slice %7 {offsets = [72, 0], sizes = [24, 512], strides = [1, 1]} : vector<288x512xf32> to vector<24x512xf32>
    %24 = arith.mulf %20, %11 : vector<24x512xf32>
    %25 = arith.mulf %21, %15 : vector<24x512xf32>
    %26 = arith.addf %24, %25 : vector<24x512xf32>
    %27 = arith.mulf %22, %19 : vector<24x512xf32>
    %28 = arith.addf %26, %27 : vector<24x512xf32>
    %29 = arith.addf %28, %23 : vector<24x512xf32>
    %c0_12 = arith.constant 0 : index
    %c0_13 = arith.constant 0 : index
    %c0_14 = arith.constant 0 : index
    %30 = vector.load %arg3[%c0_12, %c0_13, %c0_14] : memref<3x24x1xf32, #tpu.memory_space<vmem>>, vector<1x24x1xf32>
    %31 = vector.shape_cast %30 : vector<1x24x1xf32> to vector<24x1xf32>
    %32 = vector.broadcast %31 : vector<24x1xf32> to vector<24x512xf32>
    %33 = arith.addf %29, %32 : vector<24x512xf32>
    %c0_15 = arith.constant 0 : index
    %c0_16 = arith.constant 0 : index
    %c0_17 = arith.constant 0 : index
    %34 = vector.load %arg7[%c0_15, %c0_16, %c0_17] : memref<3x24x512xf32, #tpu.memory_space<vmem>>, vector<1x24x512xf32>
    %35 = vector.shape_cast %34 : vector<1x24x512xf32> to vector<24x512xf32>
    %36 = vector.shape_cast %33 : vector<24x512xf32> to vector<1x24x512xf32>
    tpu.vector_store %arg7[%c0_15, %c0_16, %c0_17], %36 {strides = array<i32>} : memref<3x24x512xf32, #tpu.memory_space<vmem>>, vector<1x24x512xf32>,
    %37 = vector.extract_strided_slice %7 {offsets = [96, 0], sizes = [24, 512], strides = [1, 1]} : vector<288x512xf32> to vector<24x512xf32>
    %38 = vector.extract_strided_slice %7 {offsets = [120, 0], sizes = [24, 512], strides = [1, 1]} : vector<288x512xf32> to vector<24x512xf32>
    %39 = vector.extract_strided_slice %7 {offsets = [144, 0], sizes = [24, 512], strides = [1, 1]} : vector<288x512xf32> to vector<24x512xf32>
    %40 = vector.extract_strided_slice %7 {offsets = [168, 0], sizes = [24, 512], strides = [1, 1]} : vector<288x512xf32> to vector<24x512xf32>
    %41 = arith.mulf %37, %11 : vector<24x512xf32>
    %42 = arith.mulf %38, %15 : vector<24x512xf32>
    %43 = arith.addf %41, %42 : vector<24x512xf32>
    %44 = arith.mulf %39, %19 : vector<24x512xf32>
    %45 = arith.addf %43, %44 : vector<24x512xf32>
    %46 = arith.addf %45, %40 : vector<24x512xf32>
    %c1_18 = arith.constant 1 : index
    %c0_19 = arith.constant 0 : index
    %c0_20 = arith.constant 0 : index
    %47 = vector.load %arg3[%c1_18, %c0_19, %c0_20] : memref<3x24x1xf32, #tpu.memory_space<vmem>>, vector<1x24x1xf32>
    %48 = vector.shape_cast %47 : vector<1x24x1xf32> to vector<24x1xf32>
    %49 = vector.broadcast %48 : vector<24x1xf32> to vector<24x512xf32>
    %50 = arith.addf %46, %49 : vector<24x512xf32>
    %c1_21 = arith.constant 1 : index
    %c0_22 = arith.constant 0 : index
    %c0_23 = arith.constant 0 : index
    %51 = vector.load %arg7[%c1_21, %c0_22, %c0_23] : memref<3x24x512xf32, #tpu.memory_space<vmem>>, vector<1x24x512xf32>
    %52 = vector.shape_cast %51 : vector<1x24x512xf32> to vector<24x512xf32>
    %53 = vector.shape_cast %50 : vector<24x512xf32> to vector<1x24x512xf32>
    tpu.vector_store %arg7[%c1_21, %c0_22, %c0_23], %53 {strides = array<i32>} : memref<3x24x512xf32, #tpu.memory_space<vmem>>, vector<1x24x512xf32>,
    %54 = vector.extract_strided_slice %7 {offsets = [192, 0], sizes = [24, 512], strides = [1, 1]} : vector<288x512xf32> to vector<24x512xf32>
    %55 = vector.extract_strided_slice %7 {offsets = [216, 0], sizes = [24, 512], strides = [1, 1]} : vector<288x512xf32> to vector<24x512xf32>
    %56 = vector.extract_strided_slice %7 {offsets = [240, 0], sizes = [24, 512], strides = [1, 1]} : vector<288x512xf32> to vector<24x512xf32>
    %57 = vector.extract_strided_slice %7 {offsets = [264, 0], sizes = [24, 512], strides = [1, 1]} : vector<288x512xf32> to vector<24x512xf32>
    %58 = arith.mulf %54, %11 : vector<24x512xf32>
    %59 = arith.mulf %55, %15 : vector<24x512xf32>
    %60 = arith.addf %58, %59 : vector<24x512xf32>
    %61 = arith.mulf %56, %19 : vector<24x512xf32>
    %62 = arith.addf %60, %61 : vector<24x512xf32>
    %63 = arith.addf %62, %57 : vector<24x512xf32>
    %c2_24 = arith.constant 2 : index
    %c0_25 = arith.constant 0 : index
    %c0_26 = arith.constant 0 : index
    %64 = vector.load %arg3[%c2_24, %c0_25, %c0_26] : memref<3x24x1xf32, #tpu.memory_space<vmem>>, vector<1x24x1xf32>
    %65 = vector.shape_cast %64 : vector<1x24x1xf32> to vector<24x1xf32>
    %66 = vector.broadcast %65 : vector<24x1xf32> to vector<24x512xf32>
    %67 = arith.addf %63, %66 : vector<24x512xf32>
    %c2_27 = arith.constant 2 : index
    %c0_28 = arith.constant 0 : index
    %c0_29 = arith.constant 0 : index
    %68 = vector.load %arg7[%c2_27, %c0_28, %c0_29] : memref<3x24x512xf32, #tpu.memory_space<vmem>>, vector<1x24x512xf32>
    %69 = vector.shape_cast %68 : vector<1x24x512xf32> to vector<24x512xf32>
    %70 = vector.shape_cast %67 : vector<24x512xf32> to vector<1x24x512xf32>
    tpu.vector_store %arg7[%c2_27, %c0_28, %c0_29], %70 {strides = array<i32>} : memref<3x24x512xf32, #tpu.memory_space<vmem>>, vector<1x24x512xf32>,
    return
  }
  func.func @transform_0(%arg0: i32) -> (i32, i32) {
    %c0_i32 = arith.constant 0 : i32
    %c0_i32_0 = arith.constant 0 : i32
    %c0_i32_1 = arith.constant 0 : i32
    return %c0_i32, %c0_i32_0 : i32, i32
  }
  func.func @transform_1(%arg0: i32) -> (i32, i32) {
    %c0_i32 = arith.constant 0 : i32
    %c0_i32_0 = arith.constant 0 : i32
    %c0_i32_1 = arith.constant 0 : i32
    return %c0_i32, %c0_i32_0 : i32, i32
  }
  func.func @transform_2(%arg0: i32) -> (i32, i32, i32) {
    %c0_i32 = arith.constant 0 : i32
    %c0_i32_0 = arith.constant 0 : i32
    %c0_i32_1 = arith.constant 0 : i32
    %c0_i32_2 = arith.constant 0 : i32
    return %c0_i32, %c0_i32_0, %c0_i32_1 : i32, i32, i32
  }
  func.func @transform_3(%arg0: i32) -> (i32, i32) {
    %c0_i32 = arith.constant 0 : i32
    %c0_i32_0 = arith.constant 0 : i32
    %c0_i32_1 = arith.constant 0 : i32
    return %c0_i32, %c0_i32_0 : i32, i32
  }
  func.func @transform_4(%arg0: i32) -> (i32, i32) {
    %c0_i32 = arith.constant 0 : i32
    %c0_i32_0 = arith.constant 0 : i32
    %c0_i32_1 = arith.constant 0 : i32
    return %c0_i32, %c0_i32_0 : i32, i32
  }
  func.func @transform_5(%arg0: i32) -> (i32, i32) {
    %c0_i32 = arith.constant 0 : i32
    %c0_i32_0 = arith.constant 0 : i32
    %c0_i32_1 = arith.constant 0 : i32
    return %c0_i32, %c0_i32_0 : i32, i32
  }
  func.func @transform_6(%arg0: i32) -> (i32, i32, i32) {
    %c0_i32 = arith.constant 0 : i32
    %c0_i32_0 = arith.constant 0 : i32
    %c0_i32_1 = arith.constant 0 : i32
    %c0_i32_2 = arith.constant 0 : i32
    return %c0_i32, %c0_i32_0, %c0_i32_1 : i32, i32, i32
  }
}

</mosaic_0001>

<bundles_post_ra>
// kernel: _process_pose_sequences.2
= control target key start
LH: loop header
LB: loop body
LE: loop exit
PB: predicated region body
PF: predicated region fallthrough
CT: control target
= control target key end

     0   :  { %12 = vsyncpa [#allocation3], 0  ;;  %s2483_s0 = inlined_call_operand.vmem [shape: f32[24,32], index: 0, kind: input, shape index: {}]   ;;  %s2484_s1 = inlined_call_operand.hbm [shape: bf16[32,512], index: 1, kind: input, shape index: {}]   ;;  %s2485_s2 = inlined_call_operand.hbm [shape: f32[1,512], index: 2, kind: input, shape index: {}]   ;;  %s2486_s3 = inlined_call_operand.hbm [shape: bf16[512,512], index: 3, kind: input, shape index: {}]   ;;  %s2487_s4 = inlined_call_operand.hbm [shape: f32[1,512], index: 4, kind: input, shape index: {}]   ;;  %s2488_s5 = inlined_call_operand.hbm [shape: bf16[512,128], index: 5, kind: input, shape index: {}]   ;;  %s2489_s6 = inlined_call_operand.hbm [shape: f32[1,128], index: 6, kind: input, shape index: {}]   ;;  %s2490_s7 = inlined_call_operand.vmem [shape: f32[24,128], index: 7, kind: output, shape index: {}]  }
   0x1   :  { %13 = vsyncpa [#allocation5], 0 }
   0x2   :  { %14 = vsyncpa [#allocation8], 0 }
   0x3   :  { %15 = vsyncpa [#allocation11], 0  ;;  %s2343_s24 = smov [#allocation4]   ;;  %s2344_s26 = smov [#allocation7]  }
   0x4   :  { %s36_s25 = sshll.u32 %s2343_s24, 4  ;;  %s58_s27 = sshll.u32 %s2344_s26, 4  ;;  %s37_s25 = int_to_ptr.vmem [resolvable:$true] %s36_s25  ;;  %s59_s27 = int_to_ptr.vmem [resolvable:$true] %s58_s27 }
   0x5   :  { %s2223_s28 = scalar_lea.vmem %s37_s25, 64  ;;  %p2228_p1 = scmp.lt.s32.totalorder %s37_s25, %s37_s25 }
   0x6   :  { %p2224_p0 = scmp.ne.s32.totalorder %s37_s25, %s2223_s28  ;;  %p2229_p2 = scmp.lt.s32.totalorder %s2223_s28, %s2223_s28 }
   0x8   :  { %p2230_p3 = por %p2229_p2, %p2228_p1 }
   0xa   :  { %p2231_p4 = pnand %p2230_p3, %p2224_p0 }
   0xc   :  { %2234 = shalt.err (!%p2231_p4)
}
   0xd   :  { %39 = dma.hbm_to_vmem [thread:$0]  %s2485_s2, 64, %s37_s25, [#allocation5]  }
   0xe   :  { %s2243_s8 = scalar_lea.vmem %s59_s27, 64  ;;  %p2248_p6 = scmp.lt.s32.totalorder %s59_s27, %s59_s27 }
   0xf   :  { %p2244_p5 = scmp.ne.s32.totalorder %s59_s27, %s2243_s8  ;;  %p2249_p7 = scmp.lt.s32.totalorder %s2243_s8, %s2243_s8 }
  0x11   :  { %p2250_p8 = por %p2249_p7, %p2248_p6 }
  0x13   :  { %p2251_p9 = pnand %p2250_p8, %p2244_p5 }
  0x15   :  { %2254 = shalt.err (!%p2251_p9)
}
  0x16   :  { %61 = dma.hbm_to_vmem [thread:$0]  %s2487_s4, 64, %s59_s27, [#allocation8]  }
  0x17   :  { %s2345_s11 = smov [#allocation2]  }
  0x18   :  { %s23_s12 = sshll.u32 %s2345_s11, 4  ;;  %s24_s12 = int_to_ptr.vmem [resolvable:$true] %s23_s12 }
  0x19   :  { %s2263_s13 = scalar_lea.vmem %s24_s12, 1024  ;;  %p2268_p11 = scmp.lt.s32.totalorder %s24_s12, %s24_s12 }
  0x1a   :  { %p2264_p10 = scmp.ne.s32.totalorder %s24_s12, %s2263_s13  ;;  %p2269_p12 = scmp.lt.s32.totalorder %s2263_s13, %s2263_s13 }
  0x1c   :  { %p2270_p13 = por %p2269_p12, %p2268_p11 }
  0x1e   :  { %p2271_p0 = pnand %p2270_p13, %p2264_p10 }
  0x20   :  { %2274 = shalt.err (!%p2271_p0)
}
  0x21   :  { %s2346_s2 = smov 256   ;;  %s2347_s14 = smov 16  }
  0x22   :  { %29 = dma.hbm_to_vmem [thread:$0]  %s2484_s1, 1024, %s24_s12, [#allocation3], %s2346_s2, %s2346_s2, %s2347_s14  }
  0x23   :  { %s2348_s17 = smov [#allocation6]   ;;  %s2349_s4 = smov [#allocation9]  }
  0x24   :  { %s45_s18 = sshll.u32 %s2348_s17, 4  ;;  %s67_s19 = sshll.u32 %s2349_s4, 4  ;;  %s46_s18 = int_to_ptr.vmem [resolvable:$true] %s45_s18  ;;  %s68_s19 = int_to_ptr.vmem [resolvable:$true] %s67_s19 }
  0x25   :  { %s2283_s20 = scalar_lea.vmem %s46_s18, 16384  ;;  %p2288_p2 = scmp.lt.s32.totalorder %s46_s18, %s46_s18 }
  0x26   :  { %p2284_p1 = scmp.ne.s32.totalorder %s46_s18, %s2283_s20  ;;  %p2289_p3 = scmp.lt.s32.totalorder %s2283_s20, %s2283_s20 }
  0x28   :  { %p2290_p4 = por %p2289_p3, %p2288_p2 }
  0x2a   :  { %p2291_p5 = pnand %p2290_p4, %p2284_p1 }
  0x2c   :  { %2294 = shalt.err (!%p2291_p5)
}
  0x2d   :  { %51 = dma.hbm_to_vmem [thread:$0]  %s2486_s3, 16384, %s46_s18, [#allocation5], %s2346_s2, %s2346_s2, %s2347_s14  }
  0x2e   :  { %s2303_s23 = scalar_lea.vmem %s68_s19, 4096  ;;  %p2308_p7 = scmp.lt.s32.totalorder %s68_s19, %s68_s19 }
  0x2f   :  { %p2304_p6 = scmp.ne.s32.totalorder %s68_s19, %s2303_s23  ;;  %p2309_p8 = scmp.lt.s32.totalorder %s2303_s23, %s2303_s23 }
  0x31   :  { %p2310_p9 = por %p2309_p8, %p2308_p7 }
  0x33   :  { %p2311_p10 = pnand %p2310_p9, %p2304_p6 }
  0x35   :  { %2314 = shalt.err (!%p2311_p10)
}
  0x36   :  { %s2350_s1 = smov 64   ;;  %s2351_s24 = smov 4  }
  0x37   :  { %73 = dma.hbm_to_vmem [thread:$0]  %s2488_s5, 4096, %s68_s19, [#allocation8], %s2350_s1, %s2350_s1, %s2351_s24  }
  0x38   :  { %s2352_s27 = smov [#allocation10]  }
  0x39   :  { %s80_s28 = sshll.u32 %s2352_s27, 4  ;;  %s81_s28 = int_to_ptr.vmem [resolvable:$true] %s80_s28 }
  0x3a   :  { %s2323_s29 = scalar_lea.vmem %s81_s28, 16  ;;  %s2327_s3 = scalar_lea.vmem %s81_s28, 32 }
  0x3b   :  { %p2324_p11 = scmp.ne.s32.totalorder %s81_s28, %s2323_s29  ;;  %p2328_p12 = scmp.lt.s32.totalorder %s81_s28, %s81_s28 }
  0x3c   :  { %p2329_p13 = scmp.lt.s32.totalorder %s2327_s3, %s2323_s29 }
  0x3e   :  { %p2330_p0 = por %p2329_p13, %p2328_p12 }
  0x40   :  { %p2331_p1 = pnand %p2330_p0, %p2324_p11 }
  0x42   :  { %2334 = shalt.err (!%p2331_p1)
}
  0x43   :  { %83 = dma.hbm_to_vmem [thread:$0]  %s2489_s6, 16, %s81_s28, [#allocation11]  }
  0x44   :  { %2335 = dma.done.wait [#allocation3], 1024  }
  0x45   :  { %2336 = vsyncadd [#allocation3], 4294966272 }
  0x46   :  { %2337 = dma.done.wait [#allocation5], 16448  }
  0x47   :  { %2338 = vsyncadd [#allocation5], 4294950848 }
  0x48   :  { %2339 = dma.done.wait [#allocation8], 4160  }
  0x49   :  { %2340 = vsyncadd [#allocation8], 4294963136 }
  0x4a   :  { %2341 = dma.done.wait [#allocation11], 16  }
  0x4b   :  { %2342 = vsyncadd [#allocation11], 4294967280  ;;  %v2353_v0 = vmov 0   ;;  %v1979_v1 = vld [vmem:[#allocation2 + $0x24] ss:$16 sps:$4 sm:$0xff]   ;;  %v104_v10 = vld [vmem:[%s2483_s0 + $0x8] sm:$0xff] }
  0x4c   :  { %217 = vmatprep.mubr.bf16.mxu0 %v2353_v0  ;;  %268 = vmatprep.mubr.bf16.mxu1 %v2353_v0  ;;  %v1981_v2 = vld [vmem:[#allocation2 + $0x2c] ss:$16 sps:$4 sm:$0xff]   ;;  %v1983_v3 = vld [vmem:[#allocation2 + $0x20] ss:$16 sps:$4 sm:$0xff]   ;;  %v1984_v4 = vld [vmem:[#allocation2 + $0x28] ss:$16 sps:$4 sm:$0xff]  }
  0x4d   :  { %197 = vmatprep.subr.bf16.mxu0 %v1979_v1  ;;  %248 = vmatprep.subr.bf16.mxu1 %v1981_v2  ;;  %v1985_v5 = vld [vmem:[#allocation2 + $0x4] ss:$16 sps:$4 sm:$0xff]   ;;  %v1987_v6 = vld [vmem:[#allocation2 + $0xc] ss:$16 sps:$4 sm:$0xff]   ;;  %v1989_v7 = vld [vmem:[#allocation2] ss:$16 sps:$4 sm:$0xff]  }
  0x4e   :  { %198 = vmatpush1.bf16.msra.mxu0 %v1983_v3  ;;  %249 = vmatpush1.bf16.msra.mxu1 %v1984_v4  ;;  %v1990_v8 = vld [vmem:[#allocation2 + $0x8] ss:$16 sps:$4 sm:$0xff]   ;;  %v103_v9 = vld [vmem:[%s2483_s0] sm:$0xff]  ;;  %vm178_vm0 = vcmask 261120   ;;  %v105_v17 = vld [vmem:[%s2483_s0 + $0x10] sm:$0xff] }
  0x4f   :  { %199 = vmatprep.subr.bf16.mxu0 %v1985_v5  ;;  %250 = vmatprep.subr.bf16.mxu1 %v1987_v6  ;;  %v106_v11 = vpack.c.bf16 %v104_v10, %v103_v9  ;;  %v1993_v12 = vld [vmem:[#allocation6 + $0xe4] ss:$16 sps:$4 sm:$0xff]   ;;  %v1991_v13 = vld [vmem:[#allocation6 + $0xe0] ss:$16 sps:$4 sm:$0xff]   ;;  %v107_v23 = vpack.c.bf16 %v105_v17, %v105_v17 }
  0x50   :  { %v1996_v14 = vld [vmem:[#allocation6 + $0x2e4] ss:$16 sps:$4 sm:$0xff]   ;;  %v1994_v15 = vld [vmem:[#allocation6 + $0x2e0] ss:$16 sps:$4 sm:$0xff]  }
  0x51   :  { %v1999_v16 = vld [vmem:[#allocation6 + $0xc4] ss:$16 sps:$4 sm:$0xff]   ;;  %v1997_v19 = vld [vmem:[#allocation6 + $0xc0] ss:$16 sps:$4 sm:$0xff]  }
  0x52   :  { %200 = vmatpush1.bf16.msra.mxu0 %v1989_v7  ;;  %251 = vmatpush1.bf16.msra.mxu1 %v1990_v8  ;;  %v2002_v18 = vld [vmem:[#allocation6 + $0x2c4] ss:$16 sps:$4 sm:$0xff]   ;;  %v2000_v20 = vld [vmem:[#allocation6 + $0x2c0] ss:$16 sps:$4 sm:$0xff]  }
  0x53   :  { %1121 = vmatprep.subr.bf16.mxu0 %v1993_v12  ;;  %1172 = vmatprep.subr.bf16.mxu1 %v1996_v14  ;;  %v2005_v21 = vld [vmem:[#allocation6 + $0xa4] ss:$16 sps:$4 sm:$0xff]   ;;  %v2003_v24 = vld [vmem:[#allocation6 + $0xa0] ss:$16 sps:$4 sm:$0xff]   ;;  %v2089_v14 = vld [vmem:[#allocation6 + $0xec] ss:$16 sps:$4 sm:$0xff]  }
  0x54   :  { %v2008_v22 = vld [vmem:[#allocation6 + $0x2a4] ss:$16 sps:$4 sm:$0xff]   ;;  %v2006_v25 = vld [vmem:[#allocation6 + $0x2a0] ss:$16 sps:$4 sm:$0xff]  }
  0x55   :  { %1747 = vmatmul.mubr.msk.bf16.vlgmr.msra.gmra.mxu0 %vm178_vm0, %v106_v11  ;;  %1749 = vmatmul.mubr.msk.bf16.vlgmr.msra.gmra.mxu1 %vm178_vm0, %v106_v11  ;;  %v2011_v26 = vld [vmem:[#allocation6 + $0x84] ss:$16 sps:$4 sm:$0xff]   ;;  %v2009_v28 = vld [vmem:[#allocation6 + $0x80] ss:$16 sps:$4 sm:$0xff]  }
  0x56   :  { %227 = vmatprep.mubr.bf16.mxu0 %v2353_v0  ;;  %278 = vmatprep.mubr.bf16.mxu1 %v2353_v0  ;;  %v2014_v27 = vld [vmem:[#allocation6 + $0x284] ss:$16 sps:$4 sm:$0xff]   ;;  %v2012_v29 = vld [vmem:[#allocation6 + $0x280] ss:$16 sps:$4 sm:$0xff]  }
  0x57   :  { %1122 = vmatpush1.bf16.msra.mxu0 %v1991_v13  ;;  %1173 = vmatpush1.bf16.msra.mxu1 %v1994_v15  ;;  %v2017_v30 = vld [vmem:[#allocation6 + $0x64] ss:$16 sps:$4 sm:$0xff]   ;;  %v2015_v32 = vld [vmem:[#allocation6 + $0x60] ss:$16 sps:$4 sm:$0xff]   ;;  %v2092_v15 = vld [vmem:[#allocation6 + $0x2ec] ss:$16 sps:$4 sm:$0xff]  }
  0x58   :  { %1123 = vmatprep.subr.bf16.mxu0 %v1999_v16  ;;  %1174 = vmatprep.subr.bf16.mxu1 %v2002_v18  ;;  %v2020_v31 = vld [vmem:[#allocation6 + $0x264] ss:$16 sps:$4 sm:$0xff]   ;;  %v2018_v33 = vld [vmem:[#allocation6 + $0x260] ss:$16 sps:$4 sm:$0xff]   ;;  %v118_v16 = vlaneseq }
  0x59   :  { %v2023_v34 = vld [vmem:[#allocation6 + $0x44] ss:$16 sps:$4 sm:$0xff]   ;;  %v2021_v36 = vld [vmem:[#allocation6 + $0x40] ss:$16 sps:$4 sm:$0xff]  }
  0x5a   :  { %v2026_v35 = vld [vmem:[#allocation6 + $0x244] ss:$16 sps:$4 sm:$0xff]   ;;  %v2024_v37 = vld [vmem:[#allocation6 + $0x240] ss:$16 sps:$4 sm:$0xff]   ;;  %v2425_v17 = vshrl.u32 %v118_v16, 7 }
  0x5b   :  { %1124 = vmatpush1.bf16.msra.mxu0 %v1997_v19  ;;  %1175 = vmatpush1.bf16.msra.mxu1 %v2000_v20  ;;  %v2029_v38 = vld [vmem:[#allocation6 + $0x24] ss:$16 sps:$4 sm:$0xff]   ;;  %v2027_v40 = vld [vmem:[#allocation6 + $0x20] ss:$16 sps:$4 sm:$0xff]   ;;  %v116_v20 = vld [vmem:[#allocation4] sm:$0xf] }
  0x5c   :  { %1125 = vmatprep.subr.bf16.mxu0 %v2005_v21  ;;  %1176 = vmatprep.subr.bf16.mxu1 %v2008_v22  ;;  %v2032_v39 = vld [vmem:[#allocation6 + $0x224] ss:$16 sps:$4 sm:$0xff]   ;;  %v2030_v41 = vld [vmem:[#allocation6 + $0x220] ss:$16 sps:$4 sm:$0xff]   ;;  %v120_v18 = vsub.s32 0, %v2425_v17  ;;  %v128_v19 = vsub.s32 2, %v2425_v17 }
  0x5d   :  { %1748 = vmatmul.mubr.msk.bf16.gmra.mxu0 %vm178_vm0, %v107_v23  ;;  %1750 = vmatmul.mubr.msk.bf16.gmra.mxu1 %vm178_vm0, %v107_v23  ;;  %v2035_v42 = vld [vmem:[#allocation6 + $0x4] ss:$16 sps:$4 sm:$0xff]   ;;  %v2033_v44 = vld [vmem:[#allocation6] ss:$16 sps:$4 sm:$0xff]   ;;  %v124_v21 = vsub.s32 1, %v2425_v17  ;;  %v132_v22 = vsub.s32 3, %v2425_v17 }
  0x5e   :  { %v2038_v43 = vld [vmem:[#allocation6 + $0x204] ss:$16 sps:$4 sm:$0xff]   ;;  %v2036_v45 = vld [vmem:[#allocation6 + $0x200] ss:$16 sps:$4 sm:$0xff]   ;;  %v121_v23 = vrot.slane %v116_v20, %v120_v18  ;;  %v2090_v16 = vld [vmem:[#allocation6 + $0x2e8] ss:$16 sps:$4 sm:$0xff]  }
  0x5f   :  { %1126 = vmatpush1.bf16.msra.mxu0 %v2003_v24  ;;  %1177 = vmatpush1.bf16.msra.mxu1 %v2006_v25  ;;  %v2041_v46 = vld [vmem:[#allocation6 + $0x1e4] ss:$16 sps:$4 sm:$0xff]   ;;  %v2039_v48 = vld [vmem:[#allocation6 + $0x1e0] ss:$16 sps:$4 sm:$0xff]   ;;  %v129_v24 = vrot.slane %v116_v20, %v128_v19 }
  0x60   :  { %1127 = vmatprep.subr.bf16.mxu0 %v2011_v26  ;;  %1178 = vmatprep.subr.bf16.mxu1 %v2014_v27  ;;  %v2044_v47 = vld [vmem:[#allocation6 + $0x3e4] ss:$16 sps:$4 sm:$0xff]   ;;  %v2042_v49 = vld [vmem:[#allocation6 + $0x3e0] ss:$16 sps:$4 sm:$0xff]   ;;  %v125_v27 = vrot.slane %v116_v20, %v124_v21 }
  0x61   :  { %v2047_v50 = vld [vmem:[#allocation6 + $0x1c4] ss:$16 sps:$4 sm:$0xff]   ;;  %v2045_v52 = vld [vmem:[#allocation6 + $0x1c0] ss:$16 sps:$4 sm:$0xff]  }
  0x62   :  { %v2050_v51 = vld [vmem:[#allocation6 + $0x3c4] ss:$16 sps:$4 sm:$0xff]   ;;  %v2048_v53 = vld [vmem:[#allocation6 + $0x3c0] ss:$16 sps:$4 sm:$0xff]  }
  0x63   :  { %1128 = vmatpush1.bf16.msra.mxu0 %v2009_v28  ;;  %1179 = vmatpush1.bf16.msra.mxu1 %v2012_v29  ;;  %v2053_v54 = vld [vmem:[#allocation6 + $0x1a4] ss:$16 sps:$4 sm:$0xff]   ;;  %v2051_v56 = vld [vmem:[#allocation6 + $0x1a0] ss:$16 sps:$4 sm:$0xff]   ;;  %v133_v28 = vrot.slane %v116_v20, %v132_v22  ;;  %v2095_v20 = vld [vmem:[#allocation6 + $0xcc] ss:$16 sps:$4 sm:$0xff]  }
  0x64   :  { %1129 = vmatprep.subr.bf16.mxu0 %v2017_v30  ;;  %1180 = vmatprep.subr.bf16.mxu1 %v2020_v31  ;;  %v2056_v55 = vld [vmem:[#allocation6 + $0x3a4] ss:$16 sps:$4 sm:$0xff]   ;;  %v2054_v57 = vld [vmem:[#allocation6 + $0x3a0] ss:$16 sps:$4 sm:$0xff]  }
  0x65   :  { %v2059_v58 = vld [vmem:[#allocation6 + $0x184] ss:$16 sps:$4 sm:$0xff]   ;;  %v2057_v60 = vld [vmem:[#allocation6 + $0x180] ss:$16 sps:$4 sm:$0xff]  }
  0x66   :  { %v2062_v59 = vld [vmem:[#allocation6 + $0x384] ss:$16 sps:$4 sm:$0xff]   ;;  %v2060_v61 = vld [vmem:[#allocation6 + $0x380] ss:$16 sps:$4 sm:$0xff]  }
  0x67   :  { %1130 = vmatpush1.bf16.msra.mxu0 %v2015_v32  ;;  %1181 = vmatpush1.bf16.msra.mxu1 %v2018_v33  ;;  %v2065_v62 = vld [vmem:[#allocation6 + $0x164] ss:$16 sps:$4 sm:$0xff]   ;;  %v2063_v0 = vld [vmem:[#allocation6 + $0x160] ss:$16 sps:$4 sm:$0xff]  }
  0x68   :  { %1131 = vmatprep.subr.bf16.mxu0 %v2023_v34  ;;  %1182 = vmatprep.subr.bf16.mxu1 %v2026_v35  ;;  %v2068_v63 = vld [vmem:[#allocation6 + $0x364] ss:$16 sps:$4 sm:$0xff]   ;;  %v2066_v1 = vld [vmem:[#allocation6 + $0x360] ss:$16 sps:$4 sm:$0xff]  }
  0x69   :  { %v2071_v2 = vld [vmem:[#allocation6 + $0x144] ss:$16 sps:$4 sm:$0xff]   ;;  %v2069_v4 = vld [vmem:[#allocation6 + $0x140] ss:$16 sps:$4 sm:$0xff]  }
  0x6a   :  { %v2074_v3 = vld [vmem:[#allocation6 + $0x344] ss:$16 sps:$4 sm:$0xff]   ;;  %v2072_v5 = vld [vmem:[#allocation6 + $0x340] ss:$16 sps:$4 sm:$0xff]  }
  0x6b   :  { %1132 = vmatpush1.bf16.msra.mxu0 %v2021_v36  ;;  %1183 = vmatpush1.bf16.msra.mxu1 %v2024_v37  ;;  %v2077_v6 = vld [vmem:[#allocation6 + $0x124] ss:$16 sps:$4 sm:$0xff]   ;;  %v2075_v8 = vld [vmem:[#allocation6 + $0x120] ss:$16 sps:$4 sm:$0xff]  }
  0x6c   :  { %1133 = vmatprep.subr.bf16.mxu0 %v2029_v38  ;;  %1184 = vmatprep.subr.bf16.mxu1 %v2032_v39  ;;  %v2080_v7 = vld [vmem:[#allocation6 + $0x324] ss:$16 sps:$4 sm:$0xff]   ;;  %v2078_v9 = vld [vmem:[#allocation6 + $0x320] ss:$16 sps:$4 sm:$0xff]  }
  0x6d   :  { %v2083_v10 = vld [vmem:[#allocation6 + $0x104] ss:$16 sps:$4 sm:$0xff]   ;;  %v2081_v12 = vld [vmem:[#allocation6 + $0x100] ss:$16 sps:$4 sm:$0xff]  }
  0x6e   :  { %v2086_v11 = vld [vmem:[#allocation6 + $0x304] ss:$16 sps:$4 sm:$0xff]   ;;  %v2084_v13 = vld [vmem:[#allocation6 + $0x300] ss:$16 sps:$4 sm:$0xff]  }
  0x6f   :  { %1134 = vmatpush1.bf16.msra.mxu0 %v2027_v40  ;;  %1185 = vmatpush1.bf16.msra.mxu1 %v2030_v41 }
  0x70   :  { %1135 = vmatprep.subr.bf16.mxu0 %v2035_v42  ;;  %1186 = vmatprep.subr.bf16.mxu1 %v2038_v43 }
  0x73   :  { %1136 = vmatpush1.bf16.msra.mxu0 %v2033_v44  ;;  %1187 = vmatpush1.bf16.msra.mxu1 %v2036_v45 }
  0x74   :  { %1137 = vmatprep.subr.bf16.mxu0 %v2041_v46  ;;  %1188 = vmatprep.subr.bf16.mxu1 %v2044_v47 }
  0x77   :  { %1138 = vmatpush2.bf16.msra.mxu0 %v2039_v48  ;;  %1189 = vmatpush2.bf16.msra.mxu1 %v2042_v49 }
  0x78   :  { %1139 = vmatprep.subr.bf16.mxu0 %v2047_v50  ;;  %1190 = vmatprep.subr.bf16.mxu1 %v2050_v51 }
  0x7b   :  { %1140 = vmatpush2.bf16.msra.mxu0 %v2045_v52  ;;  %1191 = vmatpush2.bf16.msra.mxu1 %v2048_v53 }
  0x7c   :  { %1141 = vmatprep.subr.bf16.mxu0 %v2053_v54  ;;  %1192 = vmatprep.subr.bf16.mxu1 %v2056_v55 }
  0x7f   :  { %1142 = vmatpush2.bf16.msra.mxu0 %v2051_v56  ;;  %1193 = vmatpush2.bf16.msra.mxu1 %v2054_v57 }
  0x80   :  { %1143 = vmatprep.subr.bf16.mxu0 %v2059_v58  ;;  %1194 = vmatprep.subr.bf16.mxu1 %v2062_v59 }
  0x83   :  { %1144 = vmatpush2.bf16.msra.mxu0 %v2057_v60  ;;  %1195 = vmatpush2.bf16.msra.mxu1 %v2060_v61 }
  0x84   :  { %1145 = vmatprep.subr.bf16.mxu0 %v2065_v62  ;;  %1196 = vmatprep.subr.bf16.mxu1 %v2068_v63 }
  0x87   :  { %1146 = vmatpush2.bf16.msra.mxu0 %v2063_v0  ;;  %1197 = vmatpush2.bf16.msra.mxu1 %v2066_v1 }
  0x88   :  { %1147 = vmatprep.subr.bf16.mxu0 %v2071_v2  ;;  %1198 = vmatprep.subr.bf16.mxu1 %v2074_v3 }
  0x8b   :  { %1148 = vmatpush2.bf16.msra.mxu0 %v2069_v4  ;;  %1199 = vmatpush2.bf16.msra.mxu1 %v2072_v5 }
  0x8c   :  { %1149 = vmatprep.subr.bf16.mxu0 %v2077_v6  ;;  %1200 = vmatprep.subr.bf16.mxu1 %v2080_v7  ;;  %v2087_v7 = vld [vmem:[#allocation6 + $0xe8] ss:$16 sps:$4 sm:$0xff]  }
  0x8f   :  { %1150 = vmatpush2.bf16.msra.mxu0 %v2075_v8  ;;  %1201 = vmatpush2.bf16.msra.mxu1 %v2078_v9 }
  0x90   :  { %1151 = vmatprep.subr.bf16.mxu0 %v2083_v10  ;;  %1202 = vmatprep.subr.bf16.mxu1 %v2086_v11 }
  0x93   :  { %1152 = vmatpush2.bf16.msra.mxu0 %v2081_v12  ;;  %1203 = vmatpush2.bf16.msra.mxu1 %v2084_v13 }
  0x94   :  { %1223 = vmatprep.subr.bf16.mxu0 %v2089_v14  ;;  %1274 = vmatprep.subr.bf16.mxu1 %v2092_v15 }
 0x115   :  { %v219_v25 = vpop.f32.mrf.mxu0  ;;  %v270_v26 = vpop.f32.mrf.mxu1 }
 0x116   :  { %v220_v29 = vadd.f32 %v219_v25, %v121_v23  ;;  %v271_v30 = vadd.f32 %v270_v26, %v129_v24 }
 0x117   :  { %v221_v31 = vpop.f32.mrf.mxu0  ;;  %v272_v32 = vpop.f32.mrf.mxu1 }
 0x118   :  { %v222_v33 = vadd.f32 %v221_v31, %v125_v27  ;;  %v273_v34 = vadd.f32 %v272_v32, %v133_v28  ;;  %v299_v37 = vmul.f32 0.01, %v220_v29  ;;  %v301_v38 = vmul.f32 0.01, %v271_v30  ;;  %v2101_v32 = vld [vmem:[#allocation6 + $0xac] ss:$16 sps:$4 sm:$0xff]  }
 0x119   :  { %v223_v35 = vpop.f32.mrf.mxu0  ;;  %v274_v36 = vpop.f32.mrf.mxu1  ;;  %vm287_vm1 = vcmp.gt.f32.partialorder %v220_v29, 0.0  ;;  %vm289_vm2 = vcmp.gt.f32.partialorder %v271_v30, 0.0 }
 0x11a   :  { %v224_v39 = vadd.f32 %v223_v35, %v121_v23  ;;  %v275_v40 = vadd.f32 %v274_v36, %v129_v24  ;;  %v300_v45 = vmul.f32 0.01, %v222_v33  ;;  %v302_v46 = vmul.f32 0.01, %v273_v34  ;;  %v2099_v36 = vld [vmem:[#allocation6 + $0xa8] ss:$16 sps:$4 sm:$0xff]  }
 0x11b   :  { %v225_v41 = vpop.f32.mrf.mxu0  ;;  %v276_v42 = vpop.f32.mrf.mxu1  ;;  %v311_v51 = vsel %vm287_vm1, %v220_v29, %v299_v37  ;;  %v313_v52 = vsel %vm289_vm2, %v271_v30, %v301_v38  ;;  %vm288_vm5 = vcmp.gt.f32.partialorder %v222_v33, 0.0  ;;  %vm290_vm6 = vcmp.gt.f32.partialorder %v273_v34, 0.0  ;;  %v2096_v29 = vld [vmem:[#allocation6 + $0x2c8] ss:$16 sps:$4 sm:$0xff]   ;;  %v2107_v38 = vld [vmem:[#allocation6 + $0x8c] ss:$16 sps:$4 sm:$0xff]  }
 0x11c   :  { %vm291_vm3 = vcmp.gt.f32.partialorder %v224_v39, 0.0  ;;  %v303_v43 = vmul.f32 0.01, %v224_v39  ;;  %vm293_vm4 = vcmp.gt.f32.partialorder %v275_v40, 0.0  ;;  %v305_v44 = vmul.f32 0.01, %v275_v40 }
 0x11d   :  { %v226_v47 = vadd.f32 %v225_v41, %v125_v27  ;;  %v277_v48 = vadd.f32 %v276_v42, %v133_v28  ;;  %v229_v49 = vpop.f32.mrf.mxu0  ;;  %v280_v50 = vpop.f32.mrf.mxu1  ;;  %v312_v63 = vsel %vm288_vm5, %v222_v33, %v300_v45  ;;  %v314_v0 = vsel %vm290_vm6, %v273_v34, %v302_v46  ;;  %v2104_v33 = vld [vmem:[#allocation6 + $0x2ac] ss:$16 sps:$4 sm:$0xff]   ;;  %v2102_v37 = vld [vmem:[#allocation6 + $0x2a8] ss:$16 sps:$4 sm:$0xff]  }
 0x11e   :  { %v315_v53 = vsel %vm291_vm3, %v224_v39, %v303_v43  ;;  %v317_v54 = vsel %vm293_vm4, %v275_v40, %v305_v44  ;;  %v230_v59 = vadd.f32 %v229_v49, %v121_v23  ;;  %v281_v60 = vadd.f32 %v280_v50, %v129_v24  ;;  %v2098_v23 = vld [vmem:[#allocation6 + $0x2cc] ss:$16 sps:$4 sm:$0xff]   ;;  %v2105_v40 = vld [vmem:[#allocation6 + $0x88] ss:$16 sps:$4 sm:$0xff]  }
 0x11f   :  { %vm292_vm7 = vcmp.gt.f32.partialorder %v226_v47, 0.0  ;;  %v304_v55 = vmul.f32 0.01, %v226_v47  ;;  %v231_v56 = vpop.f32.mrf.mxu0  ;;  %v282_v57 = vpop.f32.mrf.mxu1  ;;  %vm294_vm8 = vcmp.gt.f32.partialorder %v277_v48, 0.0  ;;  %v306_v58 = vmul.f32 0.01, %v277_v48 }
 0x120   :  { %v232_v61 = vadd.f32 %v231_v56, %v125_v27  ;;  %v283_v62 = vadd.f32 %v282_v57, %v133_v28  ;;  %v2439_v3 = vpack.c.bf16 %v315_v53, %v311_v51  ;;  %v2441_v4 = vpack.c.bf16 %v317_v54, %v313_v52  ;;  %v2093_v28 = vld [vmem:[#allocation6 + $0xc8] ss:$16 sps:$4 sm:$0xff]   ;;  %v2110_v39 = vld [vmem:[#allocation6 + $0x28c] ss:$16 sps:$4 sm:$0xff]  }
 0x121   :  { %v233_v1 = vpop.f32.mrf.mxu0  ;;  %v284_v2 = vpop.f32.mrf.mxu1  ;;  %v316_v5 = vsel %vm292_vm7, %v226_v47, %v304_v55  ;;  %v318_v6 = vsel %vm294_vm8, %v277_v48, %v306_v58  ;;  %v307_v12 = vmul.f32 0.01, %v230_v59  ;;  %v309_v13 = vmul.f32 0.01, %v281_v60  ;;  %v2108_v41 = vld [vmem:[#allocation6 + $0x288] ss:$16 sps:$4 sm:$0xff]  }
 0x122   :  { %vm296_vm9 = vcmp.gt.f32.partialorder %v232_v61, 0.0  ;;  %v308_v8 = vmul.f32 0.01, %v232_v61  ;;  %vm298_vm10 = vcmp.gt.f32.partialorder %v283_v62, 0.0  ;;  %v310_v9 = vmul.f32 0.01, %v283_v62 }
 0x123   :  { %v234_v10 = vpop.f32.mrf.mxu0  ;;  %v285_v11 = vpop.f32.mrf.mxu1  ;;  %v324_v14 = vpack.c.bf16 %v316_v5, %v312_v63  ;;  %v326_v15 = vpack.c.bf16 %v318_v6, %v314_v0  ;;  %vm295_vm11 = vcmp.gt.f32.partialorder %v230_v59, 0.0  ;;  %vm297_vm12 = vcmp.gt.f32.partialorder %v281_v60, 0.0  ;;  %v2113_v42 = vld [vmem:[#allocation6 + $0x6c] ss:$16 sps:$4 sm:$0xff]   ;;  %v2111_v44 = vld [vmem:[#allocation6 + $0x68] ss:$16 sps:$4 sm:$0xff]  }
 0x124   :  { %v320_v24 = vsel %vm296_vm9, %v232_v61, %v308_v8  ;;  %v322_v25 = vsel %vm298_vm10, %v283_v62, %v310_v9  ;;  %v319_v30 = vsel %vm295_vm11, %v230_v59, %v307_v12  ;;  %v321_v31 = vsel %vm297_vm12, %v281_v60, %v309_v13  ;;  %v2116_v43 = vld [vmem:[#allocation6 + $0x26c] ss:$16 sps:$4 sm:$0xff]   ;;  %v2114_v45 = vld [vmem:[#allocation6 + $0x268] ss:$16 sps:$4 sm:$0xff]  }
 0x125   :  { %1153 = vmatprep.mubr.bf16.mxu0 %v324_v14  ;;  %1204 = vmatprep.mubr.bf16.mxu1 %v326_v15  ;;  %v2444_v26 = vpack.c.bf16 %v320_v24, %v320_v24  ;;  %v2446_v27 = vpack.c.bf16 %v322_v25, %v322_v25  ;;  %v2454_v34 = vpack.c.bf16 %v319_v30, %v319_v30  ;;  %v2119_v46 = vld [vmem:[#allocation6 + $0x4c] ss:$16 sps:$4 sm:$0xff]   ;;  %v2117_v48 = vld [vmem:[#allocation6 + $0x48] ss:$16 sps:$4 sm:$0xff]  }
 0x126   :  { %1154 = vmatmul.mubr.bf16.vlgmr.msra.gmra.mxu0 %v2439_v3  ;;  %1205 = vmatmul.mubr.bf16.vlgmr.msra.gmra.mxu1 %v2441_v4  ;;  %v2456_v35 = vpack.c.bf16 %v321_v31, %v321_v31  ;;  %v2122_v47 = vld [vmem:[#allocation6 + $0x24c] ss:$16 sps:$4 sm:$0xff]   ;;  %v2120_v49 = vld [vmem:[#allocation6 + $0x248] ss:$16 sps:$4 sm:$0xff]  }
 0x127   :  { %1224 = vmatpush1.bf16.msra.mxu0 %v2087_v7  ;;  %1275 = vmatpush1.bf16.msra.mxu1 %v2090_v16  ;;  %v2125_v50 = vld [vmem:[#allocation6 + $0x2c] ss:$16 sps:$4 sm:$0xff]   ;;  %v2123_v52 = vld [vmem:[#allocation6 + $0x28] ss:$16 sps:$4 sm:$0xff]  }
 0x128   :  { %1225 = vmatprep.subr.bf16.mxu0 %v2095_v20  ;;  %1276 = vmatprep.subr.bf16.mxu1 %v2098_v23  ;;  %v2128_v51 = vld [vmem:[#allocation6 + $0x22c] ss:$16 sps:$4 sm:$0xff]   ;;  %v2126_v53 = vld [vmem:[#allocation6 + $0x228] ss:$16 sps:$4 sm:$0xff]  }
 0x129   :  { %1163 = vmatprep.mubr.bf16.mxu0 %v2444_v26  ;;  %1214 = vmatprep.mubr.bf16.mxu1 %v2446_v27  ;;  %v2131_v54 = vld [vmem:[#allocation6 + $0xc] ss:$16 sps:$4 sm:$0xff]   ;;  %v2129_v56 = vld [vmem:[#allocation6 + $0x8] ss:$16 sps:$4 sm:$0xff]  }
 0x12a   :  { %v2134_v55 = vld [vmem:[#allocation6 + $0x20c] ss:$16 sps:$4 sm:$0xff]   ;;  %v2132_v57 = vld [vmem:[#allocation6 + $0x208] ss:$16 sps:$4 sm:$0xff]  }
 0x12b   :  { %1226 = vmatpush1.bf16.msra.mxu0 %v2093_v28  ;;  %1277 = vmatpush1.bf16.msra.mxu1 %v2096_v29  ;;  %v2137_v58 = vld [vmem:[#allocation6 + $0x1ec] ss:$16 sps:$4 sm:$0xff]   ;;  %v2135_v60 = vld [vmem:[#allocation6 + $0x1e8] ss:$16 sps:$4 sm:$0xff]  }
 0x12c   :  { %1227 = vmatprep.subr.bf16.mxu0 %v2101_v32  ;;  %1278 = vmatprep.subr.bf16.mxu1 %v2104_v33  ;;  %v2140_v59 = vld [vmem:[#allocation6 + $0x3ec] ss:$16 sps:$4 sm:$0xff]   ;;  %v2138_v61 = vld [vmem:[#allocation6 + $0x3e8] ss:$16 sps:$4 sm:$0xff]  }
 0x12d   :  { %v2143_v62 = vld [vmem:[#allocation6 + $0x1cc] ss:$16 sps:$4 sm:$0xff]   ;;  %v2141_v0 = vld [vmem:[#allocation6 + $0x1c8] ss:$16 sps:$4 sm:$0xff]  }
 0x12e   :  { %1164 = vmatmul.mubr.bf16.gmra.mxu0 %v2454_v34  ;;  %1215 = vmatmul.mubr.bf16.gmra.mxu1 %v2456_v35  ;;  %v2146_v63 = vld [vmem:[#allocation6 + $0x3cc] ss:$16 sps:$4 sm:$0xff]   ;;  %v2144_v1 = vld [vmem:[#allocation6 + $0x3c8] ss:$16 sps:$4 sm:$0xff]  }
 0x12f   :  { %1228 = vmatpush1.bf16.msra.mxu0 %v2099_v36  ;;  %1279 = vmatpush1.bf16.msra.mxu1 %v2102_v37  ;;  %v2149_v2 = vld [vmem:[#allocation6 + $0x1ac] ss:$16 sps:$4 sm:$0xff]   ;;  %v2147_v6 = vld [vmem:[#allocation6 + $0x1a8] ss:$16 sps:$4 sm:$0xff]  }
 0x130   :  { %1255 = vmatprep.mubr.bf16.mxu0 %v324_v14  ;;  %1306 = vmatprep.mubr.bf16.mxu1 %v326_v15  ;;  %v2152_v5 = vld [vmem:[#allocation6 + $0x3ac] ss:$16 sps:$4 sm:$0xff]   ;;  %v2150_v7 = vld [vmem:[#allocation6 + $0x3a8] ss:$16 sps:$4 sm:$0xff]  }
 0x131   :  { %1229 = vmatprep.subr.bf16.mxu0 %v2107_v38  ;;  %1280 = vmatprep.subr.bf16.mxu1 %v2110_v39  ;;  %v2155_v8 = vld [vmem:[#allocation6 + $0x18c] ss:$16 sps:$4 sm:$0xff]   ;;  %v2153_v10 = vld [vmem:[#allocation6 + $0x188] ss:$16 sps:$4 sm:$0xff]  }
 0x132   :  { %v2158_v9 = vld [vmem:[#allocation6 + $0x38c] ss:$16 sps:$4 sm:$0xff]   ;;  %v2156_v11 = vld [vmem:[#allocation6 + $0x388] ss:$16 sps:$4 sm:$0xff]  }
 0x133   :  { %1230 = vmatpush1.bf16.msra.mxu0 %v2105_v40  ;;  %1281 = vmatpush1.bf16.msra.mxu1 %v2108_v41  ;;  %v2161_v12 = vld [vmem:[#allocation6 + $0x16c] ss:$16 sps:$4 sm:$0xff]   ;;  %v2159_v14 = vld [vmem:[#allocation6 + $0x168] ss:$16 sps:$4 sm:$0xff]  }
 0x134   :  { %1231 = vmatprep.subr.bf16.mxu0 %v2113_v42  ;;  %1282 = vmatprep.subr.bf16.mxu1 %v2116_v43  ;;  %v2164_v13 = vld [vmem:[#allocation6 + $0x36c] ss:$16 sps:$4 sm:$0xff]   ;;  %v2162_v15 = vld [vmem:[#allocation6 + $0x368] ss:$16 sps:$4 sm:$0xff]  }
 0x135   :  { %v2167_v16 = vld [vmem:[#allocation6 + $0x14c] ss:$16 sps:$4 sm:$0xff]   ;;  %v2165_v23 = vld [vmem:[#allocation6 + $0x148] ss:$16 sps:$4 sm:$0xff]  }
 0x136   :  { %v2170_v20 = vld [vmem:[#allocation6 + $0x34c] ss:$16 sps:$4 sm:$0xff]   ;;  %v2168_v24 = vld [vmem:[#allocation6 + $0x348] ss:$16 sps:$4 sm:$0xff]  }
 0x137   :  { %1232 = vmatpush1.bf16.msra.mxu0 %v2111_v44  ;;  %1283 = vmatpush1.bf16.msra.mxu1 %v2114_v45  ;;  %v2173_v25 = vld [vmem:[#allocation6 + $0x12c] ss:$16 sps:$4 sm:$0xff]   ;;  %v2171_v29 = vld [vmem:[#allocation6 + $0x128] ss:$16 sps:$4 sm:$0xff]  }
 0x138   :  { %1233 = vmatprep.subr.bf16.mxu0 %v2119_v46  ;;  %1284 = vmatprep.subr.bf16.mxu1 %v2122_v47  ;;  %v2176_v28 = vld [vmem:[#allocation6 + $0x32c] ss:$16 sps:$4 sm:$0xff]   ;;  %v2174_v30 = vld [vmem:[#allocation6 + $0x328] ss:$16 sps:$4 sm:$0xff]  }
 0x139   :  { %v2179_v31 = vld [vmem:[#allocation6 + $0x10c] ss:$16 sps:$4 sm:$0xff]   ;;  %v2177_v33 = vld [vmem:[#allocation6 + $0x108] ss:$16 sps:$4 sm:$0xff]  }
 0x13a   :  { %v2182_v32 = vld [vmem:[#allocation6 + $0x30c] ss:$16 sps:$4 sm:$0xff]   ;;  %v2180_v36 = vld [vmem:[#allocation6 + $0x308] ss:$16 sps:$4 sm:$0xff]  }
 0x13b   :  { %1234 = vmatpush1.bf16.msra.mxu0 %v2117_v48  ;;  %1285 = vmatpush1.bf16.msra.mxu1 %v2120_v49  ;;  %v2183_v37 = vld [vmem:[#allocation9 + $0x78] sm:$0xff]   ;;  %v2185_v39 = vld [vmem:[#allocation9 + $0x70] sm:$0xff]   ;;  %v2187_v41 = vld [vmem:[#allocation9 + $0x68] sm:$0xff]  }
 0x13c   :  { %1235 = vmatprep.subr.bf16.mxu0 %v2125_v50  ;;  %1286 = vmatprep.subr.bf16.mxu1 %v2128_v51  ;;  %v2184_v38 = vld [vmem:[#allocation9 + $0x38] sm:$0xff]   ;;  %v2186_v40 = vld [vmem:[#allocation9 + $0x30] sm:$0xff]   ;;  %v2188_v42 = vld [vmem:[#allocation9 + $0x28] sm:$0xff]  }
 0x13d   :  { %v2189_v43 = vld [vmem:[#allocation9 + $0x60] sm:$0xff]   ;;  %v2194_v44 = vld [vmem:[#allocation9 + $0x10] sm:$0xff]   ;;  %v2199_v45 = vld [vmem:[#allocation9 + $0xf8] sm:$0xff]  }
 0x13e   :  { %v2200_v46 = vld [vmem:[#allocation9 + $0xb8] sm:$0xff]   ;;  %v2195_v47 = vld [vmem:[#allocation9 + $0x48] sm:$0xff]   ;;  %v2198_v48 = vld [vmem:[#allocation9] sm:$0xff]  }
 0x13f   :  { %1236 = vmatpush1.bf16.msra.mxu0 %v2123_v52  ;;  %1287 = vmatpush1.bf16.msra.mxu1 %v2126_v53  ;;  %v2201_v49 = vld [vmem:[#allocation9 + $0xf0] sm:$0xff]   ;;  %v2203_v51 = vld [vmem:[#allocation9 + $0xe8] sm:$0xff]   ;;  %v2205_v53 = vld [vmem:[#allocation9 + $0xe0] sm:$0xff]  }
 0x140   :  { %1237 = vmatprep.subr.bf16.mxu0 %v2131_v54  ;;  %1288 = vmatprep.subr.bf16.mxu1 %v2134_v55  ;;  %v2202_v50 = vld [vmem:[#allocation9 + $0xb0] sm:$0xff]   ;;  %v2204_v52 = vld [vmem:[#allocation9 + $0xa8] sm:$0xff]   ;;  %v2206_v54 = vld [vmem:[#allocation9 + $0xa0] sm:$0xff]  }
 0x141   :  { %v2207_v55 = vld [vmem:[#allocation9 + $0xd8] sm:$0xff]  }
 0x143   :  { %1238 = vmatpush1.bf16.msra.mxu0 %v2129_v56  ;;  %1289 = vmatpush1.bf16.msra.mxu1 %v2132_v57  ;;  %v2208_v56 = vld [vmem:[#allocation9 + $0x98] sm:$0xff]   ;;  %v2209_v57 = vld [vmem:[#allocation9 + $0xd0] sm:$0xff]  }
 0x144   :  { %1239 = vmatprep.subr.bf16.mxu0 %v2137_v58  ;;  %1290 = vmatprep.subr.bf16.mxu1 %v2140_v59  ;;  %v2210_v58 = vld [vmem:[#allocation9 + $0x90] sm:$0xff]   ;;  %v2211_v59 = vld [vmem:[#allocation9 + $0xc8] sm:$0xff]  }
 0x147   :  { %1240 = vmatpush2.bf16.msra.mxu0 %v2135_v60  ;;  %1291 = vmatpush2.bf16.msra.mxu1 %v2138_v61  ;;  %v2212_v60 = vld [vmem:[#allocation9 + $0x88] sm:$0xff]   ;;  %v2213_v61 = vld [vmem:[#allocation9 + $0xc0] sm:$0xff]  }
 0x148   :  { %1241 = vmatprep.subr.bf16.mxu0 %v2143_v62  ;;  %1292 = vmatprep.subr.bf16.mxu1 %v2146_v63  ;;  %v2214_v62 = vld [vmem:[#allocation9 + $0x80] sm:$0xff]   ;;  %v459_v63 = vld [vmem:[#allocation7] sm:$0xf] }
 0x14b   :  { %1242 = vmatpush2.bf16.msra.mxu0 %v2141_v0  ;;  %1293 = vmatpush2.bf16.msra.mxu1 %v2144_v1  ;;  %v464_v0 = vrot.slane %v459_v63, %v120_v18  ;;  %v468_v1 = vrot.slane %v459_v63, %v124_v21 }
 0x14c   :  { %1243 = vmatprep.subr.bf16.mxu0 %v2149_v2  ;;  %1294 = vmatprep.subr.bf16.mxu1 %v2152_v5 }
 0x14f   :  { %1244 = vmatpush2.bf16.msra.mxu0 %v2147_v6  ;;  %1295 = vmatpush2.bf16.msra.mxu1 %v2150_v7 }
 0x150   :  { %1245 = vmatprep.subr.bf16.mxu0 %v2155_v8  ;;  %1296 = vmatprep.subr.bf16.mxu1 %v2158_v9 }
 0x153   :  { %1246 = vmatpush2.bf16.msra.mxu0 %v2153_v10  ;;  %1297 = vmatpush2.bf16.msra.mxu1 %v2156_v11 }
 0x154   :  { %1247 = vmatprep.subr.bf16.mxu0 %v2161_v12  ;;  %1298 = vmatprep.subr.bf16.mxu1 %v2164_v13 }
 0x157   :  { %1248 = vmatpush2.bf16.msra.mxu0 %v2159_v14  ;;  %1299 = vmatpush2.bf16.msra.mxu1 %v2162_v15 }
 0x158   :  { %1249 = vmatprep.subr.bf16.mxu0 %v2167_v16  ;;  %1300 = vmatprep.subr.bf16.mxu1 %v2170_v20 }
 0x15b   :  { %1250 = vmatpush2.bf16.msra.mxu0 %v2165_v23  ;;  %1301 = vmatpush2.bf16.msra.mxu1 %v2168_v24 }
 0x15c   :  { %1251 = vmatprep.subr.bf16.mxu0 %v2173_v25  ;;  %1302 = vmatprep.subr.bf16.mxu1 %v2176_v28 }
 0x15f   :  { %1252 = vmatpush2.bf16.msra.mxu0 %v2171_v29  ;;  %1303 = vmatpush2.bf16.msra.mxu1 %v2174_v30 }
 0x160   :  { %1253 = vmatprep.subr.bf16.mxu0 %v2179_v31  ;;  %1304 = vmatprep.subr.bf16.mxu1 %v2182_v32 }
 0x163   :  { %1254 = vmatpush2.bf16.msra.mxu0 %v2177_v33  ;;  %1305 = vmatpush2.bf16.msra.mxu1 %v2180_v36 }
 0x164   :  { %1912 = vmatprep.subr.bf16.mxu0 %v2183_v37  ;;  %1940 = vmatprep.subr.bf16.mxu1 %v2199_v45 }
 0x166   :  { %1256 = vmatmul.mubr.bf16.vlgmr.msra.gmra.mxu0 %v2439_v3  ;;  %1307 = vmatmul.mubr.bf16.vlgmr.msra.gmra.mxu1 %v2441_v4  ;;  %v2190_v3 = vld [vmem:[#allocation9 + $0x20] sm:$0xff]   ;;  %v2191_v4 = vld [vmem:[#allocation9 + $0x58] sm:$0xff]  }
 0x167   :  { %1265 = vmatprep.mubr.bf16.mxu0 %v2444_v26  ;;  %1316 = vmatprep.mubr.bf16.mxu1 %v2446_v27  ;;  %v2192_v26 = vld [vmem:[#allocation9 + $0x18] sm:$0xff]   ;;  %v2193_v27 = vld [vmem:[#allocation9 + $0x50] sm:$0xff]  }
 0x168   :  { %1913 = vmatpush3.bf16.msra.mxu0 %v2184_v38  ;;  %1941 = vmatpush3.bf16.msra.mxu1 %v2200_v46 }
 0x169   :  { %1914 = vmatprep.subr.bf16.mxu0 %v2185_v39  ;;  %1942 = vmatprep.subr.bf16.mxu1 %v2201_v49  ;;  %v472_v49 = vrot.slane %v459_v63, %v128_v19 }
 0x16c   :  { %1915 = vmatpush3.bf16.msra.mxu0 %v2186_v40  ;;  %1943 = vmatpush3.bf16.msra.mxu1 %v2202_v50  ;;  %v476_v50 = vrot.slane %v459_v63, %v132_v22 }
 0x16d   :  { %1916 = vmatprep.subr.bf16.mxu0 %v2187_v41  ;;  %1944 = vmatprep.subr.bf16.mxu1 %v2203_v51 }
 0x16e   :  { %1266 = vmatmul.mubr.bf16.gmra.mxu0 %v2454_v34  ;;  %1317 = vmatmul.mubr.bf16.gmra.mxu1 %v2456_v35  ;;  %v2196_v34 = vld [vmem:[#allocation9 + $0x8] sm:$0xff]   ;;  %v2197_v35 = vld [vmem:[#allocation9 + $0x40] sm:$0xff]  }
 0x170   :  { %1917 = vmatpush3.bf16.msra.mxu0 %v2188_v42  ;;  %1945 = vmatpush3.bf16.msra.mxu1 %v2204_v52 }
 0x171   :  { %1918 = vmatprep.subr.bf16.mxu0 %v2189_v43  ;;  %1946 = vmatprep.subr.bf16.mxu1 %v2205_v53 }
 0x174   :  { %1919 = vmatpush3.bf16.msra.mxu0 %v2190_v3  ;;  %1947 = vmatpush3.bf16.msra.mxu1 %v2206_v54 }
 0x175   :  { %1920 = vmatprep.subr.bf16.mxu0 %v2191_v4  ;;  %1948 = vmatprep.subr.bf16.mxu1 %v2207_v55 }
 0x178   :  { %1921 = vmatpush3.bf16.msra.mxu0 %v2192_v26  ;;  %1949 = vmatpush3.bf16.msra.mxu1 %v2208_v56 }
 0x179   :  { %1922 = vmatprep.subr.bf16.mxu0 %v2193_v27  ;;  %1950 = vmatprep.subr.bf16.mxu1 %v2209_v57 }
 0x17c   :  { %1923 = vmatpush3.bf16.msra.mxu0 %v2194_v44  ;;  %1951 = vmatpush3.bf16.msra.mxu1 %v2210_v58 }
 0x17d   :  { %1924 = vmatprep.subr.bf16.mxu0 %v2195_v47  ;;  %1952 = vmatprep.subr.bf16.mxu1 %v2211_v59 }
 0x180   :  { %1925 = vmatpush3.bf16.msra.mxu0 %v2196_v34  ;;  %1953 = vmatpush3.bf16.msra.mxu1 %v2212_v60 }
 0x181   :  { %1926 = vmatprep.subr.bf16.mxu0 %v2197_v35  ;;  %1954 = vmatprep.subr.bf16.mxu1 %v2213_v61 }
 0x184   :  { %1927 = vmatpush3.bf16.msra.mxu0 %v2198_v48  ;;  %1955 = vmatpush3.bf16.msra.mxu1 %v2214_v62 }
 0x1e6   :  { %v1155_v2 = vpop.f32.mrf.mxu0  ;;  %v1206_v5 = vpop.f32.mrf.mxu1 }
 0x1e7   :  { %v1156_v6 = vadd.f32 %v1155_v2, %v464_v0 }
 0x1e8   :  { %v1157_v7 = vpop.f32.mrf.mxu0  ;;  %v1208_v8 = vpop.f32.mrf.mxu1 }
 0x1e9   :  { %v1158_v9 = vadd.f32 %v1157_v7, %v468_v1  ;;  %v1207_v13 = vadd.f32 %v1206_v5, %v1156_v6 }
 0x1ea   :  { %v1159_v10 = vpop.f32.mrf.mxu0  ;;  %v1210_v11 = vpop.f32.mrf.mxu1 }
 0x1eb   :  { %v1160_v12 = vadd.f32 %v1159_v10, %v464_v0  ;;  %v1209_v14 = vadd.f32 %v1208_v8, %v1158_v9  ;;  %v1337_v21 = vmul.f32 0.01, %v1207_v13  ;;  %vm1325_vm14 = vcmp.gt.f32.partialorder %v1207_v13, 0.0 }
 0x1ec   :  { %v1161_v15 = vpop.f32.mrf.mxu0  ;;  %v1212_v16 = vpop.f32.mrf.mxu1 }
 0x1ed   :  { %v1211_v20 = vadd.f32 %v1210_v11, %v1160_v12  ;;  %v1162_v23 = vadd.f32 %v1161_v15, %v468_v1  ;;  %v1338_v29 = vmul.f32 0.01, %v1209_v14  ;;  %vm1326_vm15 = vcmp.gt.f32.partialorder %v1209_v14, 0.0 }
 0x1ee   :  { %v1165_v24 = vpop.f32.mrf.mxu0  ;;  %v1216_v18 = vpop.f32.mrf.mxu1  ;;  %v1349_v42 = vsel %vm1325_vm14, %v1207_v13, %v1337_v21 }
 0x1ef   :  { %v1341_v25 = vmul.f32 0.01, %v1211_v20  ;;  %v1166_v28 = vadd.f32 %v1165_v24, %v464_v0  ;;  %vm1329_vm13 = vcmp.gt.f32.partialorder %v1211_v20, 0.0  ;;  %v1213_v30 = vadd.f32 %v1212_v16, %v1162_v23 }
 0x1f0   :  { %v1167_v31 = vpop.f32.mrf.mxu0  ;;  %v1218_v32 = vpop.f32.mrf.mxu1  ;;  %v1350_v43 = vsel %vm1326_vm15, %v1209_v14, %v1338_v29 }
 0x1f1   :  { %v1168_v33 = vadd.f32 %v1167_v31, %v468_v1  ;;  %v1217_v36 = vadd.f32 %v1216_v18, %v1166_v28  ;;  %vm1330_vm0 = vcmp.gt.f32.partialorder %v1213_v30, 0.0  ;;  %v1342_v37 = vmul.f32 0.01, %v1213_v30 }
 0x1f2   :  { %v1169_v38 = vpop.f32.mrf.mxu0  ;;  %v1220_v39 = vpop.f32.mrf.mxu1  ;;  %v1353_v40 = vsel %vm1329_vm13, %v1211_v20, %v1341_v25 }
 0x1f3   :  { %v1219_v41 = vadd.f32 %v1218_v32, %v1168_v33  ;;  %v1354_v3 = vsel %vm1330_vm0, %v1213_v30, %v1342_v37  ;;  %v1345_v44 = vmul.f32 0.01, %v1217_v36  ;;  %v1361_v46 = vpack.c.bf16 %v1353_v40, %v1349_v42 }
 0x1f4   :  { %v1170_v4 = vpop.f32.mrf.mxu0  ;;  %v1221_v26 = vpop.f32.mrf.mxu1  ;;  %v1362_v27 = vpack.c.bf16 %v1354_v3, %v1350_v43  ;;  %vm1333_vm2 = vcmp.gt.f32.partialorder %v1217_v36, 0.0 }
 0x1f5   :  { %vm1334_vm1 = vcmp.gt.f32.partialorder %v1219_v41, 0.0  ;;  %v1346_v45 = vmul.f32 0.01, %v1219_v41  ;;  %v1357_v35 = vsel %vm1333_vm2, %v1217_v36, %v1345_v44  ;;  %v1879_v26 = vld [vmem:[#allocation10] ss:$0 sm:$0xff] }
 0x1f6   :  { %1664 = vmatprep.mubr.bf16.mxu0 %v1362_v27  ;;  %v1365_v48 = vpack.c.bf16 %v1357_v35, %v1357_v35 }
 0x1f7   :  { %v1358_v47 = vsel %vm1334_vm1, %v1219_v41, %v1346_v45  ;;  %1665 = vmatmul.mubr.bf16.vlgmr.msra.gmra.mxu0 %v1361_v46 }
 0x1f8   :  { %v1366_v34 = vpack.c.bf16 %v1358_v47, %v1358_v47 }
 0x1fa   :  { %1672 = vmatprep.mubr.bf16.mxu0 %v1366_v34 }
 0x1ff   :  { %1673 = vmatmul.mubr.bf16.gmra.mxu0 %v1365_v48 }
 0x226   :  { %v1257_v51 = vpop.f32.mrf.mxu0  ;;  %v1308_v52 = vpop.f32.mrf.mxu1 }
 0x227   :  { %v1258_v55 = vadd.f32 %v1257_v51, %v472_v49 }
 0x228   :  { %v1259_v53 = vpop.f32.mrf.mxu0  ;;  %v1310_v54 = vpop.f32.mrf.mxu1 }
 0x229   :  { %v1260_v56 = vadd.f32 %v1259_v53, %v476_v50  ;;  %v1309_v0 = vadd.f32 %v1308_v52, %v1258_v55 }
 0x22a   :  { %v1261_v57 = vpop.f32.mrf.mxu0  ;;  %v1312_v58 = vpop.f32.mrf.mxu1 }
 0x22b   :  { %v1262_v59 = vadd.f32 %v1261_v57, %v472_v49  ;;  %v1311_v60 = vadd.f32 %v1310_v54, %v1260_v56  ;;  %v1339_v9 = vmul.f32 0.01, %v1309_v0  ;;  %vm1327_vm5 = vcmp.gt.f32.partialorder %v1309_v0, 0.0 }
 0x22c   :  { %v1263_v61 = vpop.f32.mrf.mxu0  ;;  %v1314_v62 = vpop.f32.mrf.mxu1 }
 0x22d   :  { %v1313_v1 = vadd.f32 %v1312_v58, %v1262_v59  ;;  %v1264_v2 = vadd.f32 %v1263_v61, %v476_v50  ;;  %v1340_v22 = vmul.f32 0.01, %v1311_v60  ;;  %vm1328_vm4 = vcmp.gt.f32.partialorder %v1311_v60, 0.0 }
 0x22e   :  { %v1267_v5 = vpop.f32.mrf.mxu0  ;;  %v1318_v19 = vpop.f32.mrf.mxu1  ;;  %v1351_v25 = vsel %vm1327_vm5, %v1309_v0, %v1339_v9 }
 0x22f   :  { %v1343_v6 = vmul.f32 0.01, %v1313_v1  ;;  %v1268_v17 = vadd.f32 %v1267_v5, %v472_v49  ;;  %vm1331_vm3 = vcmp.gt.f32.partialorder %v1313_v1, 0.0  ;;  %v1315_v63 = vadd.f32 %v1314_v62, %v1264_v2 }
 0x230   :  { %v1269_v7 = vpop.f32.mrf.mxu0  ;;  %v1320_v8 = vpop.f32.mrf.mxu1  ;;  %v1352_v24 = vsel %vm1328_vm4, %v1311_v60, %v1340_v22 }
 0x231   :  { %v1270_v10 = vadd.f32 %v1269_v7, %v476_v50  ;;  %vm1332_vm6 = vcmp.gt.f32.partialorder %v1315_v63, 0.0  ;;  %v1344_v11 = vmul.f32 0.01, %v1315_v63  ;;  %v1355_v14 = vsel %vm1331_vm3, %v1313_v1, %v1343_v6 }
 0x232   :  { %v1271_v12 = vpop.f32.mrf.mxu0  ;;  %v1322_v13 = vpop.f32.mrf.mxu1  ;;  %v1319_v15 = vadd.f32 %v1318_v19, %v1268_v17  ;;  %v1363_v29 = vpack.c.bf16 %v1355_v14, %v1351_v25 }
 0x233   :  { %v1321_v16 = vadd.f32 %v1320_v8, %v1270_v10  ;;  %v1356_v18 = vsel %vm1332_vm6, %v1315_v63, %v1344_v11 }
 0x234   :  { %v1272_v20 = vpop.f32.mrf.mxu0  ;;  %v1323_v23 = vpop.f32.mrf.mxu1  ;;  %v1364_v21 = vpack.c.bf16 %v1356_v18, %v1352_v24  ;;  %v1347_v30 = vmul.f32 0.01, %v1319_v15  ;;  %vm1335_vm8 = vcmp.gt.f32.partialorder %v1319_v15, 0.0 }
 0x235   :  { %vm1336_vm7 = vcmp.gt.f32.partialorder %v1321_v16, 0.0  ;;  %v1348_v28 = vmul.f32 0.01, %v1321_v16 }
 0x236   :  { %1712 = vmatprep.mubr.bf16.mxu1 %v1364_v21  ;;  %v1359_v33 = vsel %vm1335_vm8, %v1319_v15, %v1347_v30 }
 0x237   :  { %v1360_v31 = vsel %vm1336_vm7, %v1321_v16, %v1348_v28  ;;  %1713 = vmatmul.mubr.bf16.vlgmr.msra.gmra.mxu1 %v1363_v29  ;;  %v1367_v36 = vpack.c.bf16 %v1359_v33, %v1359_v33 }
 0x238   :  { %v1368_v32 = vpack.c.bf16 %v1360_v31, %v1360_v31 }
 0x23a   :  { %1720 = vmatprep.mubr.bf16.mxu1 %v1368_v32 }
 0x23f   :  { %1721 = vmatmul.mubr.bf16.gmra.mxu1 %v1367_v36 }
 0x2b7   :  { %v1928_v37 = vpop.f32.mrf.mxu0 }
 0x2b9   :  { %v1929_v38 = vpop.f32.mrf.mxu0 }
 0x2ba   :  { %v1930_v4 = vadd.f32 %v1929_v38, %v1928_v37 }
 0x2bb   :  { %v1931_v39 = vpop.f32.mrf.mxu0 }
 0x2bc   :  { %v1667_v45 = vadd.f32 %v1930_v4, %v1879_v26 }
 0x2bd   :  { %v1932_v40 = vpop.f32.mrf.mxu0 }
 0x2be   :  { %v1933_v46 = vadd.f32 %v1932_v40, %v1931_v39 }
 0x2bf   :  { %v1934_v41 = vpop.f32.mrf.mxu0 }
 0x2c0   :  { %v1670_v49 = vadd.f32 %v1933_v46, %v1879_v26 }
 0x2c1   :  { %v1935_v42 = vpop.f32.mrf.mxu0 }
 0x2c2   :  { %v1936_v50 = vadd.f32 %v1935_v42, %v1934_v41 }
 0x2c3   :  { %v1937_v43 = vpop.f32.mrf.mxu0 }
 0x2c4   :  { %v1675_v55 = vadd.f32 %v1936_v50, %v1879_v26 }
 0x2c5   :  { %v1938_v3 = vpop.f32.mrf.mxu0 }
 0x2f7   :  { %v1956_v27 = vpop.f32.mrf.mxu1 }
 0x2f9   :  { %v1957_v44 = vpop.f32.mrf.mxu1 }
 0x2fa   :  { %v1958_v47 = vadd.f32 %v1957_v44, %v1956_v27 }
 0x2fb   :  { %v1959_v34 = vpop.f32.mrf.mxu1 }
 0x2fc   :  { %v1715_v35 = vadd.f32 %v1958_v47, %v1667_v45 }
 0x2fd   :  { %v1960_v48 = vpop.f32.mrf.mxu1 }
 0x2fe   :  { %1728 = vst [vmem:[%s2490_s7] sm:$0xff] %v1715_v35  ;;  %v1961_v51 = vadd.f32 %v1960_v48, %v1959_v34 }
 0x2ff   :  { %v1962_v52 = vpop.f32.mrf.mxu1 }
 0x300   :  { %v1718_v53 = vadd.f32 %v1961_v51, %v1670_v49 }
 0x301   :  { %v1963_v54 = vpop.f32.mrf.mxu1 }
 0x302   :  { %1729 = vst [vmem:[%s2490_s7 + $0x8] sm:$0xff] %v1718_v53  ;;  %v1964_v56 = vadd.f32 %v1963_v54, %v1962_v52 }
 0x303   :  { %v1965_v57 = vpop.f32.mrf.mxu1 }
 0x304   :  { %v1723_v58 = vadd.f32 %v1964_v56, %v1675_v55 }
 0x305   :  { %v1966_v59 = vpop.f32.mrf.mxu1 }
 0x306   :  { %1730 = vst [vmem:[%s2490_s7 + $0x10] sm:$0xff] %v1723_v58 }
 0x307   :  { %1735 = vsyncpa [#allocation3], 1 }
 0x308   :  { %1736 = vsyncpa [#allocation5], 1 }
 0x309   :  { %1737 = vsyncpa [#allocation8], 1 }
 0x30a   :  { %1738 = vsyncpa [#allocation11], 1 }

// kernel: _process_pose_sequences.3
= control target key start
LH: loop header
LB: loop body
LE: loop exit
PB: predicated region body
PF: predicated region fallthrough
CT: control target
= control target key end

     0   :  { %vm2248_vm0 = vcmask 1042432   ;;  %vm2241_vm1 = vcmask 834560   ;;  %s6963_s0 = inlined_call_operand.vmem [shape: f32[24,486], index: 0, kind: input, shape index: {}]   ;;  %s6964_s1 = inlined_call_operand.vmem [shape: f32[288,55], index: 1, kind: input, shape index: {}]   ;;  %s6965_s2 = inlined_call_operand.vmem [shape: f32[3,24,1], index: 2, kind: input, shape index: {}]   ;;  %s6966_s3 = inlined_call_operand.vmem [shape: f32[3,512], index: 3, kind: input, shape index: {}]   ;;  %s6967_s4 = inlined_call_operand.vmem [shape: bf16[486,1536], index: 4, kind: input, shape index: {}]   ;;  %s6968_s5 = inlined_call_operand.vmem [shape: bf16[55,512], index: 5, kind: input, shape index: {}]   ;;  %s6969_s6 = inlined_call_operand.hbm [shape: f32[3,24,512], index: 6, kind: output, shape index: {}]  }
   0x1   :  { %v4454_v0 = vld [vmem:[%s6967_s4 + $0x2a4] ss:$48 sps:$4 sm:$0xff]   ;;  %v4458_v2 = vld [vmem:[%s6967_s4 + $0x2a0] ss:$48 sps:$4 sm:$0xff]   ;;  %v28_v45 = vld [vmem:[%s6963_s0 + $0x18] sm:$0xff] }
   0x2   :  { %v4456_v1 = vld [vmem:[%s6967_s4 + $0x8a4] ss:$48 sps:$4 sm:$0xff]   ;;  %2285 = vmatprep.subr.bf16.mxu0 %v4454_v0  ;;  %v4459_v3 = vld [vmem:[%s6967_s4 + $0x8a0] ss:$48 sps:$4 sm:$0xff]   ;;  %v32_v46 = vld [vmem:[%s6963_s0 + $0x38] sm:$0xff] }
   0x3   :  { %2336 = vmatprep.subr.bf16.mxu1 %v4456_v1  ;;  %v4460_v4 = vld [vmem:[%s6967_s4 + $0x244] ss:$48 sps:$4 sm:$0xff]   ;;  %2286 = vmatpush1.bf16.msra.mxu0 %v4458_v2  ;;  %v4464_v6 = vld [vmem:[%s6967_s4 + $0x240] ss:$48 sps:$4 sm:$0xff]   ;;  %v5230_v49 = vpack.c.bf16 %v32_v46, %v28_v45  ;;  %v26_v52 = vld [vmem:[%s6963_s0 + $0x8] sm:$0xff] }
   0x4   :  { %2337 = vmatpush1.bf16.msra.mxu1 %v4459_v3  ;;  %v4462_v5 = vld [vmem:[%s6967_s4 + $0x844] ss:$48 sps:$4 sm:$0xff]   ;;  %2287 = vmatprep.subr.bf16.mxu0 %v4460_v4  ;;  %v4465_v7 = vld [vmem:[%s6967_s4 + $0x840] ss:$48 sps:$4 sm:$0xff]   ;;  %v30_v53 = vld [vmem:[%s6963_s0 + $0x28] sm:$0xff] }
   0x5   :  { %2338 = vmatprep.subr.bf16.mxu1 %v4462_v5  ;;  %v4466_v8 = vld [vmem:[%s6967_s4 + $0x1e4] ss:$48 sps:$4 sm:$0xff]   ;;  %v4470_v10 = vld [vmem:[%s6967_s4 + $0x1e0] ss:$48 sps:$4 sm:$0xff]   ;;  %4370 = vmatprep.mubr.msk.bf16.mxu1 %vm2241_vm1, %v5230_v49  ;;  %v5249_v55 = vpack.c.bf16 %v30_v53, %v26_v52  ;;  %v4582_v45 = vld [vmem:[%s6967_s4 + $0x6c8] ss:$48 sps:$4 sm:$0xff]  }
   0x6   :  { %v4468_v9 = vld [vmem:[%s6967_s4 + $0x7e4] ss:$48 sps:$4 sm:$0xff]   ;;  %v4471_v11 = vld [vmem:[%s6967_s4 + $0x7e0] ss:$48 sps:$4 sm:$0xff]   ;;  %v4587_v46 = vld [vmem:[%s6967_s4 + $0xc] ss:$48 sps:$4 sm:$0xff]  }
   0x7   :  { %2288 = vmatpush1.bf16.msra.mxu0 %v4464_v6  ;;  %v4472_v12 = vld [vmem:[%s6967_s4 + $0x184] ss:$48 sps:$4 sm:$0xff]   ;;  %v4476_v14 = vld [vmem:[%s6967_s4 + $0x180] ss:$48 sps:$4 sm:$0xff]   ;;  %2317 = vmatprep.mubr.bf16.mxu0 %v5249_v55  ;;  %v4596_v52 = vld [vmem:[%s6967_s4 + $0x60c] ss:$48 sps:$4 sm:$0xff]  }
   0x8   :  { %2339 = vmatpush1.bf16.msra.mxu1 %v4465_v7  ;;  %2289 = vmatprep.subr.bf16.mxu0 %v4466_v8  ;;  %v4474_v13 = vld [vmem:[%s6967_s4 + $0x784] ss:$48 sps:$4 sm:$0xff]   ;;  %v4477_v15 = vld [vmem:[%s6967_s4 + $0x780] ss:$48 sps:$4 sm:$0xff]   ;;  %v4547_v7 = vld [vmem:[%s6967_s4 + $0x2ac] ss:$48 sps:$4 sm:$0xff]  }
   0x9   :  { %2340 = vmatprep.subr.bf16.mxu1 %v4468_v9  ;;  %v4478_v16 = vld [vmem:[%s6967_s4 + $0x124] ss:$48 sps:$4 sm:$0xff]   ;;  %v4482_v18 = vld [vmem:[%s6967_s4 + $0x120] ss:$48 sps:$4 sm:$0xff]   ;;  %v4545_v8 = vld [vmem:[%s6967_s4 + $0x2a8] ss:$48 sps:$4 sm:$0xff]  }
   0xa   :  { %v4480_v17 = vld [vmem:[%s6967_s4 + $0x724] ss:$48 sps:$4 sm:$0xff]   ;;  %v4483_v19 = vld [vmem:[%s6967_s4 + $0x720] ss:$48 sps:$4 sm:$0xff]   ;;  %v406_v53 = vld [vmem:[%s6967_s4 + $0xb48] sm:$0x77] }
   0xb   :  { %2290 = vmatpush1.bf16.msra.mxu0 %v4470_v10  ;;  %v4484_v20 = vld [vmem:[%s6967_s4 + $0xc4] ss:$48 sps:$4 sm:$0xff]   ;;  %v4488_v22 = vld [vmem:[%s6967_s4 + $0xc0] ss:$48 sps:$4 sm:$0xff]  }
   0xc   :  { %2341 = vmatpush1.bf16.msra.mxu1 %v4471_v11  ;;  %2291 = vmatprep.subr.bf16.mxu0 %v4472_v12  ;;  %v4486_v21 = vld [vmem:[%s6967_s4 + $0x6c4] ss:$48 sps:$4 sm:$0xff]   ;;  %v4489_v23 = vld [vmem:[%s6967_s4 + $0x6c0] ss:$48 sps:$4 sm:$0xff]  }
   0xd   :  { %2342 = vmatprep.subr.bf16.mxu1 %v4474_v13  ;;  %v4490_v24 = vld [vmem:[%s6967_s4 + $0x64] ss:$48 sps:$4 sm:$0xff]   ;;  %v4494_v26 = vld [vmem:[%s6967_s4 + $0x60] ss:$48 sps:$4 sm:$0xff]   ;;  %v4551_v13 = vld [vmem:[%s6967_s4 + $0x24c] ss:$48 sps:$4 sm:$0xff]  }
   0xe   :  { %v4492_v25 = vld [vmem:[%s6967_s4 + $0x664] ss:$48 sps:$4 sm:$0xff]   ;;  %v4495_v27 = vld [vmem:[%s6967_s4 + $0x660] ss:$48 sps:$4 sm:$0xff]  }
   0xf   :  { %2292 = vmatpush1.bf16.msra.mxu0 %v4476_v14  ;;  %v4496_v28 = vld [vmem:[%s6967_s4 + $0x4] ss:$48 sps:$4 sm:$0xff]   ;;  %v4500_v31 = vld [vmem:[%s6967_s4] ss:$48 sps:$4 sm:$0xff]   ;;  %v4554_v14 = vld [vmem:[%s6967_s4 + $0x8ac] ss:$48 sps:$4 sm:$0xff]  }
  0x10   :  { %2343 = vmatpush1.bf16.msra.mxu1 %v4477_v15  ;;  %2293 = vmatprep.subr.bf16.mxu0 %v4478_v16  ;;  %v4498_v29 = vld [vmem:[%s6967_s4 + $0x604] ss:$48 sps:$4 sm:$0xff]   ;;  %v4501_v32 = vld [vmem:[%s6967_s4 + $0x600] ss:$48 sps:$4 sm:$0xff]   ;;  %v4549_v16 = vld [vmem:[%s6967_s4 + $0x248] ss:$48 sps:$4 sm:$0xff]  }
  0x11   :  { %2344 = vmatprep.subr.bf16.mxu1 %v4480_v17  ;;  %v405_v30 = vld [vmem:[%s6967_s4 + $0xb40] sm:$0x77]  ;;  %v27_v4 = vld [vmem:[%s6963_s0 + $0x10] sm:$0xff]  ;;  %v4552_v17 = vld [vmem:[%s6967_s4 + $0x8a8] ss:$48 sps:$4 sm:$0xff]  }
  0x12   :  { %v4502_v33 = vld [vmem:[%s6967_s4 + $0x5a4] ss:$48 sps:$4 sm:$0xff]   ;;  %v4358_v34 = vcombine.high %v405_v30, %v405_v30  ;;  %v4357_v35 = vcombine.low %v405_v30, %v405_v30  ;;  %v4505_v36 = vld [vmem:[%s6967_s4 + $0x5a0] ss:$48 sps:$4 sm:$0xff]   ;;  %v34_v30 = vld [vmem:[%s6963_s0 + $0x48] sm:$0xff] }
  0x13   :  { %2294 = vmatpush1.bf16.msra.mxu0 %v4482_v18  ;;  %v4507_v38 = vld [vmem:[%s6967_s4 + $0x544] ss:$48 sps:$4 sm:$0xff]   ;;  %v4511_v40 = vld [vmem:[%s6967_s4 + $0x540] ss:$48 sps:$4 sm:$0xff]   ;;  %v4557_v18 = vld [vmem:[%s6967_s4 + $0x1ec] ss:$48 sps:$4 sm:$0xff]  }
  0x14   :  { %2345 = vmatpush1.bf16.msra.mxu1 %v4483_v19  ;;  %2295 = vmatprep.subr.bf16.mxu0 %v4484_v20  ;;  %v2250_v37 = vsel %vm2248_vm0, %v4357_v35, 0  ;;  %v4509_v39 = vld [vmem:[%s6967_s4 + $0xae4] ss:$48 sps:$4 sm:$0xff]   ;;  %v4512_v41 = vld [vmem:[%s6967_s4 + $0xae0] ss:$48 sps:$4 sm:$0xff]  }
  0x15   :  { %2346 = vmatprep.subr.bf16.mxu1 %v4486_v21  ;;  %v4513_v42 = vld [vmem:[%s6967_s4 + $0x4e4] ss:$48 sps:$4 sm:$0xff]   ;;  %v4517_v44 = vld [vmem:[%s6967_s4 + $0x4e0] ss:$48 sps:$4 sm:$0xff]   ;;  %v4560_v19 = vld [vmem:[%s6967_s4 + $0x84c] ss:$48 sps:$4 sm:$0xff]  }
  0x16   :  { %v4515_v43 = vld [vmem:[%s6967_s4 + $0xa84] ss:$48 sps:$4 sm:$0xff]   ;;  %v4518_v47 = vld [vmem:[%s6967_s4 + $0xa80] ss:$48 sps:$4 sm:$0xff]   ;;  %v4555_v20 = vld [vmem:[%s6967_s4 + $0x1e8] ss:$48 sps:$4 sm:$0xff]  }
  0x17   :  { %2296 = vmatpush1.bf16.msra.mxu0 %v4488_v22  ;;  %v4519_v48 = vld [vmem:[%s6967_s4 + $0x484] ss:$48 sps:$4 sm:$0xff]   ;;  %v4523_v51 = vld [vmem:[%s6967_s4 + $0x480] ss:$48 sps:$4 sm:$0xff]   ;;  %v4558_v21 = vld [vmem:[%s6967_s4 + $0x848] ss:$48 sps:$4 sm:$0xff]  }
  0x18   :  { %2347 = vmatpush1.bf16.msra.mxu1 %v4489_v23  ;;  %2297 = vmatprep.subr.bf16.mxu0 %v4490_v24  ;;  %v4521_v50 = vld [vmem:[%s6967_s4 + $0xa24] ss:$48 sps:$4 sm:$0xff]   ;;  %v4524_v54 = vld [vmem:[%s6967_s4 + $0xa20] ss:$48 sps:$4 sm:$0xff]   ;;  %v4563_v22 = vld [vmem:[%s6967_s4 + $0x18c] ss:$48 sps:$4 sm:$0xff]  }
  0x19   :  { %2348 = vmatprep.subr.bf16.mxu1 %v4492_v25  ;;  %v4525_v56 = vld [vmem:[%s6967_s4 + $0x424] ss:$48 sps:$4 sm:$0xff]   ;;  %v4529_v58 = vld [vmem:[%s6967_s4 + $0x420] ss:$48 sps:$4 sm:$0xff]   ;;  %v4566_v23 = vld [vmem:[%s6967_s4 + $0x7ec] ss:$48 sps:$4 sm:$0xff]  }
  0x1a   :  { %v4527_v57 = vld [vmem:[%s6967_s4 + $0x9c4] ss:$48 sps:$4 sm:$0xff]   ;;  %v4530_v59 = vld [vmem:[%s6967_s4 + $0x9c0] ss:$48 sps:$4 sm:$0xff]   ;;  %v4561_v24 = vld [vmem:[%s6967_s4 + $0x188] ss:$48 sps:$4 sm:$0xff]  }
  0x1b   :  { %2298 = vmatpush1.bf16.msra.mxu0 %v4494_v26  ;;  %v4531_v60 = vld [vmem:[%s6967_s4 + $0x3c4] ss:$48 sps:$4 sm:$0xff]   ;;  %v4535_v62 = vld [vmem:[%s6967_s4 + $0x3c0] ss:$48 sps:$4 sm:$0xff]   ;;  %v4564_v25 = vld [vmem:[%s6967_s4 + $0x7e8] ss:$48 sps:$4 sm:$0xff]  }
  0x1c   :  { %2349 = vmatpush1.bf16.msra.mxu1 %v4495_v27  ;;  %2299 = vmatprep.subr.bf16.mxu0 %v4496_v28  ;;  %v4533_v61 = vld [vmem:[%s6967_s4 + $0x964] ss:$48 sps:$4 sm:$0xff]   ;;  %v4536_v63 = vld [vmem:[%s6967_s4 + $0x960] ss:$48 sps:$4 sm:$0xff]   ;;  %v4569_v26 = vld [vmem:[%s6967_s4 + $0x12c] ss:$48 sps:$4 sm:$0xff]  }
  0x1d   :  { %2350 = vmatprep.subr.bf16.mxu1 %v4498_v29  ;;  %v4537_v0 = vld [vmem:[%s6967_s4 + $0x364] ss:$48 sps:$4 sm:$0xff]   ;;  %v4541_v2 = vld [vmem:[%s6967_s4 + $0x360] ss:$48 sps:$4 sm:$0xff]   ;;  %v4572_v27 = vld [vmem:[%s6967_s4 + $0x78c] ss:$48 sps:$4 sm:$0xff]  }
  0x1e   :  { %v4539_v1 = vld [vmem:[%s6967_s4 + $0x904] ss:$48 sps:$4 sm:$0xff]   ;;  %v4542_v3 = vld [vmem:[%s6967_s4 + $0x900] ss:$48 sps:$4 sm:$0xff]   ;;  %v4567_v28 = vld [vmem:[%s6967_s4 + $0x128] ss:$48 sps:$4 sm:$0xff]  }
  0x1f   :  { %2300 = vmatpush1.bf16.msra.mxu0 %v4500_v31  ;;  %v31_v5 = vld [vmem:[%s6963_s0 + $0x30] sm:$0xff]  ;;  %v25_v11 = vld [vmem:[%s6963_s0] sm:$0xff]  ;;  %v4570_v29 = vld [vmem:[%s6967_s4 + $0x788] ss:$48 sps:$4 sm:$0xff]  }
  0x20   :  { %2351 = vmatpush1.bf16.msra.mxu1 %v4501_v32  ;;  %2301 = vmatprep.subr.bf16.mxu0 %v4502_v33  ;;  %v4543_v6 = vld [vmem:[%s6967_s4 + $0x304] ss:$48 sps:$4 sm:$0xff]   ;;  %v4548_v9 = vld [vmem:[%s6967_s4 + $0x300] ss:$48 sps:$4 sm:$0xff]   ;;  %v5306_v10 = vpack.c.bf16 %v31_v5, %v27_v4  ;;  %v36_v31 = vld [vmem:[%s6963_s0 + $0x58] sm:$0xff]  ;;  %v5372_v32 = vpack.c.bf16 %v34_v30, %v34_v30 }
  0x21   :  { %4369 = vmatprep.subr.msk.bf16.mxu1 %vm2248_vm0, %v4358_v34  ;;  %v29_v12 = vld [vmem:[%s6963_s0 + $0x20] sm:$0xff]  ;;  %v5374_v33 = vpack.c.bf16 %v36_v31, %v36_v31  ;;  %v35_v35 = vld [vmem:[%s6963_s0 + $0x50] sm:$0xff]  ;;  %v4608_v4 = vld [vmem:[%s6967_s4 + $0x488] ss:$48 sps:$4 sm:$0xff]  }
  0x22   :  { %v5321_v15 = vpack.c.bf16 %v29_v12, %v25_v11  ;;  %v33_v34 = vld [vmem:[%s6963_s0 + $0x40] sm:$0xff]  ;;  %v4611_v5 = vld [vmem:[%s6967_s4 + $0xa88] ss:$48 sps:$4 sm:$0xff]   ;;  %v4622_v11 = vld [vmem:[%s6967_s4 + $0x3cc] ss:$48 sps:$4 sm:$0xff]  }
  0x23   :  { %2302 = vmatpush2.bf16.msra.mxu0 %v4505_v36  ;;  %v4575_v36 = vld [vmem:[%s6967_s4 + $0xcc] ss:$48 sps:$4 sm:$0xff]   ;;  %v4644_v30 = vld [vmem:[%s6967_s4 + $0x250] ss:$48 sps:$4 sm:$0xff]  }
  0x24   :  { %2355 = vmatpush2.bf16.msra.mxu1 %v2250_v37  ;;  %2303 = vmatprep.subr.bf16.mxu0 %v4507_v38  ;;  %v4578_v37 = vld [vmem:[%s6967_s4 + $0x72c] ss:$48 sps:$4 sm:$0xff]   ;;  %v5388_v38 = vpack.c.bf16 %v33_v34, %v33_v34  ;;  %v4647_v31 = vld [vmem:[%s6967_s4 + $0x850] ss:$48 sps:$4 sm:$0xff]   ;;  %v4652_v34 = vld [vmem:[%s6967_s4 + $0x1f4] ss:$48 sps:$4 sm:$0xff]  }
  0x25   :  { %2356 = vmatprep.subr.bf16.mxu1 %v4509_v39  ;;  %v5390_v39 = vpack.c.bf16 %v35_v35, %v35_v35  ;;  %v4625_v12 = vld [vmem:[%s6967_s4 + $0x9cc] ss:$48 sps:$4 sm:$0xff]   ;;  %v4655_v35 = vld [vmem:[%s6967_s4 + $0x7f4] ss:$48 sps:$4 sm:$0xff]  }
  0x27   :  { %2304 = vmatpush2.bf16.msra.mxu0 %v4511_v40  ;;  %v4573_v40 = vld [vmem:[%s6967_s4 + $0xc8] ss:$48 sps:$4 sm:$0xff]  }
  0x28   :  { %2357 = vmatpush2.bf16.msra.mxu1 %v4512_v41  ;;  %2305 = vmatprep.subr.bf16.mxu0 %v4513_v42  ;;  %v4576_v41 = vld [vmem:[%s6967_s4 + $0x728] ss:$48 sps:$4 sm:$0xff]   ;;  %v4581_v42 = vld [vmem:[%s6967_s4 + $0x6c] ss:$48 sps:$4 sm:$0xff]  }
  0x29   :  { %2358 = vmatprep.subr.bf16.mxu1 %v4515_v43  ;;  %v4584_v43 = vld [vmem:[%s6967_s4 + $0x6cc] ss:$48 sps:$4 sm:$0xff]  }
  0x2b   :  { %2306 = vmatpush2.bf16.msra.mxu0 %v4517_v44  ;;  %v4579_v44 = vld [vmem:[%s6967_s4 + $0x68] ss:$48 sps:$4 sm:$0xff]  }
  0x2c   :  { %2359 = vmatpush2.bf16.msra.mxu1 %v4518_v47  ;;  %2307 = vmatprep.subr.bf16.mxu0 %v4519_v48  ;;  %v4590_v47 = vld [vmem:[%s6967_s4 + $0x66c] ss:$48 sps:$4 sm:$0xff]   ;;  %v4585_v48 = vld [vmem:[%s6967_s4 + $0x8] ss:$48 sps:$4 sm:$0xff]  }
  0x2d   :  { %2360 = vmatprep.subr.bf16.mxu1 %v4521_v50  ;;  %v4588_v50 = vld [vmem:[%s6967_s4 + $0x668] ss:$48 sps:$4 sm:$0xff]  }
  0x2f   :  { %2308 = vmatpush2.bf16.msra.mxu0 %v4523_v51  ;;  %v4593_v51 = vld [vmem:[%s6967_s4 + $0x5ac] ss:$48 sps:$4 sm:$0xff]  }
  0x30   :  { %2361 = vmatpush2.bf16.msra.mxu1 %v4524_v54  ;;  %2309 = vmatprep.subr.bf16.mxu0 %v4525_v56  ;;  %v4591_v54 = vld [vmem:[%s6967_s4 + $0x5a8] ss:$48 sps:$4 sm:$0xff]  }
  0x31   :  { %2362 = vmatprep.subr.bf16.mxu1 %v4527_v57  ;;  %v4594_v56 = vld [vmem:[%s6967_s4 + $0x608] ss:$48 sps:$4 sm:$0xff]   ;;  %v4599_v57 = vld [vmem:[%s6967_s4 + $0x54c] ss:$48 sps:$4 sm:$0xff]  }
  0x33   :  { %2310 = vmatpush2.bf16.msra.mxu0 %v4529_v58  ;;  %v4360_v58 = vcombine.high %v406_v53, %v406_v53 }
  0x34   :  { %2363 = vmatpush2.bf16.msra.mxu1 %v4530_v59  ;;  %2311 = vmatprep.subr.bf16.mxu0 %v4531_v60  ;;  %v4359_v59 = vcombine.low %v406_v53, %v406_v53  ;;  %v4597_v60 = vld [vmem:[%s6967_s4 + $0x548] ss:$48 sps:$4 sm:$0xff]   ;;  %v4676_v53 = vld [vmem:[%s6967_s4 + $0x74] ss:$48 sps:$4 sm:$0xff]  }
  0x35   :  { %2364 = vmatprep.subr.bf16.mxu1 %v4533_v61 }
  0x36   :  { %v2256_v61 = vsel %vm2248_vm0, %v4359_v59, 0  ;;  %v4685_v59 = vld [vmem:[%s6967_s4 + $0x614] ss:$48 sps:$4 sm:$0xff]  }
  0x37   :  { %2312 = vmatpush2.bf16.msra.mxu0 %v4535_v62  ;;  %v4604_v62 = vld [vmem:[%s6967_s4 + $0x4ec] ss:$48 sps:$4 sm:$0xff]  }
  0x38   :  { %2365 = vmatpush2.bf16.msra.mxu1 %v4536_v63  ;;  %2313 = vmatprep.subr.bf16.mxu0 %v4537_v0  ;;  %v4607_v63 = vld [vmem:[%s6967_s4 + $0xaec] ss:$48 sps:$4 sm:$0xff]   ;;  %v4602_v0 = vld [vmem:[%s6967_s4 + $0x4e8] ss:$48 sps:$4 sm:$0xff]  }
  0x39   :  { %2366 = vmatprep.subr.bf16.mxu1 %v4539_v1  ;;  %v4605_v1 = vld [vmem:[%s6967_s4 + $0xae8] ss:$48 sps:$4 sm:$0xff]  }
  0x3b   :  { %2314 = vmatpush2.bf16.msra.mxu0 %v4541_v2  ;;  %v4610_v2 = vld [vmem:[%s6967_s4 + $0x48c] ss:$48 sps:$4 sm:$0xff]  }
  0x3c   :  { %2367 = vmatpush2.bf16.msra.mxu1 %v4542_v3  ;;  %2315 = vmatprep.subr.bf16.mxu0 %v4543_v6  ;;  %v4613_v3 = vld [vmem:[%s6967_s4 + $0xa8c] ss:$48 sps:$4 sm:$0xff]  }
  0x3d   :  { %2387 = vmatprep.subr.bf16.mxu1 %v4547_v7  ;;  %v4616_v6 = vld [vmem:[%s6967_s4 + $0x42c] ss:$48 sps:$4 sm:$0xff]  }
  0x3e   :  { %v4619_v7 = vld [vmem:[%s6967_s4 + $0xa2c] ss:$48 sps:$4 sm:$0xff]  }
  0x3f   :  { %2369 = vmatmul.mubr.bf16.vlgmr.msra.gmra.mxu1 %v5306_v10  ;;  %2316 = vmatpush2.bf16.msra.mxu0 %v4548_v9  ;;  %v4617_v9 = vld [vmem:[%s6967_s4 + $0xa28] ss:$48 sps:$4 sm:$0xff]  }
  0x40   :  { %2388 = vmatpush1.bf16.msra.mxu1 %v4545_v8  ;;  %2438 = vmatprep.subr.bf16.mxu0 %v4554_v14  ;;  %v4614_v8 = vld [vmem:[%s6967_s4 + $0x428] ss:$48 sps:$4 sm:$0xff]  }
  0x41   :  { %2389 = vmatprep.subr.bf16.mxu1 %v4551_v13  ;;  %4371 = vmatprep.mubr.msk.bf16.mxu1 %vm2241_vm1, %v5374_v33  ;;  %v4620_v13 = vld [vmem:[%s6967_s4 + $0x3c8] ss:$48 sps:$4 sm:$0xff]  }
  0x42   :  { %2318 = vmatmul.mubr.bf16.vlgmr.msra.gmra.mxu0 %v5321_v15  ;;  %v4623_v14 = vld [vmem:[%s6967_s4 + $0x9c8] ss:$48 sps:$4 sm:$0xff]  }
  0x43   :  { %2439 = vmatpush1.bf16.msra.mxu0 %v4552_v17  ;;  %2327 = vmatprep.mubr.bf16.mxu0 %v5372_v32  ;;  %v4631_v17 = vld [vmem:[%s6967_s4 + $0x96c] ss:$48 sps:$4 sm:$0xff]  }
  0x44   :  { %2390 = vmatpush1.bf16.msra.mxu1 %v4549_v16  ;;  %2440 = vmatprep.subr.bf16.mxu0 %v4560_v19  ;;  %v4628_v16 = vld [vmem:[%s6967_s4 + $0x36c] ss:$48 sps:$4 sm:$0xff]   ;;  %v4629_v19 = vld [vmem:[%s6967_s4 + $0x968] ss:$48 sps:$4 sm:$0xff]  }
  0x45   :  { %2391 = vmatprep.subr.bf16.mxu1 %v4557_v18  ;;  %v4626_v18 = vld [vmem:[%s6967_s4 + $0x368] ss:$48 sps:$4 sm:$0xff]  }
  0x47   :  { %2441 = vmatpush1.bf16.msra.mxu0 %v4558_v21  ;;  %2379 = vmatmul.mubr.bf16.gmra.mxu1 %v5390_v39  ;;  %v4637_v21 = vld [vmem:[%s6967_s4 + $0x90c] ss:$48 sps:$4 sm:$0xff]  }
  0x48   :  { %2392 = vmatpush1.bf16.msra.mxu1 %v4555_v20  ;;  %2442 = vmatprep.subr.bf16.mxu0 %v4566_v23  ;;  %v4634_v20 = vld [vmem:[%s6967_s4 + $0x30c] ss:$48 sps:$4 sm:$0xff]   ;;  %v4635_v23 = vld [vmem:[%s6967_s4 + $0x908] ss:$48 sps:$4 sm:$0xff]  }
  0x49   :  { %2393 = vmatprep.subr.bf16.mxu1 %v4563_v22  ;;  %2419 = vmatprep.mubr.bf16.mxu1 %v5249_v55  ;;  %v4632_v22 = vld [vmem:[%s6967_s4 + $0x308] ss:$48 sps:$4 sm:$0xff]  }
  0x4a   :  { %2328 = vmatmul.mubr.bf16.gmra.mxu0 %v5388_v38 }
  0x4b   :  { %2443 = vmatpush1.bf16.msra.mxu0 %v4564_v25  ;;  %4373 = vmatprep.mubr.msk.bf16.mxu0 %vm2241_vm1, %v5230_v49  ;;  %v4643_v25 = vld [vmem:[%s6967_s4 + $0x8b4] ss:$48 sps:$4 sm:$0xff]  }
  0x4c   :  { %2394 = vmatpush1.bf16.msra.mxu1 %v4561_v24  ;;  %2444 = vmatprep.subr.bf16.mxu0 %v4572_v27  ;;  %v4640_v24 = vld [vmem:[%s6967_s4 + $0x2b4] ss:$48 sps:$4 sm:$0xff]   ;;  %v4641_v27 = vld [vmem:[%s6967_s4 + $0x8b0] ss:$48 sps:$4 sm:$0xff]  }
  0x4d   :  { %2395 = vmatprep.subr.bf16.mxu1 %v4569_v26  ;;  %v4638_v26 = vld [vmem:[%s6967_s4 + $0x2b0] ss:$48 sps:$4 sm:$0xff]  }
  0x4f   :  { %2445 = vmatpush1.bf16.msra.mxu0 %v4570_v29  ;;  %v4649_v29 = vld [vmem:[%s6967_s4 + $0x854] ss:$48 sps:$4 sm:$0xff]  }
  0x50   :  { %2396 = vmatpush1.bf16.msra.mxu1 %v4567_v28  ;;  %2446 = vmatprep.subr.bf16.mxu0 %v4578_v37  ;;  %v4646_v28 = vld [vmem:[%s6967_s4 + $0x254] ss:$48 sps:$4 sm:$0xff]   ;;  %v4653_v37 = vld [vmem:[%s6967_s4 + $0x7f0] ss:$48 sps:$4 sm:$0xff]  }
  0x51   :  { %2397 = vmatprep.subr.bf16.mxu1 %v4575_v36  ;;  %v4650_v36 = vld [vmem:[%s6967_s4 + $0x1f0] ss:$48 sps:$4 sm:$0xff]  }
  0x53   :  { %2447 = vmatpush1.bf16.msra.mxu0 %v4576_v41  ;;  %v4661_v41 = vld [vmem:[%s6967_s4 + $0x794] ss:$48 sps:$4 sm:$0xff]  }
  0x54   :  { %2398 = vmatpush1.bf16.msra.mxu1 %v4573_v40  ;;  %2448 = vmatprep.subr.bf16.mxu0 %v4584_v43  ;;  %v4658_v40 = vld [vmem:[%s6967_s4 + $0x194] ss:$48 sps:$4 sm:$0xff]   ;;  %v4659_v43 = vld [vmem:[%s6967_s4 + $0x790] ss:$48 sps:$4 sm:$0xff]  }
  0x55   :  { %2399 = vmatprep.subr.bf16.mxu1 %v4581_v42  ;;  %v4656_v42 = vld [vmem:[%s6967_s4 + $0x190] ss:$48 sps:$4 sm:$0xff]  }
  0x57   :  { %2449 = vmatpush1.bf16.msra.mxu0 %v4582_v45  ;;  %v4667_v45 = vld [vmem:[%s6967_s4 + $0x734] ss:$48 sps:$4 sm:$0xff]  }
  0x58   :  { %2400 = vmatpush1.bf16.msra.mxu1 %v4579_v44  ;;  %2450 = vmatprep.subr.bf16.mxu0 %v4590_v47  ;;  %v4664_v44 = vld [vmem:[%s6967_s4 + $0x134] ss:$48 sps:$4 sm:$0xff]   ;;  %v4665_v47 = vld [vmem:[%s6967_s4 + $0x730] ss:$48 sps:$4 sm:$0xff]  }
  0x59   :  { %2401 = vmatprep.subr.bf16.mxu1 %v4587_v46  ;;  %v4662_v46 = vld [vmem:[%s6967_s4 + $0x130] ss:$48 sps:$4 sm:$0xff]  }
  0x5b   :  { %2451 = vmatpush1.bf16.msra.mxu0 %v4588_v50  ;;  %v4673_v50 = vld [vmem:[%s6967_s4 + $0x6d4] ss:$48 sps:$4 sm:$0xff]  }
  0x5c   :  { %2402 = vmatpush1.bf16.msra.mxu1 %v4585_v48  ;;  %2452 = vmatprep.subr.bf16.mxu0 %v4596_v52  ;;  %v4670_v48 = vld [vmem:[%s6967_s4 + $0xd4] ss:$48 sps:$4 sm:$0xff]   ;;  %v4671_v52 = vld [vmem:[%s6967_s4 + $0x6d0] ss:$48 sps:$4 sm:$0xff]  }
  0x5d   :  { %2403 = vmatprep.subr.bf16.mxu1 %v4593_v51  ;;  %v4668_v51 = vld [vmem:[%s6967_s4 + $0xd0] ss:$48 sps:$4 sm:$0xff]  }
  0x5f   :  { %2453 = vmatpush1.bf16.msra.mxu0 %v4594_v56  ;;  %v4674_v56 = vld [vmem:[%s6967_s4 + $0x70] ss:$48 sps:$4 sm:$0xff]  }
  0x60   :  { %2404 = vmatpush2.bf16.msra.mxu1 %v4591_v54  ;;  %4372 = vmatprep.subr.msk.bf16.mxu0 %vm2248_vm0, %v4360_v58  ;;  %v4679_v54 = vld [vmem:[%s6967_s4 + $0x674] ss:$48 sps:$4 sm:$0xff]  }
  0x61   :  { %2405 = vmatprep.subr.bf16.mxu1 %v4599_v57  ;;  %v4677_v57 = vld [vmem:[%s6967_s4 + $0x670] ss:$48 sps:$4 sm:$0xff]   ;;  %v4682_v58 = vld [vmem:[%s6967_s4 + $0x14] ss:$48 sps:$4 sm:$0xff]  }
  0x63   :  { %2457 = vmatpush2.bf16.msra.mxu0 %v2256_v61  ;;  %v4680_v61 = vld [vmem:[%s6967_s4 + $0x10] ss:$48 sps:$4 sm:$0xff]  }
  0x64   :  { %2406 = vmatpush2.bf16.msra.mxu1 %v4597_v60  ;;  %2458 = vmatprep.subr.bf16.mxu0 %v4607_v63  ;;  %v407_v60 = vld [vmem:[%s6967_s4 + $0xb50] sm:$0x77] }
  0x65   :  { %2407 = vmatprep.subr.bf16.mxu1 %v4604_v62  ;;  %v4683_v62 = vld [vmem:[%s6967_s4 + $0x610] ss:$48 sps:$4 sm:$0xff]   ;;  %v4688_v63 = vld [vmem:[%s6967_s4 + $0x5b4] ss:$48 sps:$4 sm:$0xff]  }
  0x67   :  { %2459 = vmatpush2.bf16.msra.mxu0 %v4605_v1  ;;  %v4361_v1 = vcombine.low %v407_v60, %v407_v60 }
  0x68   :  { %2408 = vmatpush2.bf16.msra.mxu1 %v4602_v0  ;;  %2460 = vmatprep.subr.bf16.mxu0 %v4613_v3  ;;  %v4362_v0 = vcombine.high %v407_v60, %v407_v60  ;;  %v4693_v3 = vld [vmem:[%s6967_s4 + $0x554] ss:$48 sps:$4 sm:$0xff]   ;;  %v4765_v60 = vld [vmem:[%s6967_s4 + $0x7c] ss:$48 sps:$4 sm:$0xff]  }
  0x69   :  { %2409 = vmatprep.subr.bf16.mxu1 %v4610_v2  ;;  %v4686_v2 = vld [vmem:[%s6967_s4 + $0x5b0] ss:$48 sps:$4 sm:$0xff]  }
  0x6b   :  { %2461 = vmatpush2.bf16.msra.mxu0 %v4611_v5  ;;  %v4696_v5 = vld [vmem:[%s6967_s4 + $0xaf4] ss:$48 sps:$4 sm:$0xff]  }
  0x6c   :  { %2410 = vmatpush2.bf16.msra.mxu1 %v4608_v4  ;;  %2462 = vmatprep.subr.bf16.mxu0 %v4619_v7  ;;  %v2262_v4 = vsel %vm2248_vm0, %v4361_v1, 0  ;;  %v4694_v7 = vld [vmem:[%s6967_s4 + $0xaf0] ss:$48 sps:$4 sm:$0xff]   ;;  %v4774_v1 = vld [vmem:[%s6967_s4 + $0x67c] ss:$48 sps:$4 sm:$0xff]  }
  0x6d   :  { %2411 = vmatprep.subr.bf16.mxu1 %v4616_v6  ;;  %v4691_v6 = vld [vmem:[%s6967_s4 + $0x550] ss:$48 sps:$4 sm:$0xff]  }
  0x6f   :  { %2463 = vmatpush2.bf16.msra.mxu0 %v4617_v9  ;;  %v4702_v9 = vld [vmem:[%s6967_s4 + $0xa94] ss:$48 sps:$4 sm:$0xff]  }
  0x70   :  { %2412 = vmatpush2.bf16.msra.mxu1 %v4614_v8  ;;  %2464 = vmatprep.subr.bf16.mxu0 %v4625_v12  ;;  %v4699_v8 = vld [vmem:[%s6967_s4 + $0x4f4] ss:$48 sps:$4 sm:$0xff]   ;;  %v4700_v12 = vld [vmem:[%s6967_s4 + $0xa90] ss:$48 sps:$4 sm:$0xff]  }
  0x71   :  { %2413 = vmatprep.subr.bf16.mxu1 %v4622_v11  ;;  %v4697_v11 = vld [vmem:[%s6967_s4 + $0x4f0] ss:$48 sps:$4 sm:$0xff]  }
  0x73   :  { %2465 = vmatpush2.bf16.msra.mxu0 %v4623_v14  ;;  %v4708_v14 = vld [vmem:[%s6967_s4 + $0xa34] ss:$48 sps:$4 sm:$0xff]  }
  0x74   :  { %2414 = vmatpush2.bf16.msra.mxu1 %v4620_v13  ;;  %2466 = vmatprep.subr.bf16.mxu0 %v4631_v17  ;;  %v4705_v13 = vld [vmem:[%s6967_s4 + $0x494] ss:$48 sps:$4 sm:$0xff]   ;;  %v4706_v17 = vld [vmem:[%s6967_s4 + $0xa30] ss:$48 sps:$4 sm:$0xff]  }
  0x75   :  { %2415 = vmatprep.subr.bf16.mxu1 %v4628_v16  ;;  %v4703_v16 = vld [vmem:[%s6967_s4 + $0x490] ss:$48 sps:$4 sm:$0xff]  }
  0x77   :  { %2467 = vmatpush2.bf16.msra.mxu0 %v4629_v19  ;;  %v4714_v19 = vld [vmem:[%s6967_s4 + $0x9d4] ss:$48 sps:$4 sm:$0xff]  }
  0x78   :  { %2416 = vmatpush2.bf16.msra.mxu1 %v4626_v18  ;;  %2468 = vmatprep.subr.bf16.mxu0 %v4637_v21  ;;  %v4711_v18 = vld [vmem:[%s6967_s4 + $0x434] ss:$48 sps:$4 sm:$0xff]   ;;  %v4712_v21 = vld [vmem:[%s6967_s4 + $0x9d0] ss:$48 sps:$4 sm:$0xff]  }
  0x79   :  { %2417 = vmatprep.subr.bf16.mxu1 %v4634_v20  ;;  %v4709_v20 = vld [vmem:[%s6967_s4 + $0x430] ss:$48 sps:$4 sm:$0xff]  }
  0x7b   :  { %2469 = vmatpush2.bf16.msra.mxu0 %v4635_v23  ;;  %v4720_v23 = vld [vmem:[%s6967_s4 + $0x974] ss:$48 sps:$4 sm:$0xff]  }
  0x7c   :  { %2418 = vmatpush2.bf16.msra.mxu1 %v4632_v22  ;;  %2489 = vmatprep.subr.bf16.mxu0 %v4640_v24  ;;  %v4717_v22 = vld [vmem:[%s6967_s4 + $0x3d4] ss:$48 sps:$4 sm:$0xff]   ;;  %v4715_v24 = vld [vmem:[%s6967_s4 + $0x3d0] ss:$48 sps:$4 sm:$0xff]  }
  0x7d   :  { %2540 = vmatprep.subr.bf16.mxu1 %v4643_v25  ;;  %v4718_v25 = vld [vmem:[%s6967_s4 + $0x970] ss:$48 sps:$4 sm:$0xff]  }
  0x7e   :  { %2471 = vmatmul.mubr.bf16.vlgmr.msra.gmra.mxu0 %v5306_v10 }
  0x7f   :  { %2420 = vmatmul.mubr.bf16.vlgmr.msra.gmra.mxu1 %v5321_v15  ;;  %2490 = vmatpush1.bf16.msra.mxu0 %v4638_v26  ;;  %v4723_v26 = vld [vmem:[%s6967_s4 + $0x374] ss:$48 sps:$4 sm:$0xff]  }
  0x80   :  { %2541 = vmatpush1.bf16.msra.mxu1 %v4641_v27  ;;  %2491 = vmatprep.subr.bf16.mxu0 %v4646_v28  ;;  %v4726_v27 = vld [vmem:[%s6967_s4 + $0x914] ss:$48 sps:$4 sm:$0xff]   ;;  %v4721_v28 = vld [vmem:[%s6967_s4 + $0x370] ss:$48 sps:$4 sm:$0xff]  }
  0x81   :  { %2542 = vmatprep.subr.bf16.mxu1 %v4649_v29  ;;  %2429 = vmatprep.mubr.bf16.mxu1 %v5372_v32  ;;  %v4724_v29 = vld [vmem:[%s6967_s4 + $0x910] ss:$48 sps:$4 sm:$0xff]  }
  0x82   :  { %4374 = vmatprep.mubr.msk.bf16.mxu0 %vm2241_vm1, %v5374_v33 }
  0x83   :  { %2492 = vmatpush1.bf16.msra.mxu0 %v4644_v30  ;;  %v4729_v30 = vld [vmem:[%s6967_s4 + $0x314] ss:$48 sps:$4 sm:$0xff]  }
  0x84   :  { %2543 = vmatpush1.bf16.msra.mxu1 %v4647_v31  ;;  %2493 = vmatprep.subr.bf16.mxu0 %v4652_v34  ;;  %v4732_v31 = vld [vmem:[%s6967_s4 + $0x2bc] ss:$48 sps:$4 sm:$0xff]   ;;  %v4727_v34 = vld [vmem:[%s6967_s4 + $0x310] ss:$48 sps:$4 sm:$0xff]  }
  0x85   :  { %2544 = vmatprep.subr.bf16.mxu1 %v4655_v35  ;;  %v4730_v35 = vld [vmem:[%s6967_s4 + $0x2b8] ss:$48 sps:$4 sm:$0xff]  }
  0x86   :  { %2481 = vmatmul.mubr.bf16.gmra.mxu0 %v5390_v39 }
  0x87   :  { %2430 = vmatmul.mubr.bf16.gmra.mxu1 %v5388_v38  ;;  %2494 = vmatpush1.bf16.msra.mxu0 %v4650_v36  ;;  %v4735_v36 = vld [vmem:[%s6967_s4 + $0x25c] ss:$48 sps:$4 sm:$0xff]  }
  0x88   :  { %2545 = vmatpush1.bf16.msra.mxu1 %v4653_v37  ;;  %2495 = vmatprep.subr.bf16.mxu0 %v4658_v40  ;;  %v4738_v37 = vld [vmem:[%s6967_s4 + $0x8bc] ss:$48 sps:$4 sm:$0xff]   ;;  %v4733_v40 = vld [vmem:[%s6967_s4 + $0x258] ss:$48 sps:$4 sm:$0xff]  }
  0x89   :  { %2546 = vmatprep.subr.bf16.mxu1 %v4661_v41  ;;  %4376 = vmatprep.mubr.msk.bf16.mxu1 %vm2241_vm1, %v5230_v49  ;;  %v4736_v41 = vld [vmem:[%s6967_s4 + $0x8b8] ss:$48 sps:$4 sm:$0xff]  }
  0x8a   :  { %2521 = vmatprep.mubr.bf16.mxu0 %v5249_v55 }
  0x8b   :  { %2496 = vmatpush1.bf16.msra.mxu0 %v4656_v42  ;;  %v4741_v42 = vld [vmem:[%s6967_s4 + $0x1fc] ss:$48 sps:$4 sm:$0xff]  }
  0x8c   :  { %2547 = vmatpush1.bf16.msra.mxu1 %v4659_v43  ;;  %2497 = vmatprep.subr.bf16.mxu0 %v4664_v44  ;;  %v4744_v43 = vld [vmem:[%s6967_s4 + $0x85c] ss:$48 sps:$4 sm:$0xff]   ;;  %v4739_v44 = vld [vmem:[%s6967_s4 + $0x1f8] ss:$48 sps:$4 sm:$0xff]  }
  0x8d   :  { %2548 = vmatprep.subr.bf16.mxu1 %v4667_v45  ;;  %v4742_v45 = vld [vmem:[%s6967_s4 + $0x858] ss:$48 sps:$4 sm:$0xff]  }
  0x8f   :  { %2498 = vmatpush1.bf16.msra.mxu0 %v4662_v46  ;;  %v4747_v46 = vld [vmem:[%s6967_s4 + $0x19c] ss:$48 sps:$4 sm:$0xff]  }
  0x90   :  { %2549 = vmatpush1.bf16.msra.mxu1 %v4665_v47  ;;  %2499 = vmatprep.subr.bf16.mxu0 %v4670_v48  ;;  %v4750_v47 = vld [vmem:[%s6967_s4 + $0x7fc] ss:$48 sps:$4 sm:$0xff]   ;;  %v4745_v48 = vld [vmem:[%s6967_s4 + $0x198] ss:$48 sps:$4 sm:$0xff]  }
  0x91   :  { %2550 = vmatprep.subr.bf16.mxu1 %v4673_v50  ;;  %v4748_v50 = vld [vmem:[%s6967_s4 + $0x7f8] ss:$48 sps:$4 sm:$0xff]  }
  0x93   :  { %2500 = vmatpush1.bf16.msra.mxu0 %v4668_v51  ;;  %v4753_v51 = vld [vmem:[%s6967_s4 + $0x13c] ss:$48 sps:$4 sm:$0xff]  }
  0x94   :  { %2551 = vmatpush1.bf16.msra.mxu1 %v4671_v52  ;;  %2501 = vmatprep.subr.bf16.mxu0 %v4676_v53  ;;  %v4756_v52 = vld [vmem:[%s6967_s4 + $0x79c] ss:$48 sps:$4 sm:$0xff]   ;;  %v4751_v53 = vld [vmem:[%s6967_s4 + $0x138] ss:$48 sps:$4 sm:$0xff]  }
  0x95   :  { %2552 = vmatprep.subr.bf16.mxu1 %v4679_v54  ;;  %v4754_v54 = vld [vmem:[%s6967_s4 + $0x798] ss:$48 sps:$4 sm:$0xff]  }
  0x97   :  { %2502 = vmatpush1.bf16.msra.mxu0 %v4674_v56  ;;  %v4759_v56 = vld [vmem:[%s6967_s4 + $0xdc] ss:$48 sps:$4 sm:$0xff]  }
  0x98   :  { %2553 = vmatpush1.bf16.msra.mxu1 %v4677_v57  ;;  %2503 = vmatprep.subr.bf16.mxu0 %v4682_v58  ;;  %v4762_v57 = vld [vmem:[%s6967_s4 + $0x73c] ss:$48 sps:$4 sm:$0xff]   ;;  %v4757_v58 = vld [vmem:[%s6967_s4 + $0xd8] ss:$48 sps:$4 sm:$0xff]  }
  0x99   :  { %2554 = vmatprep.subr.bf16.mxu1 %v4685_v59  ;;  %v4760_v59 = vld [vmem:[%s6967_s4 + $0x738] ss:$48 sps:$4 sm:$0xff]  }
  0x9b   :  { %2504 = vmatpush1.bf16.msra.mxu0 %v4680_v61  ;;  %v4768_v61 = vld [vmem:[%s6967_s4 + $0x6dc] ss:$48 sps:$4 sm:$0xff]  }
  0x9c   :  { %2555 = vmatpush1.bf16.msra.mxu1 %v4683_v62  ;;  %2505 = vmatprep.subr.bf16.mxu0 %v4688_v63  ;;  %v4763_v62 = vld [vmem:[%s6967_s4 + $0x78] ss:$48 sps:$4 sm:$0xff]  }
  0x9d   :  { %4375 = vmatprep.subr.msk.bf16.mxu1 %vm2248_vm0, %v4362_v0  ;;  %v4766_v63 = vld [vmem:[%s6967_s4 + $0x6d8] ss:$48 sps:$4 sm:$0xff]   ;;  %v4771_v0 = vld [vmem:[%s6967_s4 + $0x1c] ss:$48 sps:$4 sm:$0xff]  }
  0x9f   :  { %2506 = vmatpush2.bf16.msra.mxu0 %v4686_v2  ;;  %v4769_v2 = vld [vmem:[%s6967_s4 + $0x18] ss:$48 sps:$4 sm:$0xff]  }
  0xa0   :  { %2559 = vmatpush2.bf16.msra.mxu1 %v2262_v4  ;;  %2507 = vmatprep.subr.bf16.mxu0 %v4693_v3  ;;  %v4772_v3 = vld [vmem:[%s6967_s4 + $0x678] ss:$48 sps:$4 sm:$0xff]   ;;  %v4777_v4 = vld [vmem:[%s6967_s4 + $0x5bc] ss:$48 sps:$4 sm:$0xff]  }
  0xa1   :  { %2560 = vmatprep.subr.bf16.mxu1 %v4696_v5  ;;  %v4780_v5 = vld [vmem:[%s6967_s4 + $0x61c] ss:$48 sps:$4 sm:$0xff]  }
  0xa3   :  { %2508 = vmatpush2.bf16.msra.mxu0 %v4691_v6  ;;  %v408_v6 = vld [vmem:[%s6967_s4 + $0xb58] sm:$0x77] }
  0xa4   :  { %2561 = vmatpush2.bf16.msra.mxu1 %v4694_v7  ;;  %2509 = vmatprep.subr.bf16.mxu0 %v4699_v8  ;;  %v4775_v7 = vld [vmem:[%s6967_s4 + $0x5b8] ss:$48 sps:$4 sm:$0xff]  }
  0xa5   :  { %2562 = vmatprep.subr.bf16.mxu1 %v4702_v9  ;;  %v4778_v8 = vld [vmem:[%s6967_s4 + $0x618] ss:$48 sps:$4 sm:$0xff]   ;;  %v4783_v9 = vld [vmem:[%s6967_s4 + $0x55c] ss:$48 sps:$4 sm:$0xff]  }
  0xa7   :  { %2510 = vmatpush2.bf16.msra.mxu0 %v4697_v11  ;;  %v4364_v11 = vcombine.high %v408_v6, %v408_v6 }
  0xa8   :  { %2563 = vmatpush2.bf16.msra.mxu1 %v4700_v12  ;;  %2511 = vmatprep.subr.bf16.mxu0 %v4705_v13  ;;  %v4363_v12 = vcombine.low %v408_v6, %v408_v6  ;;  %v4781_v13 = vld [vmem:[%s6967_s4 + $0x558] ss:$48 sps:$4 sm:$0xff]  }
  0xa9   :  { %2564 = vmatprep.subr.bf16.mxu1 %v4708_v14 }
  0xaa   :  { %v2268_v14 = vsel %vm2248_vm0, %v4363_v12, 0 }
  0xab   :  { %2512 = vmatpush2.bf16.msra.mxu0 %v4703_v16  ;;  %v4788_v16 = vld [vmem:[%s6967_s4 + $0x4fc] ss:$48 sps:$4 sm:$0xff]  }
  0xac   :  { %2565 = vmatpush2.bf16.msra.mxu1 %v4706_v17  ;;  %2513 = vmatprep.subr.bf16.mxu0 %v4711_v18  ;;  %v4791_v17 = vld [vmem:[%s6967_s4 + $0xafc] ss:$48 sps:$4 sm:$0xff]   ;;  %v4786_v18 = vld [vmem:[%s6967_s4 + $0x4f8] ss:$48 sps:$4 sm:$0xff]  }
  0xad   :  { %2566 = vmatprep.subr.bf16.mxu1 %v4714_v19  ;;  %v4789_v19 = vld [vmem:[%s6967_s4 + $0xaf8] ss:$48 sps:$4 sm:$0xff]  }
  0xaf   :  { %2514 = vmatpush2.bf16.msra.mxu0 %v4709_v20  ;;  %v4794_v20 = vld [vmem:[%s6967_s4 + $0x49c] ss:$48 sps:$4 sm:$0xff]  }
  0xb0   :  { %2567 = vmatpush2.bf16.msra.mxu1 %v4712_v21  ;;  %2515 = vmatprep.subr.bf16.mxu0 %v4717_v22  ;;  %v4797_v21 = vld [vmem:[%s6967_s4 + $0xa9c] ss:$48 sps:$4 sm:$0xff]   ;;  %v4792_v22 = vld [vmem:[%s6967_s4 + $0x498] ss:$48 sps:$4 sm:$0xff]  }
  0xb1   :  { %2568 = vmatprep.subr.bf16.mxu1 %v4720_v23  ;;  %v4795_v23 = vld [vmem:[%s6967_s4 + $0xa98] ss:$48 sps:$4 sm:$0xff]  }
  0xb3   :  { %2516 = vmatpush2.bf16.msra.mxu0 %v4715_v24  ;;  %v4800_v24 = vld [vmem:[%s6967_s4 + $0x43c] ss:$48 sps:$4 sm:$0xff]  }
  0xb4   :  { %2569 = vmatpush2.bf16.msra.mxu1 %v4718_v25  ;;  %2517 = vmatprep.subr.bf16.mxu0 %v4723_v26  ;;  %v4803_v25 = vld [vmem:[%s6967_s4 + $0xa3c] ss:$48 sps:$4 sm:$0xff]   ;;  %v4798_v26 = vld [vmem:[%s6967_s4 + $0x438] ss:$48 sps:$4 sm:$0xff]  }
  0xb5   :  { %2570 = vmatprep.subr.bf16.mxu1 %v4726_v27  ;;  %v4801_v27 = vld [vmem:[%s6967_s4 + $0xa38] ss:$48 sps:$4 sm:$0xff]  }
  0xb7   :  { %2518 = vmatpush2.bf16.msra.mxu0 %v4721_v28  ;;  %v4806_v28 = vld [vmem:[%s6967_s4 + $0x3dc] ss:$48 sps:$4 sm:$0xff]  }
  0xb8   :  { %2571 = vmatpush2.bf16.msra.mxu1 %v4724_v29  ;;  %2519 = vmatprep.subr.bf16.mxu0 %v4729_v30  ;;  %v4809_v29 = vld [vmem:[%s6967_s4 + $0x9dc] ss:$48 sps:$4 sm:$0xff]   ;;  %v4804_v30 = vld [vmem:[%s6967_s4 + $0x3d8] ss:$48 sps:$4 sm:$0xff]  }
  0xb9   :  { %2591 = vmatprep.subr.bf16.mxu1 %v4732_v31  ;;  %v4807_v31 = vld [vmem:[%s6967_s4 + $0x9d8] ss:$48 sps:$4 sm:$0xff]  }
  0xbb   :  { %2573 = vmatmul.mubr.bf16.vlgmr.msra.gmra.mxu1 %v5306_v10  ;;  %2520 = vmatpush2.bf16.msra.mxu0 %v4727_v34  ;;  %v4812_v34 = vld [vmem:[%s6967_s4 + $0x37c] ss:$48 sps:$4 sm:$0xff]  }
  0xbc   :  { %2592 = vmatpush1.bf16.msra.mxu1 %v4730_v35  ;;  %2642 = vmatprep.subr.bf16.mxu0 %v4738_v37  ;;  %v4815_v35 = vld [vmem:[%s6967_s4 + $0x97c] ss:$48 sps:$4 sm:$0xff]   ;;  %v4813_v37 = vld [vmem:[%s6967_s4 + $0x978] ss:$48 sps:$4 sm:$0xff]  }
  0xbd   :  { %2593 = vmatprep.subr.bf16.mxu1 %v4735_v36  ;;  %4377 = vmatprep.mubr.msk.bf16.mxu1 %vm2241_vm1, %v5374_v33  ;;  %v4810_v36 = vld [vmem:[%s6967_s4 + $0x378] ss:$48 sps:$4 sm:$0xff]  }
  0xbe   :  { %2522 = vmatmul.mubr.bf16.vlgmr.msra.gmra.mxu0 %v5321_v15 }
  0xbf   :  { %2643 = vmatpush1.bf16.msra.mxu0 %v4736_v41  ;;  %2531 = vmatprep.mubr.bf16.mxu0 %v5372_v32  ;;  %v4821_v41 = vld [vmem:[%s6967_s4 + $0x91c] ss:$48 sps:$4 sm:$0xff]  }
  0xc0   :  { %2594 = vmatpush1.bf16.msra.mxu1 %v4733_v40  ;;  %2644 = vmatprep.subr.bf16.mxu0 %v4744_v43  ;;  %v4818_v40 = vld [vmem:[%s6967_s4 + $0x31c] ss:$48 sps:$4 sm:$0xff]   ;;  %v4819_v43 = vld [vmem:[%s6967_s4 + $0x918] ss:$48 sps:$4 sm:$0xff]  }
  0xc1   :  { %2595 = vmatprep.subr.bf16.mxu1 %v4741_v42  ;;  %v4816_v42 = vld [vmem:[%s6967_s4 + $0x318] ss:$48 sps:$4 sm:$0xff]  }
  0xc3   :  { %2583 = vmatmul.mubr.bf16.gmra.mxu1 %v5390_v39  ;;  %2645 = vmatpush1.bf16.msra.mxu0 %v4742_v45  ;;  %v4827_v45 = vld [vmem:[%s6967_s4 + $0x8c4] ss:$48 sps:$4 sm:$0xff]  }
  0xc4   :  { %2596 = vmatpush1.bf16.msra.mxu1 %v4739_v44  ;;  %2646 = vmatprep.subr.bf16.mxu0 %v4750_v47  ;;  %v4824_v44 = vld [vmem:[%s6967_s4 + $0x2c4] ss:$48 sps:$4 sm:$0xff]   ;;  %v4825_v47 = vld [vmem:[%s6967_s4 + $0x8c0] ss:$48 sps:$4 sm:$0xff]  }
  0xc5   :  { %2597 = vmatprep.subr.bf16.mxu1 %v4747_v46  ;;  %2623 = vmatprep.mubr.bf16.mxu1 %v5249_v55  ;;  %v4822_v46 = vld [vmem:[%s6967_s4 + $0x2c0] ss:$48 sps:$4 sm:$0xff]  }
  0xc6   :  { %2532 = vmatmul.mubr.bf16.gmra.mxu0 %v5388_v38 }
  0xc7   :  { %2647 = vmatpush1.bf16.msra.mxu0 %v4748_v50  ;;  %4379 = vmatprep.mubr.msk.bf16.mxu0 %vm2241_vm1, %v5230_v49  ;;  %v4833_v50 = vld [vmem:[%s6967_s4 + $0x864] ss:$48 sps:$4 sm:$0xff]  }
  0xc8   :  { %2598 = vmatpush1.bf16.msra.mxu1 %v4745_v48  ;;  %2648 = vmatprep.subr.bf16.mxu0 %v4756_v52  ;;  %v4830_v48 = vld [vmem:[%s6967_s4 + $0x264] ss:$48 sps:$4 sm:$0xff]   ;;  %v4831_v52 = vld [vmem:[%s6967_s4 + $0x860] ss:$48 sps:$4 sm:$0xff]  }
  0xc9   :  { %2599 = vmatprep.subr.bf16.mxu1 %v4753_v51  ;;  %v4828_v51 = vld [vmem:[%s6967_s4 + $0x260] ss:$48 sps:$4 sm:$0xff]  }
  0xcb   :  { %2649 = vmatpush1.bf16.msra.mxu0 %v4754_v54 }
  0xcc   :  { %2600 = vmatpush1.bf16.msra.mxu1 %v4751_v53  ;;  %2650 = vmatprep.subr.bf16.mxu0 %v4762_v57 }
  0xcd   :  { %2601 = vmatprep.subr.bf16.mxu1 %v4759_v56 }
  0xcf   :  { %2651 = vmatpush1.bf16.msra.mxu0 %v4760_v59 }
  0xd0   :  { %2602 = vmatpush1.bf16.msra.mxu1 %v4757_v58  ;;  %2652 = vmatprep.subr.bf16.mxu0 %v4768_v61 }
  0xd1   :  { %2603 = vmatprep.subr.bf16.mxu1 %v4765_v60 }
  0xd3   :  { %2653 = vmatpush1.bf16.msra.mxu0 %v4766_v63 }
  0xd4   :  { %2604 = vmatpush1.bf16.msra.mxu1 %v4763_v62  ;;  %2654 = vmatprep.subr.bf16.mxu0 %v4774_v1 }
  0xd5   :  { %2605 = vmatprep.subr.bf16.mxu1 %v4771_v0 }
  0xd7   :  { %2655 = vmatpush1.bf16.msra.mxu0 %v4772_v3 }
  0xd8   :  { %2606 = vmatpush1.bf16.msra.mxu1 %v4769_v2  ;;  %2656 = vmatprep.subr.bf16.mxu0 %v4780_v5 }
  0xd9   :  { %2607 = vmatprep.subr.bf16.mxu1 %v4777_v4 }
  0xdb   :  { %2657 = vmatpush1.bf16.msra.mxu0 %v4778_v8 }
  0xdc   :  { %2608 = vmatpush2.bf16.msra.mxu1 %v4775_v7  ;;  %4378 = vmatprep.subr.msk.bf16.mxu0 %vm2248_vm0, %v4364_v11 }
  0xdd   :  { %2609 = vmatprep.subr.bf16.mxu1 %v4783_v9 }
  0xdf   :  { %2661 = vmatpush2.bf16.msra.mxu0 %v2268_v14 }
  0xe0   :  { %2610 = vmatpush2.bf16.msra.mxu1 %v4781_v13  ;;  %2662 = vmatprep.subr.bf16.mxu0 %v4791_v17 }
  0xe1   :  { %2611 = vmatprep.subr.bf16.mxu1 %v4788_v16 }
  0xe3   :  { %2663 = vmatpush2.bf16.msra.mxu0 %v4789_v19 }
  0xe4   :  { %2612 = vmatpush2.bf16.msra.mxu1 %v4786_v18  ;;  %2664 = vmatprep.subr.bf16.mxu0 %v4797_v21 }
  0xe5   :  { %2613 = vmatprep.subr.bf16.mxu1 %v4794_v20 }
  0xe7   :  { %2665 = vmatpush2.bf16.msra.mxu0 %v4795_v23 }
  0xe8   :  { %2614 = vmatpush2.bf16.msra.mxu1 %v4792_v22  ;;  %2666 = vmatprep.subr.bf16.mxu0 %v4803_v25 }
  0xe9   :  { %2615 = vmatprep.subr.bf16.mxu1 %v4800_v24 }
  0xeb   :  { %2667 = vmatpush2.bf16.msra.mxu0 %v4801_v27 }
  0xec   :  { %2616 = vmatpush2.bf16.msra.mxu1 %v4798_v26  ;;  %2668 = vmatprep.subr.bf16.mxu0 %v4809_v29 }
  0xed   :  { %2617 = vmatprep.subr.bf16.mxu1 %v4806_v28 }
  0xef   :  { %2669 = vmatpush2.bf16.msra.mxu0 %v4807_v31 }
  0xf0   :  { %2618 = vmatpush2.bf16.msra.mxu1 %v4804_v30  ;;  %2670 = vmatprep.subr.bf16.mxu0 %v4815_v35 }
  0xf1   :  { %2619 = vmatprep.subr.bf16.mxu1 %v4812_v34 }
  0xf3   :  { %2671 = vmatpush2.bf16.msra.mxu0 %v4813_v37 }
  0xf4   :  { %2620 = vmatpush2.bf16.msra.mxu1 %v4810_v36  ;;  %2672 = vmatprep.subr.bf16.mxu0 %v4821_v41 }
  0xf5   :  { %2621 = vmatprep.subr.bf16.mxu1 %v4818_v40 }
  0xf7   :  { %2673 = vmatpush2.bf16.msra.mxu0 %v4819_v43 }
  0xf8   :  { %2622 = vmatpush2.bf16.msra.mxu1 %v4816_v42  ;;  %2693 = vmatprep.subr.bf16.mxu0 %v4824_v44 }
  0xf9   :  { %2744 = vmatprep.subr.bf16.mxu1 %v4827_v45 }
  0xfa   :  { %2675 = vmatmul.mubr.bf16.vlgmr.msra.gmra.mxu0 %v5306_v10 }
  0xfb   :  { %2624 = vmatmul.mubr.bf16.vlgmr.msra.gmra.mxu1 %v5321_v15  ;;  %2694 = vmatpush1.bf16.msra.mxu0 %v4822_v46 }
  0xfc   :  { %2745 = vmatpush1.bf16.msra.mxu1 %v4825_v47 }
  0xfd   :  { %11 = vsyncpa [#allocation3], 0  ;;  %2695 = vmatprep.subr.bf16.mxu0 %v4830_v48  ;;  %2746 = vmatprep.subr.bf16.mxu1 %v4833_v50  ;;  %v4836_v53 = vld [vmem:[%s6967_s4 + $0x204] ss:$48 sps:$4 sm:$0xff]   ;;  %v4834_v57 = vld [vmem:[%s6967_s4 + $0x200] ss:$48 sps:$4 sm:$0xff]  }
  0xfe   :  { %v4839_v54 = vld [vmem:[%s6967_s4 + $0x804] ss:$48 sps:$4 sm:$0xff]   ;;  %2633 = vmatprep.mubr.bf16.mxu1 %v5372_v32  ;;  %4380 = vmatprep.mubr.msk.bf16.mxu0 %vm2241_vm1, %v5374_v33  ;;  %v4837_v58 = vld [vmem:[%s6967_s4 + $0x800] ss:$48 sps:$4 sm:$0xff]   ;;  %v5050_v8 = vmov 0   ;;  %vm3090_vm2 = vcmask 1043456  }
  0xff   :  { %v2370_v56 = vpop.f32.mrf.mxu1  ;;  %2696 = vmatpush1.bf16.msra.mxu0 %v4828_v51  ;;  %v4842_v59 = vld [vmem:[%s6967_s4 + $0x1a4] ss:$48 sps:$4 sm:$0xff]   ;;  %v4840_v0 = vld [vmem:[%s6967_s4 + $0x1a0] ss:$48 sps:$4 sm:$0xff]   ;;  %4452 = vset.pattern.permute.xlu0 %v5050_v8  ;;  %vm3035_vm3 = vcmask 449536  }
 0x100   :  { %2747 = vmatpush1.bf16.msra.mxu1 %v4831_v52  ;;  %2697 = vmatprep.subr.bf16.mxu0 %v4836_v53  ;;  %v4845_v60 = vld [vmem:[%s6967_s4 + $0x7a4] ss:$48 sps:$4 sm:$0xff]   ;;  %v4843_v1 = vld [vmem:[%s6967_s4 + $0x7a0] ss:$48 sps:$4 sm:$0xff]  }
 0x101   :  { %2748 = vmatprep.subr.bf16.mxu1 %v4839_v54  ;;  %v2372_v61 = vpop.f32.mrf.mxu1  ;;  %v4848_v3 = vld [vmem:[%s6967_s4 + $0x144] ss:$48 sps:$4 sm:$0xff]   ;;  %4453 = vset.pattern.permute.xlu1 %v5050_v8  ;;  %v4846_v11 = vld [vmem:[%s6967_s4 + $0x140] ss:$48 sps:$4 sm:$0xff]  }
 0x102   :  { %v2319_v62 = vpop.f32.mrf.mxu0  ;;  %2685 = vmatmul.mubr.bf16.gmra.mxu0 %v5390_v39  ;;  %v4851_v4 = vld [vmem:[%s6967_s4 + $0x744] ss:$48 sps:$4 sm:$0xff]   ;;  %v4849_v12 = vld [vmem:[%s6967_s4 + $0x740] ss:$48 sps:$4 sm:$0xff]  }
 0x103   :  { %2634 = vmatmul.mubr.bf16.gmra.mxu1 %v5388_v38  ;;  %v5964_v63 = vadd.f32 %v2370_v56, %v2319_v62  ;;  %2698 = vmatpush1.bf16.msra.mxu0 %v4834_v57  ;;  %v2374_v6 = vpop.f32.mrf.mxu1  ;;  %v4854_v13 = vld [vmem:[%s6967_s4 + $0xe4] ss:$48 sps:$4 sm:$0xff]   ;;  %v4852_v16 = vld [vmem:[%s6967_s4 + $0xe0] ss:$48 sps:$4 sm:$0xff]  }
 0x104   :  { %2749 = vmatpush1.bf16.msra.mxu1 %v4837_v58  ;;  %v2321_v2 = vpop.f32.mrf.mxu0  ;;  %2699 = vmatprep.subr.bf16.mxu0 %v4842_v59  ;;  %v4857_v14 = vld [vmem:[%s6967_s4 + $0x6e4] ss:$48 sps:$4 sm:$0xff]   ;;  %v4855_v17 = vld [vmem:[%s6967_s4 + $0x6e0] ss:$48 sps:$4 sm:$0xff]  }
 0x105   :  { %2750 = vmatprep.subr.bf16.mxu1 %v4845_v60  ;;  %v5978_v5 = vadd.f32 %v2372_v61, %v2321_v2  ;;  %4382 = vmatprep.mubr.msk.bf16.mxu1 %vm2241_vm1, %v5230_v49  ;;  %v6005_v18 = vpop.f32.mrf.mxu1  ;;  %v4860_v20 = vld [vmem:[%s6967_s4 + $0x84] ss:$48 sps:$4 sm:$0xff]   ;;  %v4858_v24 = vld [vmem:[%s6967_s4 + $0x80] ss:$48 sps:$4 sm:$0xff]  }
 0x106   :  { %2725 = vmatprep.mubr.bf16.mxu0 %v5249_v55  ;;  %v2323_v7 = vpop.f32.mrf.mxu0  ;;  %v4863_v21 = vld [vmem:[%s6967_s4 + $0x684] ss:$48 sps:$4 sm:$0xff]   ;;  %v4861_v25 = vld [vmem:[%s6967_s4 + $0x680] ss:$48 sps:$4 sm:$0xff]  }
 0x107   :  { %v5985_v9 = vadd.f32 %v2374_v6, %v2323_v7  ;;  %2700 = vmatpush1.bf16.msra.mxu0 %v4840_v0  ;;  %v2380_v23 = vpop.f32.mrf.mxu1  ;;  %v4866_v27 = vld [vmem:[%s6967_s4 + $0x24] ss:$48 sps:$4 sm:$0xff]   ;;  %v4864_v37 = vld [vmem:[%s6967_s4 + $0x20] ss:$48 sps:$4 sm:$0xff]  }
 0x108   :  { %2751 = vmatpush1.bf16.msra.mxu1 %v4843_v1  ;;  %2701 = vmatprep.subr.bf16.mxu0 %v4848_v3  ;;  %v6007_v19 = vpop.f32.mrf.mxu0  ;;  %v4869_v28 = vld [vmem:[%s6967_s4 + $0x624] ss:$48 sps:$4 sm:$0xff]   ;;  %v4867_v40 = vld [vmem:[%s6967_s4 + $0x620] ss:$48 sps:$4 sm:$0xff]  }
 0x109   :  { %2752 = vmatprep.subr.bf16.mxu1 %v4851_v4  ;;  %v2382_v30 = vpop.f32.mrf.mxu1  ;;  %v409_v31 = vld [vmem:[%s6967_s4 + $0xb60] sm:$0x77] }
 0x10a   :  { %v2329_v22 = vpop.f32.mrf.mxu0  ;;  %v4872_v41 = vld [vmem:[%s6967_s4 + $0x5c4] ss:$48 sps:$4 sm:$0xff]   ;;  %v4366_v42 = vcombine.high %v409_v31, %v409_v31  ;;  %v4365_v43 = vcombine.low %v409_v31, %v409_v31  ;;  %v4870_v46 = vld [vmem:[%s6967_s4 + $0x5c0] ss:$48 sps:$4 sm:$0xff]   ;;  %v4931_v31 = vld [vmem:[%s6967_s4 + $0x1ac] ss:$48 sps:$4 sm:$0xff]  }
 0x10b   :  { %2702 = vmatpush1.bf16.msra.mxu0 %v4846_v11  ;;  %v6021_v26 = vadd.f32 %v2380_v23, %v2329_v22  ;;  %v2384_v36 = vpop.f32.mrf.mxu1  ;;  %v4877_v48 = vld [vmem:[%s6967_s4 + $0x564] ss:$48 sps:$4 sm:$0xff]   ;;  %v4875_v51 = vld [vmem:[%s6967_s4 + $0x560] ss:$48 sps:$4 sm:$0xff]   ;;  %v4919_v22 = vld [vmem:[%s6967_s4 + $0x26c] ss:$48 sps:$4 sm:$0xff]  }
 0x10c   :  { %2753 = vmatpush1.bf16.msra.mxu1 %v4849_v12  ;;  %2703 = vmatprep.subr.bf16.mxu0 %v4854_v13  ;;  %v2331_v29 = vpop.f32.mrf.mxu0  ;;  %v2274_v47 = vsel %vm2248_vm0, %v4365_v43, 0  ;;  %v4880_v50 = vld [vmem:[%s6967_s4 + $0xb04] ss:$48 sps:$4 sm:$0xff]   ;;  %v4878_v52 = vld [vmem:[%s6967_s4 + $0xb00] ss:$48 sps:$4 sm:$0xff]  }
 0x10d   :  { %2754 = vmatprep.subr.bf16.mxu1 %v4857_v14  ;;  %v6032_v34 = vadd.f32 %v2382_v30, %v2331_v29  ;;  %v2385_v45 = vpop.f32.mrf.mxu1  ;;  %v4883_v53 = vld [vmem:[%s6967_s4 + $0x504] ss:$48 sps:$4 sm:$0xff]   ;;  %v4881_v56 = vld [vmem:[%s6967_s4 + $0x500] ss:$48 sps:$4 sm:$0xff]   ;;  %v4922_v23 = vld [vmem:[%s6967_s4 + $0x8cc] ss:$48 sps:$4 sm:$0xff]  }
 0x10e   :  { %v2333_v35 = vpop.f32.mrf.mxu0  ;;  %v4886_v54 = vld [vmem:[%s6967_s4 + $0xaa4] ss:$48 sps:$4 sm:$0xff]   ;;  %v4884_v57 = vld [vmem:[%s6967_s4 + $0xaa0] ss:$48 sps:$4 sm:$0xff]   ;;  %v4923_v29 = vld [vmem:[%s6967_s4 + $0x208] ss:$48 sps:$4 sm:$0xff]  }
 0x10f   :  { %2704 = vmatpush1.bf16.msra.mxu0 %v4852_v16  ;;  %v4889_v58 = vld [vmem:[%s6967_s4 + $0x4a4] ss:$48 sps:$4 sm:$0xff]   ;;  %v4887_v60 = vld [vmem:[%s6967_s4 + $0x4a0] ss:$48 sps:$4 sm:$0xff]   ;;  %v4926_v30 = vld [vmem:[%s6967_s4 + $0x868] ss:$48 sps:$4 sm:$0xff]  }
 0x110   :  { %2755 = vmatpush1.bf16.msra.mxu1 %v4855_v17  ;;  %2705 = vmatprep.subr.bf16.mxu0 %v4860_v20  ;;  %v2334_v44 = vpop.f32.mrf.mxu0  ;;  %v4892_v59 = vld [vmem:[%s6967_s4 + $0xa44] ss:$48 sps:$4 sm:$0xff]   ;;  %v4890_v61 = vld [vmem:[%s6967_s4 + $0xa40] ss:$48 sps:$4 sm:$0xff]   ;;  %v4916_v17 = vld [vmem:[%s6967_s4 + $0x2cc] ss:$48 sps:$4 sm:$0xff]  }
 0x111   :  { %2756 = vmatprep.subr.bf16.mxu1 %v4863_v21  ;;  %v4895_v62 = vld [vmem:[%s6967_s4 + $0x444] ss:$48 sps:$4 sm:$0xff]   ;;  %v4893_v1 = vld [vmem:[%s6967_s4 + $0x440] ss:$48 sps:$4 sm:$0xff]   ;;  %v4914_v21 = vld [vmem:[%s6967_s4 + $0x2c8] ss:$48 sps:$4 sm:$0xff]  }
 0x112   :  { %v4898_v0 = vld [vmem:[%s6967_s4 + $0x9e4] ss:$48 sps:$4 sm:$0xff]   ;;  %v4896_v2 = vld [vmem:[%s6967_s4 + $0x9e0] ss:$48 sps:$4 sm:$0xff]   ;;  %v4934_v35 = vld [vmem:[%s6967_s4 + $0x80c] ss:$48 sps:$4 sm:$0xff]  }
 0x113   :  { %2706 = vmatpush1.bf16.msra.mxu0 %v4858_v24  ;;  %v4901_v3 = vld [vmem:[%s6967_s4 + $0x3e4] ss:$48 sps:$4 sm:$0xff]   ;;  %v4899_v6 = vld [vmem:[%s6967_s4 + $0x3e0] ss:$48 sps:$4 sm:$0xff]   ;;  %v4917_v24 = vld [vmem:[%s6967_s4 + $0x268] ss:$48 sps:$4 sm:$0xff]  }
 0x114   :  { %2757 = vmatpush1.bf16.msra.mxu1 %v4861_v25  ;;  %2707 = vmatprep.subr.bf16.mxu0 %v4866_v27  ;;  %v4904_v4 = vld [vmem:[%s6967_s4 + $0x984] ss:$48 sps:$4 sm:$0xff]   ;;  %v4902_v7 = vld [vmem:[%s6967_s4 + $0x980] ss:$48 sps:$4 sm:$0xff]   ;;  %v4920_v25 = vld [vmem:[%s6967_s4 + $0x8c8] ss:$48 sps:$4 sm:$0xff]  }
 0x115   :  { %2758 = vmatprep.subr.bf16.mxu1 %v4869_v28  ;;  %v4907_v11 = vld [vmem:[%s6967_s4 + $0x384] ss:$48 sps:$4 sm:$0xff]   ;;  %v4905_v13 = vld [vmem:[%s6967_s4 + $0x380] ss:$48 sps:$4 sm:$0xff]   ;;  %v4925_v27 = vld [vmem:[%s6967_s4 + $0x20c] ss:$48 sps:$4 sm:$0xff]  }
 0x116   :  { %v4910_v12 = vld [vmem:[%s6967_s4 + $0x924] ss:$48 sps:$4 sm:$0xff]   ;;  %v4908_v14 = vld [vmem:[%s6967_s4 + $0x920] ss:$48 sps:$4 sm:$0xff]   ;;  %v4928_v28 = vld [vmem:[%s6967_s4 + $0x86c] ss:$48 sps:$4 sm:$0xff]  }
 0x117   :  { %2708 = vmatpush1.bf16.msra.mxu0 %v4864_v37  ;;  %v4913_v16 = vld [vmem:[%s6967_s4 + $0x324] ss:$48 sps:$4 sm:$0xff]   ;;  %v4911_v20 = vld [vmem:[%s6967_s4 + $0x320] ss:$48 sps:$4 sm:$0xff]   ;;  %v4937_v45 = vld [vmem:[%s6967_s4 + $0x14c] ss:$48 sps:$4 sm:$0xff]  }
 0x118   :  { %2759 = vmatpush1.bf16.msra.mxu1 %v4867_v40  ;;  %2709 = vmatprep.subr.bf16.mxu0 %v4872_v41  ;;  %v4929_v41 = vld [vmem:[%s6967_s4 + $0x1a8] ss:$48 sps:$4 sm:$0xff]  }
 0x119   :  { %4381 = vmatprep.subr.msk.bf16.mxu1 %vm2248_vm0, %v4366_v42  ;;  %v4932_v42 = vld [vmem:[%s6967_s4 + $0x808] ss:$48 sps:$4 sm:$0xff]  }
 0x11b   :  { %2710 = vmatpush2.bf16.msra.mxu0 %v4870_v46  ;;  %v4940_v46 = vld [vmem:[%s6967_s4 + $0x7ac] ss:$48 sps:$4 sm:$0xff]  }
 0x11c   :  { %2763 = vmatpush2.bf16.msra.mxu1 %v2274_v47  ;;  %2711 = vmatprep.subr.bf16.mxu0 %v4877_v48 }
 0x11d   :  { %2764 = vmatprep.subr.bf16.mxu1 %v4880_v50 }
 0x11f   :  { %2712 = vmatpush2.bf16.msra.mxu0 %v4875_v51 }
 0x120   :  { %2765 = vmatpush2.bf16.msra.mxu1 %v4878_v52  ;;  %2713 = vmatprep.subr.bf16.mxu0 %v4883_v53  ;;  %v4935_v52 = vld [vmem:[%s6967_s4 + $0x148] ss:$48 sps:$4 sm:$0xff]  }
 0x121   :  { %2766 = vmatprep.subr.bf16.mxu1 %v4886_v54  ;;  %v4938_v53 = vld [vmem:[%s6967_s4 + $0x7a8] ss:$48 sps:$4 sm:$0xff]  }
 0x123   :  { %2714 = vmatpush2.bf16.msra.mxu0 %v4881_v56 }
 0x124   :  { %2767 = vmatpush2.bf16.msra.mxu1 %v4884_v57  ;;  %2715 = vmatprep.subr.bf16.mxu0 %v4889_v58  ;;  %v4946_v57 = vld [vmem:[%s6967_s4 + $0x74c] ss:$48 sps:$4 sm:$0xff]  }
 0x125   :  { %2768 = vmatprep.subr.bf16.mxu1 %v4892_v59 }
 0x127   :  { %2716 = vmatpush2.bf16.msra.mxu0 %v4887_v60 }
 0x128   :  { %2769 = vmatpush2.bf16.msra.mxu1 %v4890_v61  ;;  %2717 = vmatprep.subr.bf16.mxu0 %v4895_v62  ;;  %v4941_v61 = vld [vmem:[%s6967_s4 + $0xe8] ss:$48 sps:$4 sm:$0xff]  }
 0x129   :  { %2770 = vmatprep.subr.bf16.mxu1 %v4898_v0  ;;  %v4944_v62 = vld [vmem:[%s6967_s4 + $0x748] ss:$48 sps:$4 sm:$0xff]  }
 0x12b   :  { %2718 = vmatpush2.bf16.msra.mxu0 %v4893_v1  ;;  %v4952_v1 = vld [vmem:[%s6967_s4 + $0x6ec] ss:$48 sps:$4 sm:$0xff]  }
 0x12c   :  { %2771 = vmatpush2.bf16.msra.mxu1 %v4896_v2  ;;  %2719 = vmatprep.subr.bf16.mxu0 %v4901_v3 }
 0x12d   :  { %2772 = vmatprep.subr.bf16.mxu1 %v4904_v4 }
 0x12f   :  { %2720 = vmatpush2.bf16.msra.mxu0 %v4899_v6 }
 0x130   :  { %2773 = vmatpush2.bf16.msra.mxu1 %v4902_v7  ;;  %2721 = vmatprep.subr.bf16.mxu0 %v4907_v11  ;;  %v4947_v11 = vld [vmem:[%s6967_s4 + $0x88] ss:$48 sps:$4 sm:$0xff]  }
 0x131   :  { %2774 = vmatprep.subr.bf16.mxu1 %v4910_v12  ;;  %v4950_v12 = vld [vmem:[%s6967_s4 + $0x6e8] ss:$48 sps:$4 sm:$0xff]  }
 0x133   :  { %2722 = vmatpush2.bf16.msra.mxu0 %v4905_v13  ;;  %v4955_v13 = vld [vmem:[%s6967_s4 + $0x2c] ss:$48 sps:$4 sm:$0xff]  }
 0x134   :  { %2775 = vmatpush2.bf16.msra.mxu1 %v4908_v14  ;;  %2723 = vmatprep.subr.bf16.mxu0 %v4913_v16  ;;  %v4958_v14 = vld [vmem:[%s6967_s4 + $0x68c] ss:$48 sps:$4 sm:$0xff]  }
 0x135   :  { %2795 = vmatprep.subr.bf16.mxu1 %v4916_v17 }
 0x137   :  { %2777 = vmatmul.mubr.bf16.vlgmr.msra.gmra.mxu1 %v5306_v10  ;;  %2724 = vmatpush2.bf16.msra.mxu0 %v4911_v20  ;;  %v4953_v20 = vld [vmem:[%s6967_s4 + $0x28] ss:$48 sps:$4 sm:$0xff]  }
 0x138   :  { %2796 = vmatpush1.bf16.msra.mxu1 %v4914_v21  ;;  %2846 = vmatprep.subr.bf16.mxu0 %v4922_v23  ;;  %v4956_v21 = vld [vmem:[%s6967_s4 + $0x688] ss:$48 sps:$4 sm:$0xff]   ;;  %v4964_v23 = vld [vmem:[%s6967_s4 + $0x62c] ss:$48 sps:$4 sm:$0xff]  }
 0x139   :  { %2797 = vmatprep.subr.bf16.mxu1 %v4919_v22  ;;  %4383 = vmatprep.mubr.msk.bf16.mxu1 %vm2241_vm1, %v5374_v33  ;;  %v4961_v22 = vld [vmem:[%s6967_s4 + $0x5cc] ss:$48 sps:$4 sm:$0xff]  }
 0x13a   :  { %2726 = vmatmul.mubr.bf16.vlgmr.msra.gmra.mxu0 %v5321_v15 }
 0x13b   :  { %2847 = vmatpush1.bf16.msra.mxu0 %v4920_v25  ;;  %2735 = vmatprep.mubr.bf16.mxu0 %v5372_v32  ;;  %v4959_v25 = vld [vmem:[%s6967_s4 + $0x5c8] ss:$48 sps:$4 sm:$0xff]  }
 0x13c   :  { %2798 = vmatpush1.bf16.msra.mxu1 %v4917_v24  ;;  %2848 = vmatprep.subr.bf16.mxu0 %v4928_v28  ;;  %v410_v24 = vld [vmem:[%s6967_s4 + $0xb68] sm:$0x77] }
 0x13d   :  { %2799 = vmatprep.subr.bf16.mxu1 %v4925_v27  ;;  %v4962_v27 = vld [vmem:[%s6967_s4 + $0x628] ss:$48 sps:$4 sm:$0xff]   ;;  %v4967_v28 = vld [vmem:[%s6967_s4 + $0x56c] ss:$48 sps:$4 sm:$0xff]  }
 0x13e   :  { %v2472_v37 = vpop.f32.mrf.mxu0 }
 0x13f   :  { %v2421_v36 = vpop.f32.mrf.mxu1  ;;  %2787 = vmatmul.mubr.bf16.gmra.mxu1 %v5390_v39  ;;  %2849 = vmatpush1.bf16.msra.mxu0 %v4926_v30  ;;  %v4367_v30 = vcombine.low %v410_v24, %v410_v24 }
 0x140   :  { %v6168_v40 = vadd.f32 %v2472_v37, %v2421_v36  ;;  %2800 = vmatpush1.bf16.msra.mxu1 %v4923_v29  ;;  %v2474_v44 = vpop.f32.mrf.mxu0  ;;  %2850 = vmatprep.subr.bf16.mxu0 %v4934_v35  ;;  %v4368_v29 = vcombine.high %v410_v24, %v410_v24  ;;  %v4972_v36 = vld [vmem:[%s6967_s4 + $0x50c] ss:$48 sps:$4 sm:$0xff]  }
 0x141   :  { %v2423_v43 = vpop.f32.mrf.mxu1  ;;  %2801 = vmatprep.subr.bf16.mxu1 %v4931_v31  ;;  %2827 = vmatprep.mubr.bf16.mxu1 %v5249_v55  ;;  %v4943_v55 = vld [vmem:[%s6967_s4 + $0xec] ss:$48 sps:$4 sm:$0xff]   ;;  %v4965_v31 = vld [vmem:[%s6967_s4 + $0x568] ss:$48 sps:$4 sm:$0xff]   ;;  %v2280_v35 = vsel %vm2248_vm0, %v4367_v30, 0 }
 0x142   :  { %v6182_v47 = vadd.f32 %v2474_v44, %v2423_v43  ;;  %v2476_v50 = vpop.f32.mrf.mxu0  ;;  %2736 = vmatmul.mubr.bf16.gmra.mxu0 %v5388_v38  ;;  %v4975_v37 = vld [vmem:[%s6967_s4 + $0xb0c] ss:$48 sps:$4 sm:$0xff]   ;;  %v5010_v30 = vld [vmem:[%s6968_s5 + $0x40] ss:$16 sps:$4 sm:$0xff]  }
 0x143   :  { %v2425_v48 = vpop.f32.mrf.mxu1  ;;  %2851 = vmatpush1.bf16.msra.mxu0 %v4932_v42  ;;  %4385 = vmatprep.mubr.msk.bf16.mxu0 %vm2241_vm1, %v5230_v49  ;;  %v4949_v49 = vld [vmem:[%s6967_s4 + $0x8c] ss:$48 sps:$4 sm:$0xff]   ;;  %v4973_v42 = vld [vmem:[%s6967_s4 + $0xb08] ss:$48 sps:$4 sm:$0xff]  }
 0x144   :  { %v6186_v51 = vadd.f32 %v2476_v50, %v2425_v48  ;;  %2802 = vmatpush1.bf16.msra.mxu1 %v4929_v41  ;;  %v2478_v56 = vpop.f32.mrf.mxu0  ;;  %2852 = vmatprep.subr.bf16.mxu0 %v4940_v46  ;;  %v4970_v41 = vld [vmem:[%s6967_s4 + $0x508] ss:$48 sps:$4 sm:$0xff]   ;;  %v4978_v43 = vld [vmem:[%s6967_s4 + $0x4ac] ss:$48 sps:$4 sm:$0xff]  }
 0x145   :  { %v2427_v54 = vpop.f32.mrf.mxu1  ;;  %2803 = vmatprep.subr.bf16.mxu1 %v4937_v45  ;;  %v4981_v44 = vld [vmem:[%s6967_s4 + $0xaac] ss:$48 sps:$4 sm:$0xff]   ;;  %v4976_v45 = vld [vmem:[%s6967_s4 + $0x4a8] ss:$48 sps:$4 sm:$0xff]  }
 0x146   :  { %v6200_v58 = vadd.f32 %v2478_v56, %v2427_v54  ;;  %v2482_v60 = vpop.f32.mrf.mxu0  ;;  %v4979_v46 = vld [vmem:[%s6967_s4 + $0xaa8] ss:$48 sps:$4 sm:$0xff]   ;;  %v4984_v48 = vld [vmem:[%s6967_s4 + $0x44c] ss:$48 sps:$4 sm:$0xff]  }
 0x147   :  { %v2431_v59 = vpop.f32.mrf.mxu1  ;;  %2853 = vmatpush1.bf16.msra.mxu0 %v4938_v53  ;;  %v4987_v50 = vld [vmem:[%s6967_s4 + $0xa4c] ss:$48 sps:$4 sm:$0xff]   ;;  %v4985_v53 = vld [vmem:[%s6967_s4 + $0xa48] ss:$48 sps:$4 sm:$0xff]  }
 0x148   :  { %2804 = vmatpush1.bf16.msra.mxu1 %v4935_v52  ;;  %v6210_v0 = vadd.f32 %v2482_v60, %v2431_v59  ;;  %2854 = vmatprep.subr.bf16.mxu0 %v4946_v57  ;;  %v2484_v3 = vpop.f32.mrf.mxu0  ;;  %v4982_v52 = vld [vmem:[%s6967_s4 + $0x448] ss:$48 sps:$4 sm:$0xff]   ;;  %v4990_v54 = vld [vmem:[%s6967_s4 + $0x3ec] ss:$48 sps:$4 sm:$0xff]  }
 0x149   :  { %2805 = vmatprep.subr.bf16.mxu1 %v4943_v55  ;;  %v2433_v2 = vpop.f32.mrf.mxu1  ;;  %v4993_v56 = vld [vmem:[%s6967_s4 + $0x9ec] ss:$48 sps:$4 sm:$0xff]   ;;  %v4988_v55 = vld [vmem:[%s6967_s4 + $0x3e8] ss:$48 sps:$4 sm:$0xff]  }
 0x14a   :  { %v6218_v4 = vadd.f32 %v2484_v3, %v2433_v2  ;;  %v2486_v7 = vpop.f32.mrf.mxu0  ;;  %v4991_v57 = vld [vmem:[%s6967_s4 + $0x9e8] ss:$48 sps:$4 sm:$0xff]   ;;  %v4996_v59 = vld [vmem:[%s6967_s4 + $0x38c] ss:$48 sps:$4 sm:$0xff]  }
 0x14b   :  { %v2435_v6 = vpop.f32.mrf.mxu1  ;;  %2855 = vmatpush1.bf16.msra.mxu0 %v4944_v62  ;;  %v4999_v60 = vld [vmem:[%s6967_s4 + $0x98c] ss:$48 sps:$4 sm:$0xff]   ;;  %v4994_v2 = vld [vmem:[%s6967_s4 + $0x388] ss:$48 sps:$4 sm:$0xff]  }
 0x14c   :  { %2806 = vmatpush1.bf16.msra.mxu1 %v4941_v61  ;;  %2856 = vmatprep.subr.bf16.mxu0 %v4952_v1  ;;  %v2487_v17 = vpop.f32.mrf.mxu0  ;;  %v2963_v61 = vld [vmem:[%s6968_s5 + $0x60] sm:$0xff]  ;;  %v2964_v62 = vld [vmem:[%s6968_s5 + $0x68] sm:$0xff] }
 0x14d   :  { %2807 = vmatprep.subr.bf16.mxu1 %v4949_v49  ;;  %v2436_v16 = vpop.f32.mrf.mxu1  ;;  %v5051_v49 = vmov 65535   ;;  %v4997_v3 = vld [vmem:[%s6967_s4 + $0x988] ss:$48 sps:$4 sm:$0xff]   ;;  %v5002_v6 = vld [vmem:[%s6967_s4 + $0x32c] ss:$48 sps:$4 sm:$0xff]  }
 0x14e   :  { %v3091_v1 = vsel %vm2248_vm0, 4294967295, %v5051_v49  ;;  %v5005_v7 = vld [vmem:[%s6967_s4 + $0x92c] ss:$48 sps:$4 sm:$0xff]   ;;  %v5000_v16 = vld [vmem:[%s6967_s4 + $0x328] ss:$48 sps:$4 sm:$0xff]  }
 0x14f   :  { %2857 = vmatpush1.bf16.msra.mxu0 %v4950_v12  ;;  %v4402_v12 = vcombine.high %v2964_v62, %v2964_v62  ;;  %v5003_v17 = vld [vmem:[%s6967_s4 + $0x928] ss:$48 sps:$4 sm:$0xff]  }
 0x150   :  { %2808 = vmatpush1.bf16.msra.mxu1 %v4947_v11  ;;  %2858 = vmatprep.subr.bf16.mxu0 %v4958_v14  ;;  %v4400_v11 = vcombine.high %v2963_v61, %v2963_v61  ;;  %v3707_v14 = vld [vmem:[%s6965_s2] sm:$0xff]  ;;  %v3708_v24 = vld [vmem:[%s6965_s2 + $0x8] sm:$0xff] }
 0x151   :  { %2809 = vmatprep.subr.bf16.mxu1 %v4955_v13  ;;  %v3092_v13 = vsel %vm3090_vm2, %v3091_v1, 0  ;;  %3712 = vperm.xlu0 %4452, %v3707_v14   ;;  %v2899_v1 = vld [vmem:[%s6964_s1 + $0x10] sm:$0xff] }
 0x153   :  { %2859 = vmatpush1.bf16.msra.mxu0 %v4956_v21  ;;  %v4401_v21 = vcombine.low %v2964_v62, %v2964_v62 }
 0x154   :  { %2810 = vmatpush1.bf16.msra.mxu1 %v4953_v20  ;;  %2860 = vmatprep.subr.bf16.mxu0 %v4964_v23  ;;  %v4399_v20 = vcombine.low %v2963_v61, %v2963_v61  ;;  %v3103_v23 = vand.u32 %v4402_v12, %v3092_v13 }
 0x155   :  { %2811 = vmatprep.subr.bf16.mxu1 %v4961_v22  ;;  %v3097_v22 = vand.u32 %v4400_v11, %v3092_v13  ;;  %3717 = vperm.xlu0 %4452, %v3708_v24   ;;  %v2903_v24 = vld [vmem:[%s6964_s1 + $0x30] sm:$0xff] }
 0x157   :  { %2861 = vmatpush1.bf16.msra.mxu0 %v4962_v27  ;;  %v3100_v27 = vand.u32 %v4401_v21, %v3092_v13  ;;  %v2902_v21 = vld [vmem:[%s6964_s1 + $0x28] sm:$0xff] }
 0x158   :  { %2812 = vmatpush2.bf16.msra.mxu1 %v4959_v25  ;;  %4384 = vmatprep.subr.msk.bf16.mxu0 %vm2248_vm0, %v4368_v29  ;;  %v3094_v25 = vand.u32 %v4399_v20, %v3092_v13  ;;  %v5015_v29 = vld [vmem:[%s6968_s5 + $0x4c] ss:$16 sps:$4 sm:$0xff]   ;;  %v2901_v20 = vld [vmem:[%s6964_s1 + $0x20] sm:$0xff] }
 0x159   :  { %2813 = vmatprep.subr.bf16.mxu1 %v4967_v28  ;;  %v5012_v28 = vld [vmem:[%s6968_s5 + $0x44] ss:$16 sps:$4 sm:$0xff]  }
 0x15b   :  { %2865 = vmatpush2.bf16.msra.mxu0 %v2280_v35  ;;  %v5018_v35 = vld [vmem:[%s6968_s5 + $0x24] ss:$16 sps:$4 sm:$0xff]  }
 0x15c   :  { %2814 = vmatpush2.bf16.msra.mxu1 %v4965_v31  ;;  %2866 = vmatprep.subr.bf16.mxu0 %v4975_v37  ;;  %v5013_v31 = vld [vmem:[%s6968_s5 + $0x48] ss:$16 sps:$4 sm:$0xff]   ;;  %v5016_v37 = vld [vmem:[%s6968_s5 + $0x20] ss:$16 sps:$4 sm:$0xff]  }
 0x15d   :  { %2815 = vmatprep.subr.bf16.mxu1 %v4972_v36 }
 0x15f   :  { %2867 = vmatpush2.bf16.msra.mxu0 %v4973_v42 }
 0x160   :  { %2816 = vmatpush2.bf16.msra.mxu1 %v4970_v41  ;;  %2868 = vmatprep.subr.bf16.mxu0 %v4981_v44  ;;  %v5019_v41 = vld [vmem:[%s6968_s5 + $0x28] ss:$16 sps:$4 sm:$0xff]  }
 0x161   :  { %2817 = vmatprep.subr.bf16.mxu1 %v4978_v43 }
 0x163   :  { %2869 = vmatpush2.bf16.msra.mxu0 %v4979_v46 }
 0x164   :  { %2818 = vmatpush2.bf16.msra.mxu1 %v4976_v45  ;;  %2870 = vmatprep.subr.bf16.mxu0 %v4987_v50  ;;  %v5022_v45 = vld [vmem:[%s6968_s5] ss:$16 sps:$4 sm:$0xff]  }
 0x165   :  { %2819 = vmatprep.subr.bf16.mxu1 %v4984_v48  ;;  %v5025_v48 = vld [vmem:[%s6968_s5 + $0x8] ss:$16 sps:$4 sm:$0xff]   ;;  %v2897_v50 = vld [vmem:[%s6964_s1] sm:$0xff] }
 0x167   :  { %2871 = vmatpush2.bf16.msra.mxu0 %v4985_v53 }
 0x168   :  { %2820 = vmatpush2.bf16.msra.mxu1 %v4982_v52  ;;  %2872 = vmatprep.subr.bf16.mxu0 %v4993_v56 }
 0x169   :  { %2821 = vmatprep.subr.bf16.mxu1 %v4990_v54 }
 0x16b   :  { %2873 = vmatpush2.bf16.msra.mxu0 %v4991_v57 }
 0x16c   :  { %2822 = vmatpush2.bf16.msra.mxu1 %v4988_v55  ;;  %2874 = vmatprep.subr.bf16.mxu0 %v4999_v60 }
 0x16d   :  { %2823 = vmatprep.subr.bf16.mxu1 %v4996_v59 }
 0x16f   :  { %2875 = vmatpush2.bf16.msra.mxu0 %v4997_v3 }
 0x170   :  { %2824 = vmatpush2.bf16.msra.mxu1 %v4994_v2  ;;  %2876 = vmatprep.subr.bf16.mxu0 %v5005_v7  ;;  %v2900_v2 = vld [vmem:[%s6964_s1 + $0x18] sm:$0xff] }
 0x171   :  { %2825 = vmatprep.subr.bf16.mxu1 %v5002_v6  ;;  %v2934_v12 = vpack.c.bf16 %v2900_v2, %v2899_v1 }
 0x173   :  { %2877 = vmatpush2.bf16.msra.mxu0 %v5003_v17  ;;  %v4442_v17 = vld [vmem:[%s6965_s2 + $0x20] sm:$0xff] }
 0x174   :  { %2826 = vmatpush2.bf16.msra.mxu1 %v5000_v16  ;;  %3113 = vmatprep.subr.bf16.mxu0 %v3097_v22  ;;  %v4441_v16 = vld [vmem:[%s6965_s2 + $0x18] sm:$0xff]  ;;  %v4443_v22 = vld [vmem:[%s6965_s2 + $0x28] sm:$0xff] }
 0x175   :  { %3326 = vmatprep.subr.bf16.mxu1 %v3103_v23  ;;  %3832 = vperm.xlu0 %4452, %v4442_v17   ;;  %v2935_v23 = vpack.c.bf16 %v2902_v21, %v2901_v20  ;;  %v2915_v17 = vld [vmem:[%s6964_s1 + $0x90] sm:$0xff]  ;;  %v2916_v20 = vld [vmem:[%s6964_s1 + $0x98] sm:$0xff] }
 0x176   :  { %2879 = vmatmul.mubr.bf16.vlgmr.msra.gmra.mxu0 %v5306_v10  ;;  %v5021_v10 = vld [vmem:[%s6968_s5 + $0x2c] ss:$16 sps:$4 sm:$0xff]  }
 0x177   :  { %2828 = vmatmul.mubr.bf16.vlgmr.msra.gmra.mxu1 %v5321_v15  ;;  %3114 = vmatpush1.bf16.msra.mxu0 %v3094_v25  ;;  %v3709_v15 = vld [vmem:[%s6965_s2 + $0x10] sm:$0xff]  ;;  %v2904_v25 = vld [vmem:[%s6964_s1 + $0x38] sm:$0xff] }
 0x178   :  { %3327 = vmatpush1.bf16.msra.mxu1 %v3100_v27  ;;  %3115 = vmatprep.subr.bf16.mxu0 %v5012_v28  ;;  %v2936_v27 = vpack.c.bf16 %v2904_v25, %v2903_v24  ;;  %v2905_v28 = vld [vmem:[%s6964_s1 + $0x40] sm:$0xff]  ;;  %v4445_v25 = vld [vmem:[%s6965_s2 + $0x38] sm:$0xff] }
 0x179   :  { %3328 = vmatprep.subr.bf16.mxu1 %v5015_v29  ;;  %2837 = vmatprep.mubr.bf16.mxu1 %v5372_v32  ;;  %v5024_v32 = vld [vmem:[%s6968_s5 + $0x4] ss:$16 sps:$4 sm:$0xff]   ;;  %v2906_v29 = vld [vmem:[%s6964_s1 + $0x48] sm:$0xff] }
 0x17a   :  { %4386 = vmatprep.mubr.msk.bf16.mxu0 %vm2241_vm1, %v5374_v33  ;;  %3722 = vperm.xlu1 %4453, %v3709_v15   ;;  %v5027_v33 = vld [vmem:[%s6968_s5 + $0xc] ss:$16 sps:$4 sm:$0xff]   ;;  %v2909_v15 = vld [vmem:[%s6964_s1 + $0x60] sm:$0xff] }
 0x17b   :  { %v2574_v36 = vpop.f32.mrf.mxu1  ;;  %3116 = vmatpush1.bf16.msra.mxu0 %v5010_v30  ;;  %v2937_v30 = vpack.c.bf16 %v2906_v29, %v2905_v28  ;;  %v4446_v24 = vld [vmem:[%s6965_s2 + $0x40] sm:$0xff]  ;;  %v2918_v28 = vld [vmem:[%s6964_s1 + $0xa8] sm:$0xff] }
 0x17c   :  { %3329 = vmatpush1.bf16.msra.mxu1 %v5013_v31  ;;  %3117 = vmatprep.subr.bf16.mxu0 %v5018_v35  ;;  %v2907_v31 = vld [vmem:[%s6964_s1 + $0x50] sm:$0xff]  ;;  %v2908_v35 = vld [vmem:[%s6964_s1 + $0x58] sm:$0xff] }
 0x17d   :  { %v2576_v42 = vpop.f32.mrf.mxu1  ;;  %3330 = vmatprep.subr.bf16.mxu1 %v5021_v10  ;;  %v2938_v10 = vpack.c.bf16 %v2908_v35, %v2907_v31  ;;  %v2920_v31 = vld [vmem:[%s6964_s1 + $0xb8] sm:$0xff] }
 0x17e   :  { %v2523_v43 = vpop.f32.mrf.mxu0  ;;  %2889 = vmatmul.mubr.bf16.gmra.mxu0 %v5390_v39  ;;  %3827 = vperm.xlu1 %4453, %v4441_v16   ;;  %v4444_v16 = vld [vmem:[%s6965_s2 + $0x30] sm:$0xff] }
 0x17f   :  { %v2578_v44 = vpop.f32.mrf.mxu1  ;;  %2838 = vmatmul.mubr.bf16.gmra.mxu1 %v5388_v38  ;;  %v6389_v46 = vadd.f32 %v2574_v36, %v2523_v43  ;;  %3118 = vmatpush1.bf16.msra.mxu0 %v5016_v37  ;;  %v2898_v38 = vld [vmem:[%s6964_s1 + $0x8] sm:$0xff] }
 0x180   :  { %3331 = vmatpush1.bf16.msra.mxu1 %v5019_v41  ;;  %v2525_v39 = vpop.f32.mrf.mxu0  ;;  %3119 = vmatprep.subr.bf16.mxu0 %v5024_v32  ;;  %v2933_v56 = vpack.c.bf16 %v2898_v38, %v2897_v50  ;;  %v2910_v36 = vld [vmem:[%s6964_s1 + $0x68] sm:$0xff]  ;;  %v2911_v41 = vld [vmem:[%s6964_s1 + $0x70] sm:$0xff] }
 0x181   :  { %v2580_v52 = vpop.f32.mrf.mxu1  ;;  %3332 = vmatprep.subr.bf16.mxu1 %v5027_v33  ;;  %v6400_v53 = vadd.f32 %v2576_v42, %v2525_v39  ;;  %3137 = vmatprep.mubr.bf16.mxu0 %v5050_v8  ;;  %v2939_v37 = vpack.c.bf16 %v2910_v36, %v2909_v15  ;;  %v2912_v42 = vld [vmem:[%s6964_s1 + $0x78] sm:$0xff]  ;;  %v2922_v15 = vld [vmem:[%s6964_s1 + $0xc8] sm:$0xff] }
 0x182   :  { %3350 = vmatprep.mubr.bf16.mxu1 %v5050_v8  ;;  %v2527_v54 = vpop.f32.mrf.mxu0  ;;  %3837 = vperm.xlu1 %4453, %v4443_v22   ;;  %v2940_v43 = vpack.c.bf16 %v2912_v42, %v2911_v41  ;;  %v2924_v41 = vld [vmem:[%s6964_s1 + $0xd8] sm:$0xff] }
 0x183   :  { %v2584_v55 = vpop.f32.mrf.mxu1  ;;  %v6404_v57 = vadd.f32 %v2578_v44, %v2527_v54  ;;  %3120 = vmatpush1.bf16.msra.mxu0 %v5022_v45  ;;  %v2913_v54 = vld [vmem:[%s6964_s1 + $0x80] sm:$0xff]  ;;  %3943 = vperm.xlu0 %4452, %v4444_v16   ;;  %v2930_v16 = vld [vmem:[%s6964_s1 + $0x108] sm:$0xff] }
 0x184   :  { %3333 = vmatpush1.bf16.msra.mxu1 %v5025_v48  ;;  %v2529_v59 = vpop.f32.mrf.mxu0 }
 0x185   :  { %v2586_v60 = vpop.f32.mrf.mxu1  ;;  %v6406_v61 = vadd.f32 %v2580_v52, %v2529_v59 }
 0x186   :  { %4403 = vmatmul.mubr.msk.bf16.vlgmr.msra.gmra.mxu0 %vm3035_vm3, %v2933_v56  ;;  %v2533_v62 = vpop.f32.mrf.mxu0  ;;  %3948 = vperm.xlu1 %4453, %v4445_v25  }
 0x187   :  { %4421 = vmatmul.mubr.msk.bf16.vlgmr.msra.gmra.mxu1 %vm3035_vm3, %v2933_v56  ;;  %v2588_v49 = vpop.f32.mrf.mxu1  ;;  %3147 = vmatprep.mubr.bf16.mxu0 %v5050_v8  ;;  %v6418_v3 = vadd.f32 %v2584_v55, %v2533_v62  ;;  %v2914_v56 = vld [vmem:[%s6964_s1 + $0x88] sm:$0xff] }
 0x188   :  { %3360 = vmatprep.mubr.bf16.mxu1 %v5050_v8  ;;  %v2535_v6 = vpop.f32.mrf.mxu0  ;;  %v2941_v62 = vpack.c.bf16 %v2914_v56, %v2913_v54  ;;  %3953 = vperm.xlu0 %4452, %v4446_v24  }
 0x189   :  { %v2589_v7 = vpop.f32.mrf.mxu1  ;;  %v6420_v11 = vadd.f32 %v2586_v60, %v2535_v6 }
 0x18a   :  { %v2537_v13 = vpop.f32.mrf.mxu0 }
 0x18c   :  { %v2538_v14 = vpop.f32.mrf.mxu0 }
 0x18e   :  { %4404 = vmatmul.mubr.msk.bf16.gmra.mxu0 %vm3035_vm3, %v2934_v12 }
 0x18f   :  { %4422 = vmatmul.mubr.msk.bf16.gmra.mxu1 %vm3035_vm3, %v2934_v12  ;;  %3157 = vmatprep.mubr.bf16.mxu0 %v5050_v8 }
 0x190   :  { %3370 = vmatprep.mubr.bf16.mxu1 %v5050_v8 }
 0x196   :  { %4405 = vmatmul.mubr.msk.bf16.gmra.mxu0 %vm3035_vm3, %v2935_v23 }
 0x197   :  { %4423 = vmatmul.mubr.msk.bf16.gmra.mxu1 %vm3035_vm3, %v2935_v23  ;;  %3167 = vmatprep.mubr.bf16.mxu0 %v5050_v8  ;;  %v2942_v23 = vpack.c.bf16 %v2916_v20, %v2915_v17 }
 0x198   :  { %3380 = vmatprep.mubr.bf16.mxu1 %v5050_v8 }
 0x19e   :  { %4406 = vmatmul.mubr.msk.bf16.gmra.mxu0 %vm3035_vm3, %v2936_v27 }
 0x19f   :  { %4424 = vmatmul.mubr.msk.bf16.gmra.mxu1 %vm3035_vm3, %v2936_v27  ;;  %3177 = vmatprep.mubr.bf16.mxu0 %v5050_v8  ;;  %v2917_v27 = vld [vmem:[%s6964_s1 + $0xa0] sm:$0xff] }
 0x1a0   :  { %3390 = vmatprep.mubr.bf16.mxu1 %v5050_v8  ;;  %v2943_v29 = vpack.c.bf16 %v2918_v28, %v2917_v27 }
 0x1a6   :  { %4407 = vmatmul.mubr.msk.bf16.gmra.mxu0 %vm3035_vm3, %v2937_v30 }
 0x1a7   :  { %4425 = vmatmul.mubr.msk.bf16.gmra.mxu1 %vm3035_vm3, %v2937_v30  ;;  %3187 = vmatprep.mubr.bf16.mxu0 %v5050_v8  ;;  %v2919_v30 = vld [vmem:[%s6964_s1 + $0xb0] sm:$0xff] }
 0x1a8   :  { %3400 = vmatprep.mubr.bf16.mxu1 %v5050_v8  ;;  %v2944_v35 = vpack.c.bf16 %v2920_v31, %v2919_v30  ;;  %v2931_v31 = vld [vmem:[%s6964_s1 + $0x110] sm:$0xff] }
 0x1ae   :  { %4408 = vmatmul.mubr.msk.bf16.gmra.mxu0 %vm3035_vm3, %v2938_v10 }
 0x1af   :  { %4426 = vmatmul.mubr.msk.bf16.gmra.mxu1 %vm3035_vm3, %v2938_v10  ;;  %3197 = vmatprep.mubr.bf16.mxu0 %v5050_v8  ;;  %v2921_v10 = vld [vmem:[%s6964_s1 + $0xc0] sm:$0xff] }
 0x1b0   :  { %3410 = vmatprep.mubr.bf16.mxu1 %v5050_v8  ;;  %v2945_v36 = vpack.c.bf16 %v2922_v15, %v2921_v10 }
 0x1b6   :  { %4409 = vmatmul.mubr.msk.bf16.gmra.mxu0 %vm3035_vm3, %v2939_v37 }
 0x1b7   :  { %4427 = vmatmul.mubr.msk.bf16.gmra.mxu1 %vm3035_vm3, %v2939_v37  ;;  %3207 = vmatprep.mubr.bf16.mxu0 %v5050_v8  ;;  %v2923_v37 = vld [vmem:[%s6964_s1 + $0xd0] sm:$0xff] }
 0x1b8   :  { %3420 = vmatprep.mubr.bf16.mxu1 %v5050_v8  ;;  %v2946_v42 = vpack.c.bf16 %v2924_v41, %v2923_v37 }
 0x1ba   :  { %v2676_v33 = vpop.f32.mrf.mxu0 }
 0x1bb   :  { %v2625_v32 = vpop.f32.mrf.mxu1 }
 0x1bc   :  { %v6491_v44 = vadd.f32 %v2676_v33, %v2625_v32  ;;  %v2678_v48 = vpop.f32.mrf.mxu0  ;;  %v2925_v32 = vld [vmem:[%s6964_s1 + $0xe0] sm:$0xff]  ;;  %v2926_v33 = vld [vmem:[%s6964_s1 + $0xe8] sm:$0xff] }
 0x1bd   :  { %v2627_v45 = vpop.f32.mrf.mxu1 }
 0x1be   :  { %v6493_v50 = vadd.f32 %v2678_v48, %v2627_v45  ;;  %v2680_v39 = vpop.f32.mrf.mxu0  ;;  %4410 = vmatmul.mubr.msk.bf16.gmra.mxu0 %vm3035_vm3, %v2940_v43  ;;  %v2927_v48 = vld [vmem:[%s6964_s1 + $0xf0] sm:$0xff] }
 0x1bf   :  { %v2629_v38 = vpop.f32.mrf.mxu1  ;;  %4428 = vmatmul.mubr.msk.bf16.gmra.mxu1 %vm3035_vm3, %v2940_v43  ;;  %3217 = vmatprep.mubr.bf16.mxu0 %v5050_v8  ;;  %v2947_v43 = vpack.c.bf16 %v2926_v33, %v2925_v32 }
 0x1c0   :  { %v6497_v52 = vadd.f32 %v2680_v39, %v2629_v38  ;;  %3430 = vmatprep.mubr.bf16.mxu1 %v5050_v8  ;;  %v2682_v59 = vpop.f32.mrf.mxu0  ;;  %v2928_v38 = vld [vmem:[%s6964_s1 + $0xf8] sm:$0xff] }
 0x1c1   :  { %v2631_v55 = vpop.f32.mrf.mxu1 }
 0x1c2   :  { %v6507_v60 = vadd.f32 %v2682_v59, %v2631_v55  ;;  %v2686_v1 = vpop.f32.mrf.mxu0  ;;  %v2948_v55 = vpack.c.bf16 %v2928_v38, %v2927_v48 }
 0x1c3   :  { %v2635_v49 = vpop.f32.mrf.mxu1 }
 0x1c4   :  { %v6509_v2 = vadd.f32 %v2686_v1, %v2635_v49  ;;  %v2688_v7 = vpop.f32.mrf.mxu0 }
 0x1c5   :  { %v2637_v6 = vpop.f32.mrf.mxu1 }
 0x1c6   :  { %v6511_v12 = vadd.f32 %v2688_v7, %v2637_v6  ;;  %4411 = vmatmul.mubr.msk.bf16.gmra.mxu0 %vm3035_vm3, %v2941_v62  ;;  %v2690_v14 = vpop.f32.mrf.mxu0 }
 0x1c7   :  { %4429 = vmatmul.mubr.msk.bf16.gmra.mxu1 %vm3035_vm3, %v2941_v62  ;;  %v2639_v13 = vpop.f32.mrf.mxu1  ;;  %3227 = vmatprep.mubr.bf16.mxu0 %v5050_v8  ;;  %v2929_v14 = vld [vmem:[%s6964_s1 + $0x100] sm:$0xff] }
 0x1c8   :  { %3440 = vmatprep.mubr.bf16.mxu1 %v5050_v8  ;;  %v2691_v22 = vpop.f32.mrf.mxu0 }
 0x1c9   :  { %v2640_v21 = vpop.f32.mrf.mxu1  ;;  %v2949_v22 = vpack.c.bf16 %v2930_v16, %v2929_v14 }
 0x1ce   :  { %4412 = vmatmul.mubr.msk.bf16.gmra.mxu0 %vm3035_vm3, %v2942_v23 }
 0x1cf   :  { %4430 = vmatmul.mubr.msk.bf16.gmra.mxu1 %vm3035_vm3, %v2942_v23  ;;  %3237 = vmatprep.mubr.bf16.mxu0 %v5050_v8 }
 0x1d0   :  { %3450 = vmatprep.mubr.bf16.mxu1 %v5050_v8 }
 0x1d6   :  { %4413 = vmatmul.mubr.msk.bf16.gmra.mxu0 %vm3035_vm3, %v2943_v29 }
 0x1d7   :  { %4431 = vmatmul.mubr.msk.bf16.gmra.mxu1 %vm3035_vm3, %v2943_v29  ;;  %3247 = vmatprep.mubr.bf16.mxu0 %v5050_v8 }
 0x1d8   :  { %3460 = vmatprep.mubr.bf16.mxu1 %v5050_v8 }
 0x1de   :  { %4414 = vmatmul.mubr.msk.bf16.gmra.mxu0 %vm3035_vm3, %v2944_v35 }
 0x1df   :  { %4432 = vmatmul.mubr.msk.bf16.gmra.mxu1 %vm3035_vm3, %v2944_v35  ;;  %3257 = vmatprep.mubr.bf16.mxu0 %v5050_v8  ;;  %v2932_v35 = vld [vmem:[%s6964_s1 + $0x118] sm:$0xff] }
 0x1e0   :  { %3470 = vmatprep.mubr.bf16.mxu1 %v5050_v8  ;;  %v2950_v15 = vpack.c.bf16 %v2932_v35, %v2931_v31 }
 0x1e6   :  { %4415 = vmatmul.mubr.msk.bf16.gmra.mxu0 %vm3035_vm3, %v2945_v36 }
 0x1e7   :  { %4433 = vmatmul.mubr.msk.bf16.gmra.mxu1 %vm3035_vm3, %v2945_v36  ;;  %3267 = vmatprep.mubr.bf16.mxu0 %v5050_v8 }
 0x1e8   :  { %3480 = vmatprep.mubr.bf16.mxu1 %v5050_v8 }
 0x1ee   :  { %4416 = vmatmul.mubr.msk.bf16.gmra.mxu0 %vm3035_vm3, %v2946_v42 }
 0x1ef   :  { %4434 = vmatmul.mubr.msk.bf16.gmra.mxu1 %vm3035_vm3, %v2946_v42  ;;  %3277 = vmatprep.mubr.bf16.mxu0 %v5050_v8 }
 0x1f0   :  { %3490 = vmatprep.mubr.bf16.mxu1 %v5050_v8 }
 0x1f6   :  { %4417 = vmatmul.mubr.msk.bf16.gmra.mxu0 %vm3035_vm3, %v2947_v43 }
 0x1f7   :  { %v2778_v45 = vpop.f32.mrf.mxu1  ;;  %4435 = vmatmul.mubr.msk.bf16.gmra.mxu1 %vm3035_vm3, %v2947_v43  ;;  %3287 = vmatprep.mubr.bf16.mxu0 %v5050_v8 }
 0x1f8   :  { %3500 = vmatprep.mubr.bf16.mxu1 %v5050_v8 }
 0x1f9   :  { %v2780_v39 = vpop.f32.mrf.mxu1 }
 0x1fa   :  { %v2727_v54 = vpop.f32.mrf.mxu0 }
 0x1fb   :  { %v2782_v56 = vpop.f32.mrf.mxu1  ;;  %v6592_v59 = vadd.f32 %v2778_v45, %v2727_v54 }
 0x1fc   :  { %v2729_v62 = vpop.f32.mrf.mxu0 }
 0x1fd   :  { %v2784_v49 = vpop.f32.mrf.mxu1  ;;  %v6594_v1 = vadd.f32 %v2780_v39, %v2729_v62 }
 0x1fe   :  { %v2731_v6 = vpop.f32.mrf.mxu0  ;;  %4418 = vmatmul.mubr.msk.bf16.gmra.mxu0 %vm3035_vm3, %v2948_v55 }
 0x1ff   :  { %4436 = vmatmul.mubr.msk.bf16.gmra.mxu1 %vm3035_vm3, %v2948_v55  ;;  %v2788_v7 = vpop.f32.mrf.mxu1  ;;  %v6598_v13 = vadd.f32 %v2782_v56, %v2731_v6  ;;  %3297 = vmatprep.mubr.bf16.mxu0 %v5050_v8  ;;  %v3533_v55 = vlaneseq }
 0x200   :  { %3510 = vmatprep.mubr.bf16.mxu1 %v5050_v8  ;;  %v2733_v17 = vpop.f32.mrf.mxu0 }
 0x201   :  { %v2790_v20 = vpop.f32.mrf.mxu1  ;;  %v6608_v21 = vadd.f32 %v2784_v49, %v2733_v17  ;;  %v3534_v14 = vshrl.u32 %v3533_v55, 7  ;;  %v2377_v55 = vadd.f32 %v6005_v18, %v6007_v19 }
 0x202   :  { %v2737_v23 = vpop.f32.mrf.mxu0 }
 0x203   :  { %v2792_v24 = vpop.f32.mrf.mxu1  ;;  %v6610_v25 = vadd.f32 %v2788_v7, %v2737_v23  ;;  %v3535_v23 = vsub.s32 0, %v3534_v14  ;;  %v3543_v31 = vsub.s32 2, %v3534_v14  ;;  %v3547_v35 = vsub.s32 3, %v3534_v14 }
 0x204   :  { %v2739_v27 = vpop.f32.mrf.mxu0  ;;  %v3539_v24 = vsub.s32 1, %v3534_v14 }
 0x205   :  { %v2793_v28 = vpop.f32.mrf.mxu1  ;;  %v6612_v29 = vadd.f32 %v2790_v20, %v2739_v27 }
 0x206   :  { %4419 = vmatmul.mubr.msk.bf16.gmra.mxu0 %vm3035_vm3, %v2949_v22  ;;  %v2741_v30 = vpop.f32.mrf.mxu0 }
 0x207   :  { %4437 = vmatmul.mubr.msk.bf16.gmra.mxu1 %vm3035_vm3, %v2949_v22  ;;  %3307 = vmatprep.mubr.bf16.mxu0 %v5050_v8  ;;  %v3531_v30 = vld [vmem:[%s6966_s3] ss:$4 sm:$0xf] }
 0x208   :  { %3520 = vmatprep.mubr.bf16.mxu1 %v5050_v8  ;;  %v2742_v10 = vpop.f32.mrf.mxu0 }
 0x20e   :  { %4420 = vmatmul.mubr.msk.bf16.gmra.mxu0 %vm3035_vm3, %v2950_v15 }
 0x20f   :  { %4438 = vmatmul.mubr.msk.bf16.gmra.mxu1 %vm3035_vm3, %v2950_v15 }
 0x236   :  { %v6628_v37 = vpop.f32.mrf.mxu0 }
 0x237   :  { %v6626_v36 = vpop.f32.mrf.mxu1 }
 0x238   :  { %v6632_v8 = vpop.f32.mrf.mxu0 }
 0x239   :  { %v6630_v41 = vpop.f32.mrf.mxu1 }
 0x23a   :  { %v6636_v32 = vpop.f32.mrf.mxu0 }
 0x23b   :  { %v6634_v42 = vpop.f32.mrf.mxu1 }
 0x23c   :  { %v6640_v43 = vpop.f32.mrf.mxu0 }
 0x23d   :  { %v6638_v33 = vpop.f32.mrf.mxu1 }
 0x23e   :  { %v6644_v48 = vpop.f32.mrf.mxu0 }
 0x23f   :  { %v6642_v45 = vpop.f32.mrf.mxu1 }
 0x240   :  { %v6648_v39 = vpop.f32.mrf.mxu0 }
 0x241   :  { %v6646_v38 = vpop.f32.mrf.mxu1 }
 0x242   :  { %v2894_v56 = vpop.f32.mrf.mxu0 }
 0x243   :  { %v2843_v54 = vpop.f32.mrf.mxu1  ;;  %v3540_v56 = vrot.slane %v3531_v30, %v3539_v24 }
 0x244   :  { %v2895_v49 = vpop.f32.mrf.mxu0  ;;  %v3536_v54 = vrot.slane %v3531_v30, %v3535_v23 }
 0x245   :  { %v2844_v62 = vpop.f32.mrf.mxu1  ;;  %v6690_v18 = vadd.f32 %v3540_v56, %v5978_v5 }
 0x246   :  { %v6650_v6 = vpop.f32.mrf.mxu0  ;;  %v4439_v62 = vld [vmem:[%s6966_s3 + $0x1] ss:$4 sm:$0xf]  ;;  %v6693_v19 = vadd.f32 %v3536_v54, %v5985_v9 }
 0x247   :  { %v6652_v7 = vpop.f32.mrf.mxu1  ;;  %7021 = vst [vmem:[#allocation17_spill] sm:$0xff] %v6690_v18  ;;  %v3579_v5 = vrot.slane %v4439_v62, %v3543_v31  ;;  %v3583_v18 = vrot.slane %v4439_v62, %v3547_v35 }
 0x248   :  { %v6654_v16 = vpop.f32.mrf.mxu0  ;;  %7022 = vst [vmem:[#allocation18_spill] sm:$0xff] %v6693_v19 }
 0x249   :  { %v6656_v17 = vpop.f32.mrf.mxu1 }
 0x24a   :  { %7009 = vst [vmem:[#allocation5_spill] sm:$0xff] %v6656_v17  ;;  %v6658_v20 = vpop.f32.mrf.mxu0  ;;  %v6687_v17 = vadd.f32 %v3536_v54, %v5964_v63  ;;  %v6708_v63 = vadd.f32 %v3540_v56, %v6032_v34 }
 0x24b   :  { %7010 = vst [vmem:[#allocation6_spill] sm:$0xff] %v6658_v20  ;;  %v6660_v22 = vpop.f32.mrf.mxu1  ;;  %v3575_v20 = vrot.slane %v4439_v62, %v3539_v24 }
 0x24c   :  { %7011 = vst [vmem:[#allocation7_spill] sm:$0xff] %v6660_v22  ;;  %v6662_v27 = vpop.f32.mrf.mxu0  ;;  %v3548_v22 = vrot.slane %v3531_v30, %v3547_v35  ;;  %7020 = vst [vmem:[#allocation16_spill] sm:$0xff] %v6687_v17 }
 0x24d   :  { %7012 = vst [vmem:[#allocation8_spill] sm:$0xff] %v6662_v27  ;;  %v6664_v28 = vpop.f32.mrf.mxu1  ;;  %v3544_v27 = vrot.slane %v3531_v30, %v3543_v31  ;;  %v4440_v30 = vld [vmem:[%s6966_s3 + $0x2] ss:$4 sm:$0xf]  ;;  %7027 = vst [vmem:[#allocation23_spill] sm:$0xff] %v6708_v63  ;;  %s5052_s3 = smov [#allocation2]  }
 0x24e   :  { %7013 = vst [vmem:[#allocation9_spill] sm:$0xff] %v6664_v28  ;;  %v6669_v10 = vpop.f32.mrf.mxu0  ;;  %s3986_s21 = sshll.u32 %s5052_s3, 4  ;;  %s3987_s21 = int_to_ptr.vmem [resolvable:$true] %s3986_s21 }
 0x24f   :  { %7014 = vst [vmem:[#allocation10_spill] sm:$0xff] %v6669_v10  ;;  %v6671_v15 = vpop.f32.mrf.mxu1  ;;  %v6711_v9 = vadd.f32 %v3544_v27, %v6168_v40  ;;  %v6727_v34 = vadd.f32 %v3544_v27, %v6210_v0  ;;  %v3606_v40 = vrot.slane %v4440_v30, %v3535_v23  ;;  %s5028_s22 = scalar_lea.vmem %s3987_s21, 4608  ;;  %p5033_p1 = scmp.lt.s32.totalorder %s3987_s21, %s3987_s21 }
 0x250   :  { %7015 = vst [vmem:[#allocation11_spill] sm:$0xff] %v6671_v15  ;;  %v6678_v49 = vpop.f32.mrf.mxu0  ;;  %v3571_v15 = vrot.slane %v4439_v62, %v3535_v23  ;;  %v6742_v62 = vadd.f32 %v3575_v20, %v6406_v61  ;;  %v6751_v23 = vadd.f32 %v3579_v5, %v6491_v44  ;;  %v2883_v61 = vadd.f32 %v6632_v8, %v6630_v41  ;;  %p5029_p0 = scmp.ne.s32.totalorder %s3987_s21, %s5028_s22  ;;  %p5034_p2 = scmp.lt.s32.totalorder %s5028_s22, %s5028_s22 }
 0x251   :  { %7016 = vst [vmem:[#allocation12_spill] sm:$0xff] %v6678_v49  ;;  %v6680_v28 = vpop.f32.mrf.mxu1  ;;  %v6695_v49 = vadd.f32 %v3540_v56, %v2377_v55  ;;  %7028 = vst [vmem:[#allocation24_spill] sm:$0xff] %v6711_v9  ;;  %v6714_v55 = vadd.f32 %v3548_v22, %v6182_v47  ;;  %v3610_v56 = vrot.slane %v4440_v30, %v3539_v24 }
 0x252   :  { %7017 = vst [vmem:[#allocation13_spill] sm:$0xff] %v6680_v28  ;;  %v6682_v14 = vpop.f32.mrf.mxu0  ;;  %7032 = vst [vmem:[#allocation28_spill] sm:$0xff] %v6727_v34  ;;  %v6733_v47 = vadd.f32 %v3571_v15, %v6389_v46  ;;  %v3618_v46 = vrot.slane %v4440_v30, %v3547_v35  ;;  %v2891_v44 = vadd.f32 %v6644_v48, %v6642_v45  ;;  %p5035_p3 = por %p5034_p2, %p5033_p1 }
 0x253   :  { %7018 = vst [vmem:[#allocation14_spill] sm:$0xff] %v6682_v14  ;;  %v6684_v10 = vpop.f32.mrf.mxu1  ;;  %7023 = vst [vmem:[#allocation19_spill] sm:$0xff] %v6695_v49  ;;  %v6705_v14 = vadd.f32 %v3536_v54, %v6021_v26  ;;  %v6717_v49 = vadd.f32 %v3544_v27, %v6186_v51  ;;  %v6730_v54 = vadd.f32 %v3548_v22, %v6218_v4 }
 0x254   :  { %7019 = vst [vmem:[#allocation15_spill] sm:$0xff] %v6684_v10  ;;  %v6700_v28 = vpop.f32.mrf.mxu0  ;;  %7029 = vst [vmem:[#allocation25_spill] sm:$0xff] %v6714_v55  ;;  %v6736_v51 = vadd.f32 %v3575_v20, %v6400_v53  ;;  %v6745_v27 = vadd.f32 %v3571_v15, %v6418_v3  ;;  %v6748_v4 = vadd.f32 %v3575_v20, %v6420_v11  ;;  %p5036_p4 = pnand %p5035_p3, %p5029_p0 }
 0x255   :  { %7024 = vst [vmem:[#allocation20_spill] sm:$0xff] %v6700_v28  ;;  %v6702_v10 = vpop.f32.mrf.mxu1  ;;  %7026 = vst [vmem:[#allocation22_spill] sm:$0xff] %v6705_v14  ;;  %v6720_v28 = vadd.f32 %v3548_v22, %v6200_v58  ;;  %v6739_v58 = vadd.f32 %v3571_v15, %v6404_v57  ;;  %v3614_v22 = vrot.slane %v4440_v30, %v3543_v31  ;;  %v7045_v15 = vld [vmem:[#allocation5_spill] sm:$0xff] }
 0x256   :  { %7025 = vst [vmem:[#allocation21_spill] sm:$0xff] %v6702_v10  ;;  %7030 = vst [vmem:[#allocation26_spill] sm:$0xff] %v6717_v49  ;;  %v6722_v10 = vpop.f32.mrf.mxu0  ;;  %v6754_v53 = vadd.f32 %v3583_v18, %v6493_v50  ;;  %v2881_v57 = vadd.f32 %v6628_v37, %v6626_v36  ;;  %v2885_v11 = vadd.f32 %v6636_v32, %v6634_v42 }
 0x257   :  { %7031 = vst [vmem:[#allocation27_spill] sm:$0xff] %v6720_v28  ;;  %v6724_v26 = vpop.f32.mrf.mxu1  ;;  %7033 = vst [vmem:[#allocation29_spill] sm:$0xff] %v6730_v54  ;;  %v2887_v20 = vadd.f32 %v6640_v43, %v6638_v33  ;;  %v2893_v50 = vadd.f32 %v6648_v39, %v6646_v38  ;;  %v6769_v31 = vadd.f32 %v3579_v5, %v6497_v52  ;;  %v7044_v39 = vld [vmem:[#allocation17_spill] sm:$0xff] }
 0x258   :  { %7034 = vst [vmem:[#allocation30_spill] sm:$0xff] %v6733_v47  ;;  %7035 = vst [vmem:[#allocation31_spill] sm:$0xff] %v6736_v51  ;;  %v3161_v63 = vpop.f32.mrf.mxu0  ;;  %v6772_v36 = vadd.f32 %v3583_v18, %v6507_v60  ;;  %v6775_v37 = vadd.f32 %v3579_v5, %v6509_v2  ;;  %v6778_v41 = vadd.f32 %v3583_v18, %v6511_v12 }
 0x259   :  { %7036 = vst [vmem:[#allocation32_spill] sm:$0xff] %v6739_v58  ;;  %7037 = vst [vmem:[#allocation33_spill] sm:$0xff] %v6742_v62  ;;  %v3374_v0 = vpop.f32.mrf.mxu1  ;;  %v6785_v32 = vadd.f32 %v3606_v40, %v6592_v59  ;;  %v6788_v33 = vadd.f32 %v3610_v56, %v6594_v1  ;;  %v6791_v52 = vadd.f32 %v3606_v40, %v6598_v13 }
 0x25a   :  { %7038 = vst [vmem:[#allocation34_spill] sm:$0xff] %v6745_v27  ;;  %7039 = vst [vmem:[#allocation35_spill] sm:$0xff] %v6751_v23  ;;  %v3163_v24 = vpop.f32.mrf.mxu0  ;;  %v6794_v60 = vadd.f32 %v3610_v56, %v6608_v21  ;;  %v6797_v2 = vadd.f32 %v3606_v40, %v6610_v25  ;;  %v6800_v12 = vadd.f32 %v3610_v56, %v6612_v29  ;;  %v7046_v40 = vld [vmem:[#allocation6_spill] sm:$0xff] }
 0x25b   :  { %7040 = vst [vmem:[#allocation36_spill] sm:$0xff] %v6754_v53  ;;  %v3376_v3 = vpop.f32.mrf.mxu1  ;;  %7041 = vst [vmem:[#allocation37_spill] sm:$0xff] %v6769_v31  ;;  %v6802_v43 = vadd.f32 %v3614_v22, %v2881_v57  ;;  %v6804_v45 = vadd.f32 %v3618_v46, %v2883_v61  ;;  %v6806_v1 = vadd.f32 %v3614_v22, %v2885_v11  ;;  %v7048_v57 = vld [vmem:[#allocation8_spill] sm:$0xff]  ;;  %v7049_v61 = vld [vmem:[#allocation19_spill] sm:$0xff] }
 0x25c   :  { %7042 = vst [vmem:[#allocation38_spill] sm:$0xff] %v6772_v36  ;;  %v6780_v8 = vpop.f32.mrf.mxu0  ;;  %7043 = vst [vmem:[#allocation39_spill] sm:$0xff] %v6785_v32  ;;  %v6808_v38 = vadd.f32 %v3618_v46, %v2887_v20  ;;  %v6810_v13 = vadd.f32 %v3614_v22, %v2891_v44  ;;  %v6812_v21 = vadd.f32 %v3618_v46, %v2893_v50  ;;  %v7047_v22 = vld [vmem:[#allocation7_spill] sm:$0xff]  ;;  %v7050_v11 = vld [vmem:[#allocation9_spill] sm:$0xff] }
 0x25d   :  { %v6782_v42 = vpop.f32.mrf.mxu1  ;;  %v3635_v25 = vmul.f32 %v6687_v17, %v6650_v6  ;;  %v3637_v29 = vmul.f32 %v6711_v9, %v6652_v7  ;;  %v3636_v35 = vmul.f32 %v7044_v39, %v6654_v16  ;;  %v3638_v18 = vmul.f32 %v6714_v55, %v7045_v15  ;;  %v7051_v20 = vld [vmem:[#allocation14_spill] sm:$0xff]  ;;  %v7052_v44 = vld [vmem:[#allocation15_spill] sm:$0xff]  ;;  %v7053_v15 = vld [vmem:[#allocation20_spill] sm:$0xff] }
 0x25e   :  { %v3169_v59 = vpop.f32.mrf.mxu0  ;;  %v3639_v56 = vmul.f32 %v6693_v19, %v7046_v40  ;;  %v3641_v46 = vmul.f32 %v6717_v49, %v7047_v22  ;;  %v3640_v6 = vmul.f32 %v7049_v61, %v7048_v57  ;;  %v3642_v7 = vmul.f32 %v6720_v28, %v7050_v11  ;;  %v7054_v39 = vld [vmem:[#allocation21_spill] sm:$0xff]  ;;  %v7055_v49 = vld [vmem:[#allocation10_spill] sm:$0xff]  ;;  %v7056_v61 = vld [vmem:[#allocation11_spill] sm:$0xff] }
 0x25f   :  { %v3382_v48 = vpop.f32.mrf.mxu1  ;;  %v3647_v16 = vmul.f32 %v6733_v47, %v7051_v20  ;;  %v3649_v50 = vmul.f32 %v6751_v23, %v7052_v44  ;;  %v3648_v55 = vmul.f32 %v6736_v51, %v7053_v15  ;;  %v3650_v40 = vmul.f32 %v6754_v53, %v7054_v39  ;;  %v7057_v23 = vld [vmem:[#allocation12_spill] sm:$0xff]  ;;  %v7058_v47 = vld [vmem:[#allocation23_spill] sm:$0xff]  ;;  %v7059_v51 = vld [vmem:[#allocation13_spill] sm:$0xff] }
 0x260   :  { %v3171_v30 = vpop.f32.mrf.mxu0  ;;  %v3643_v57 = vmul.f32 %v6705_v14, %v7055_v49  ;;  %v3645_v11 = vmul.f32 %v6727_v34, %v7056_v61  ;;  %v3651_v20 = vmul.f32 %v6739_v58, %v6722_v10  ;;  %v3653_v44 = vmul.f32 %v6769_v31, %v6724_v26 }
 0x261   :  { %v3384_v5 = vpop.f32.mrf.mxu1  ;;  %v6848_v15 = vmul.f32 %v7058_v47, %v7057_v23  ;;  %v6852_v39 = vmul.f32 %v6730_v54, %v7059_v51  ;;  %v3652_v53 = vmul.f32 %v6742_v62, %v3161_v63  ;;  %v3654_v49 = vmul.f32 %v6772_v36, %v3374_v0  ;;  %v3713_v62 = vpop.permute.xlu0 %3712 }
 0x262   :  { %v3173_v19 = vpop.f32.mrf.mxu0  ;;  %v3655_v34 = vmul.f32 %v6745_v27, %v3163_v24  ;;  %v3657_v10 = vmul.f32 %v6775_v37, %v3376_v3  ;;  %v3671_v26 = vmul.f32 %v6785_v32, %v3169_v59  ;;  %v3673_v31 = vmul.f32 %v6802_v43, %v3382_v48 }
 0x263   :  { %v3386_v22 = vpop.f32.mrf.mxu1  ;;  %v3659_v23 = vadd.f32 %v3647_v16, %v3635_v25  ;;  %v3661_v47 = vadd.f32 %v3649_v50, %v3637_v29  ;;  %v3660_v58 = vadd.f32 %v3648_v55, %v3636_v35  ;;  %v3662_v28 = vadd.f32 %v3650_v40, %v3638_v18 }
 0x264   :  { %v3175_v14 = vpop.f32.mrf.mxu0  ;;  %v3663_v9 = vadd.f32 %v3651_v20, %v3639_v56  ;;  %v3665_v63 = vadd.f32 %v3653_v44, %v3641_v46  ;;  %v3672_v0 = vmul.f32 %v6788_v33, %v3171_v30  ;;  %v3674_v36 = vmul.f32 %v6804_v45, %v3384_v5 }
 0x265   :  { %v3388_v61 = vpop.f32.mrf.mxu1  ;;  %v3664_v24 = vadd.f32 %v3652_v53, %v3640_v6  ;;  %v3666_v27 = vadd.f32 %v3654_v49, %v3642_v7  ;;  %v3675_v3 = vmul.f32 %v6791_v52, %v3173_v19  ;;  %v3677_v59 = vmul.f32 %v6806_v1, %v3386_v22  ;;  %v3718_v20 = vpop.permute.xlu0 %3717 }
 0x266   :  { %v3179_v51 = vpop.f32.mrf.mxu0  ;;  %v3667_v29 = vadd.f32 %v3655_v34, %v3643_v57  ;;  %v3669_v55 = vadd.f32 %v3657_v10, %v3645_v11  ;;  %v3683_v35 = vadd.f32 %v3671_v26, %v3659_v23  ;;  %v3685_v18 = vadd.f32 %v3673_v31, %v3661_v47 }
 0x267   :  { %v3392_v54 = vpop.f32.mrf.mxu1  ;;  %v3656_v56 = vmul.f32 %v6748_v4, %v6780_v8  ;;  %v3658_v30 = vmul.f32 %v6778_v41, %v6782_v42  ;;  %v3676_v5 = vmul.f32 %v6794_v60, %v3175_v14  ;;  %v3678_v53 = vmul.f32 %v6808_v38, %v3388_v61 }
 0x268   :  { %v3181_v48 = vpop.f32.mrf.mxu0  ;;  %v3684_v16 = vadd.f32 %v3672_v0, %v3660_v58  ;;  %v3686_v50 = vadd.f32 %v3674_v36, %v3662_v28  ;;  %v3679_v34 = vmul.f32 %v6797_v2, %v3179_v51  ;;  %v3681_v47 = vmul.f32 %v6810_v13, %v3392_v54 }
 0x269   :  { %v3394_v25 = vpop.f32.mrf.mxu1  ;;  %v3687_v8 = vadd.f32 %v3675_v3, %v3663_v9  ;;  %v3689_v22 = vadd.f32 %v3677_v59, %v3665_v63  ;;  %v3680_v44 = vmul.f32 %v6800_v12, %v3181_v48  ;;  %v3688_v28 = vadd.f32 %v3676_v5, %v3664_v24 }
 0x26a   :  { %v3183_v46 = vpop.f32.mrf.mxu0  ;;  %v3682_v49 = vmul.f32 %v6812_v21, %v3394_v25  ;;  %v3690_v36 = vadd.f32 %v3678_v53, %v3666_v27  ;;  %v3668_v23 = vadd.f32 %v3656_v56, %v6848_v15  ;;  %v3670_v51 = vadd.f32 %v3658_v30, %v6852_v39 }
 0x26b   :  { %v3396_v19 = vpop.f32.mrf.mxu1  ;;  %v3695_v6 = vadd.f32 %v3683_v35, %v3183_v46  ;;  %v3691_v3 = vadd.f32 %v3679_v34, %v3667_v29  ;;  %v3693_v59 = vadd.f32 %v3681_v47, %v3669_v55  ;;  %v3723_v35 = vpop.permute.xlu1 %3722 }
 0x26c   :  { %v3697_v7 = vadd.f32 %v3685_v18, %v3396_v19  ;;  %v3185_v31 = vpop.f32.mrf.mxu0  ;;  %v3694_v53 = vadd.f32 %v3682_v49, %v3670_v51 }
 0x26d   :  { %v3398_v40 = vpop.f32.mrf.mxu1  ;;  %v3725_v57 = vadd.f32 %v3713_v62, %v3695_v6  ;;  %v3696_v11 = vadd.f32 %v3684_v16, %v3185_v31 }
 0x26e   :  { %v3727_v42 = vadd.f32 %v3713_v62, %v3697_v7  ;;  %v3698_v14 = vadd.f32 %v3686_v50, %v3398_v40  ;;  %v3189_v61 = vpop.f32.mrf.mxu0 }
 0x26f   :  { %v3402_v58 = vpop.f32.mrf.mxu1  ;;  %3737 = vst [vmem:[#allocation2] sm:$0xff] %v3725_v57  ;;  %v3726_v54 = vadd.f32 %v3713_v62, %v3696_v11  ;;  %v3699_v26 = vadd.f32 %v3687_v8, %v3189_v61 }
 0x270   :  { %3739 = vst [vmem:[#allocation2 + $0x10] sm:$0xff] %v3727_v42  ;;  %v3728_v10 = vadd.f32 %v3713_v62, %v3698_v14  ;;  %v3701_v9 = vadd.f32 %v3689_v22, %v3402_v58  ;;  %v3191_v63 = vpop.f32.mrf.mxu0  ;;  %v3692_v62 = vadd.f32 %v3680_v44, %v3668_v23 }
 0x271   :  { %v3404_v0 = vpop.f32.mrf.mxu1  ;;  %3738 = vst [vmem:[#allocation2 + $0x8] sm:$0xff] %v3726_v54  ;;  %v3729_v48 = vadd.f32 %v3718_v20, %v3699_v26  ;;  %v3700_v24 = vadd.f32 %v3688_v28, %v3191_v63 }
 0x272   :  { %3740 = vst [vmem:[#allocation2 + $0x18] sm:$0xff] %v3728_v10  ;;  %v3731_v25 = vadd.f32 %v3718_v20, %v3701_v9  ;;  %v3702_v27 = vadd.f32 %v3690_v36, %v3404_v0  ;;  %v3193_v18 = vpop.f32.mrf.mxu0 }
 0x273   :  { %v3406_v5 = vpop.f32.mrf.mxu1  ;;  %3741 = vst [vmem:[#allocation2 + $0x20] sm:$0xff] %v3729_v48  ;;  %v3730_v15 = vadd.f32 %v3718_v20, %v3700_v24  ;;  %v3703_v39 = vadd.f32 %v3691_v3, %v3193_v18  ;;  %v7060_v48 = vld [vmem:[#allocation24_spill] sm:$0xff]  ;;  %v7061_v24 = vld [vmem:[#allocation17_spill] sm:$0xff] }
 0x274   :  { %3743 = vst [vmem:[#allocation2 + $0x30] sm:$0xff] %v3731_v25  ;;  %v3732_v56 = vadd.f32 %v3718_v20, %v3702_v27  ;;  %v3705_v30 = vadd.f32 %v3693_v59, %v3406_v5  ;;  %v3195_v46 = vpop.f32.mrf.mxu0 }
 0x275   :  { %v3408_v29 = vpop.f32.mrf.mxu1  ;;  %3742 = vst [vmem:[#allocation2 + $0x28] sm:$0xff] %v3730_v15  ;;  %v3733_v55 = vadd.f32 %v3723_v35, %v3703_v39  ;;  %v3704_v6 = vadd.f32 %v3692_v62, %v3195_v46 }
 0x276   :  { %3744 = vst [vmem:[#allocation2 + $0x38] sm:$0xff] %v3732_v56  ;;  %v3735_v19 = vadd.f32 %v3723_v35, %v3705_v30  ;;  %v3706_v7 = vadd.f32 %v3694_v53, %v3408_v29  ;;  %v3199_v16 = vpop.f32.mrf.mxu0  ;;  %v7063_v53 = vld [vmem:[#allocation18_spill] sm:$0xff]  ;;  %v7065_v30 = vld [vmem:[#allocation19_spill] sm:$0xff] }
 0x277   :  { %v3412_v50 = vpop.f32.mrf.mxu1  ;;  %3745 = vst [vmem:[#allocation2 + $0x40] sm:$0xff] %v3733_v55  ;;  %v3734_v34 = vadd.f32 %v3723_v35, %v3704_v6  ;;  %v3749_v59 = vmul.f32 %v6687_v17, %v3199_v16  ;;  %v7064_v56 = vld [vmem:[#allocation26_spill] sm:$0xff]  ;;  %v7066_v29 = vld [vmem:[#allocation27_spill] sm:$0xff]  ;;  %v7072_v17 = vld [vmem:[#allocation28_spill] sm:$0xff] }
 0x278   :  { %3747 = vst [vmem:[#allocation2 + $0x50] sm:$0xff] %v3735_v19  ;;  %v3736_v47 = vadd.f32 %v3723_v35, %v3706_v7  ;;  %v3201_v31 = vpop.f32.mrf.mxu0  ;;  %v3751_v25 = vmul.f32 %v7060_v48, %v3412_v50  ;;  %v7062_v35 = vld [vmem:[#allocation25_spill] sm:$0xff]  ;;  %v7067_v19 = vld [vmem:[#allocation30_spill] sm:$0xff]  ;;  %v7068_v7 = vld [vmem:[#allocation35_spill] sm:$0xff] }
 0x279   :  { %v3414_v40 = vpop.f32.mrf.mxu1  ;;  %3746 = vst [vmem:[#allocation2 + $0x48] sm:$0xff] %v3734_v34  ;;  %v3750_v27 = vmul.f32 %v7061_v24, %v3201_v31  ;;  %v7069_v34 = vld [vmem:[#allocation31_spill] sm:$0xff] }
 0x27a   :  { %3748 = vst [vmem:[#allocation2 + $0x58] sm:$0xff] %v3736_v47  ;;  %v3203_v8 = vpop.f32.mrf.mxu0  ;;  %v3752_v18 = vmul.f32 %v7062_v35, %v3414_v40  ;;  %v7070_v47 = vld [vmem:[#allocation36_spill] sm:$0xff]  ;;  %v7071_v35 = vld [vmem:[#allocation22_spill] sm:$0xff] }
 0x27b   :  { %v3416_v22 = vpop.f32.mrf.mxu1  ;;  %v3753_v15 = vmul.f32 %v7063_v53, %v3203_v8  ;;  %v7073_v53 = vld [vmem:[#allocation32_spill] sm:$0xff] }
 0x27c   :  { %v3205_v57 = vpop.f32.mrf.mxu0  ;;  %v3755_v39 = vmul.f32 %v7064_v56, %v3416_v22  ;;  %v7074_v56 = vld [vmem:[#allocation37_spill] sm:$0xff] }
 0x27d   :  { %v3418_v42 = vpop.f32.mrf.mxu1  ;;  %v3754_v46 = vmul.f32 %v7065_v30, %v3205_v57  ;;  %v7075_v30 = vld [vmem:[#allocation23_spill] sm:$0xff] }
 0x27e   :  { %v3209_v11 = vpop.f32.mrf.mxu0  ;;  %v3756_v55 = vmul.f32 %v7066_v29, %v3418_v42  ;;  %v7079_v29 = vld [vmem:[#allocation34_spill] sm:$0xff] }
 0x27f   :  { %v3422_v14 = vpop.f32.mrf.mxu1  ;;  %v3757_v48 = vmul.f32 %v7071_v35, %v3209_v11 }
 0x280   :  { %v3211_v20 = vpop.f32.mrf.mxu0  ;;  %v3759_v8 = vmul.f32 %v7072_v17, %v3422_v14 }
 0x281   :  { %v3424_v44 = vpop.f32.mrf.mxu1  ;;  %v6893_v42 = vmul.f32 %v7075_v30, %v3211_v20 }
 0x282   :  { %v3213_v49 = vpop.f32.mrf.mxu0 }
 0x283   :  { %v3426_v61 = vpop.f32.mrf.mxu1  ;;  %v3761_v6 = vmul.f32 %v7067_v19, %v3213_v49  ;;  %v7076_v49 = vld [vmem:[#allocation29_spill] sm:$0xff] }
 0x284   :  { %v3215_v58 = vpop.f32.mrf.mxu0  ;;  %v3763_v16 = vmul.f32 %v7068_v7, %v3426_v61  ;;  %v6896_v19 = vmul.f32 %v7076_v49, %v3424_v44  ;;  %v7077_v61 = vld [vmem:[#allocation33_spill] sm:$0xff] }
 0x285   :  { %v3428_v28 = vpop.f32.mrf.mxu1  ;;  %v3762_v50 = vmul.f32 %v7069_v34, %v3215_v58  ;;  %v7078_v34 = vld [vmem:[#allocation38_spill] sm:$0xff] }
 0x286   :  { %v3219_v36 = vpop.f32.mrf.mxu0  ;;  %v3764_v31 = vmul.f32 %v7070_v47, %v3428_v28  ;;  %v3775_v20 = vadd.f32 %v3763_v16, %v3751_v25 }
 0x287   :  { %v3432_v54 = vpop.f32.mrf.mxu1  ;;  %v3765_v22 = vmul.f32 %v7073_v53, %v3219_v36  ;;  %v3774_v30 = vadd.f32 %v3762_v50, %v3750_v27 }
 0x288   :  { %v3221_v10 = vpop.f32.mrf.mxu0  ;;  %v3767_v57 = vmul.f32 %v7074_v56, %v3432_v54  ;;  %v3773_v56 = vadd.f32 %v3761_v6, %v3749_v59  ;;  %v3776_v53 = vadd.f32 %v3764_v31, %v3752_v18  ;;  %v3828_v6 = vpop.permute.xlu1 %3827 }
 0x289   :  { %v3434_v26 = vpop.f32.mrf.mxu1  ;;  %v3766_v58 = vmul.f32 %v7077_v61, %v3221_v10  ;;  %v3777_v17 = vadd.f32 %v3765_v22, %v3753_v15 }
 0x28a   :  { %v3223_v9 = vpop.f32.mrf.mxu0  ;;  %v3768_v28 = vmul.f32 %v7078_v34, %v3434_v26  ;;  %v3779_v10 = vadd.f32 %v3767_v57, %v3755_v39 }
 0x28b   :  { %v3436_v23 = vpop.f32.mrf.mxu1  ;;  %v3769_v11 = vmul.f32 %v7079_v29, %v3223_v9  ;;  %v3778_v61 = vadd.f32 %v3766_v58, %v3754_v46 }
 0x28c   :  { %v3225_v51 = vpop.f32.mrf.mxu0  ;;  %v3771_v14 = vmul.f32 %v6775_v37, %v3436_v23  ;;  %v3780_v9 = vadd.f32 %v3768_v28, %v3756_v55  ;;  %v3833_v28 = vpop.permute.xlu0 %3832 }
 0x28d   :  { %v3438_v63 = vpop.f32.mrf.mxu1  ;;  %v3781_v59 = vadd.f32 %v3769_v11, %v3757_v48  ;;  %v3770_v15 = vmul.f32 %v6748_v4, %v3225_v51 }
 0x28e   :  { %v3229_v0 = vpop.f32.mrf.mxu0  ;;  %v3783_v25 = vadd.f32 %v3771_v14, %v3759_v8  ;;  %v3772_v39 = vmul.f32 %v6778_v41, %v3438_v63 }
 0x28f   :  { %v3442_v3 = vpop.f32.mrf.mxu1  ;;  %v3785_v36 = vmul.f32 %v6785_v32, %v3229_v0 }
 0x290   :  { %v3231_v5 = vpop.f32.mrf.mxu0  ;;  %v3787_v54 = vmul.f32 %v6802_v43, %v3442_v3 }
 0x291   :  { %v3444_v62 = vpop.f32.mrf.mxu1  ;;  %v3786_v26 = vmul.f32 %v6788_v33, %v3231_v5  ;;  %v3797_v27 = vadd.f32 %v3785_v36, %v3773_v56 }
 0x292   :  { %v3233_v24 = vpop.f32.mrf.mxu0  ;;  %v3788_v34 = vmul.f32 %v6804_v45, %v3444_v62  ;;  %v3799_v18 = vadd.f32 %v3787_v54, %v3775_v20  ;;  %v3782_v20 = vadd.f32 %v3770_v15, %v6893_v42 }
 0x293   :  { %v3446_v40 = vpop.f32.mrf.mxu1  ;;  %v3789_v23 = vmul.f32 %v6791_v52, %v3233_v24  ;;  %v3798_v50 = vadd.f32 %v3786_v26, %v3774_v30 }
 0x294   :  { %v3235_v47 = vpop.f32.mrf.mxu0  ;;  %v3791_v0 = vmul.f32 %v6806_v1, %v3446_v40  ;;  %v3800_v31 = vadd.f32 %v3788_v34, %v3776_v53 }
 0x295   :  { %v3448_v7 = vpop.f32.mrf.mxu1  ;;  %v3790_v5 = vmul.f32 %v6794_v60, %v3235_v47  ;;  %v3801_v22 = vadd.f32 %v3789_v23, %v3777_v17 }
 0x296   :  { %v3239_v44 = vpop.f32.mrf.mxu0  ;;  %v3792_v62 = vmul.f32 %v6808_v38, %v3448_v7  ;;  %v3803_v51 = vadd.f32 %v3791_v0, %v3779_v10 }
 0x297   :  { %v3452_v49 = vpop.f32.mrf.mxu1  ;;  %v3793_v48 = vmul.f32 %v6797_v2, %v3239_v44  ;;  %v3802_v53 = vadd.f32 %v3790_v5, %v3778_v61  ;;  %v3784_v44 = vadd.f32 %v3772_v39, %v6896_v19 }
 0x298   :  { %v3241_v32 = vpop.f32.mrf.mxu0  ;;  %v3795_v56 = vmul.f32 %v6810_v13, %v3452_v49  ;;  %v3804_v34 = vadd.f32 %v3792_v62, %v3780_v9 }
 0x299   :  { %v3454_v3 = vpop.f32.mrf.mxu1  ;;  %v3794_v7 = vmul.f32 %v6800_v12, %v3241_v32  ;;  %v3805_v23 = vadd.f32 %v3793_v48, %v3781_v59 }
 0x29a   :  { %v3243_v46 = vpop.f32.mrf.mxu0  ;;  %v3796_v11 = vmul.f32 %v6812_v21, %v3454_v3  ;;  %v3807_v32 = vadd.f32 %v3795_v56, %v3783_v25 }
 0x29b   :  { %v3456_v55 = vpop.f32.mrf.mxu1  ;;  %v3809_v24 = vadd.f32 %v3797_v27, %v3243_v46  ;;  %v3838_v27 = vpop.permute.xlu1 %3837 }
 0x29c   :  { %v3811_v16 = vadd.f32 %v3799_v18, %v3456_v55  ;;  %v3245_v40 = vpop.f32.mrf.mxu0  ;;  %v3808_v62 = vadd.f32 %v3796_v11, %v3784_v44 }
 0x29d   :  { %v3458_v8 = vpop.f32.mrf.mxu1  ;;  %v3840_v57 = vadd.f32 %v3828_v6, %v3809_v24  ;;  %v3810_v58 = vadd.f32 %v3798_v50, %v3245_v40 }
 0x29e   :  { %v3842_v63 = vadd.f32 %v3828_v6, %v3811_v16  ;;  %v3812_v47 = vadd.f32 %v3800_v31, %v3458_v8  ;;  %v3249_v14 = vpop.f32.mrf.mxu0 }
 0x29f   :  { %v3462_v30 = vpop.f32.mrf.mxu1  ;;  %3853 = vst [vmem:[#allocation2 + $0x60] sm:$0xff] %v3840_v57  ;;  %v3841_v49 = vadd.f32 %v3828_v6, %v3810_v58  ;;  %v3813_v54 = vadd.f32 %v3801_v22, %v3249_v14 }
 0x2a0   :  { %3855 = vst [vmem:[#allocation2 + $0x70] sm:$0xff] %v3842_v63  ;;  %v3843_v36 = vadd.f32 %v3828_v6, %v3812_v47  ;;  %v3815_v17 = vadd.f32 %v3803_v51, %v3462_v30  ;;  %v3251_v10 = vpop.f32.mrf.mxu0  ;;  %v3806_v6 = vadd.f32 %v3794_v7, %v3782_v20 }
 0x2a1   :  { %v3464_v26 = vpop.f32.mrf.mxu1  ;;  %3854 = vst [vmem:[#allocation2 + $0x68] sm:$0xff] %v3841_v49  ;;  %v3844_v0 = vadd.f32 %v3833_v28, %v3813_v54  ;;  %v3814_v61 = vadd.f32 %v3802_v53, %v3251_v10 }
 0x2a2   :  { %3856 = vst [vmem:[#allocation2 + $0x78] sm:$0xff] %v3843_v36  ;;  %v3846_v3 = vadd.f32 %v3833_v28, %v3815_v17  ;;  %v3816_v9 = vadd.f32 %v3804_v34, %v3464_v26  ;;  %v3253_v18 = vpop.f32.mrf.mxu0 }
 0x2a3   :  { %v3466_v5 = vpop.f32.mrf.mxu1  ;;  %3857 = vst [vmem:[#allocation2 + $0x80] sm:$0xff] %v3844_v0  ;;  %v3845_v42 = vadd.f32 %v3833_v28, %v3814_v61  ;;  %v3817_v19 = vadd.f32 %v3805_v23, %v3253_v18  ;;  %v7083_v18 = vld [vmem:[#allocation25_spill] sm:$0xff] }
 0x2a4   :  { %3859 = vst [vmem:[#allocation2 + $0x90] sm:$0xff] %v3846_v3  ;;  %v3847_v15 = vadd.f32 %v3833_v28, %v3816_v9  ;;  %v3819_v39 = vadd.f32 %v3807_v32, %v3466_v5  ;;  %v3255_v46 = vpop.f32.mrf.mxu0  ;;  %v7080_v32 = vld [vmem:[#allocation16_spill] sm:$0xff]  ;;  %v7082_v9 = vld [vmem:[#allocation17_spill] sm:$0xff] }
 0x2a5   :  { %v3468_v59 = vpop.f32.mrf.mxu1  ;;  %3858 = vst [vmem:[#allocation2 + $0x88] sm:$0xff] %v3845_v42  ;;  %v3848_v25 = vadd.f32 %v3838_v27, %v3817_v19  ;;  %v3818_v24 = vadd.f32 %v3806_v6, %v3255_v46  ;;  %v7081_v3 = vld [vmem:[#allocation24_spill] sm:$0xff]  ;;  %v7084_v42 = vld [vmem:[#allocation18_spill] sm:$0xff]  ;;  %v7086_v46 = vld [vmem:[#allocation19_spill] sm:$0xff] }
 0x2a6   :  { %3860 = vst [vmem:[#allocation2 + $0x98] sm:$0xff] %v3847_v15  ;;  %v3850_v55 = vadd.f32 %v3838_v27, %v3819_v39  ;;  %v3820_v16 = vadd.f32 %v3808_v62, %v3468_v59  ;;  %v3259_v50 = vpop.f32.mrf.mxu0  ;;  %v7085_v19 = vld [vmem:[#allocation26_spill] sm:$0xff] }
 0x2a7   :  { %v3472_v31 = vpop.f32.mrf.mxu1  ;;  %3861 = vst [vmem:[#allocation2 + $0xa0] sm:$0xff] %v3848_v25  ;;  %v3849_v48 = vadd.f32 %v3838_v27, %v3818_v24  ;;  %v3865_v0 = vmul.f32 %v7080_v32, %v3259_v50  ;;  %v7087_v25 = vld [vmem:[#allocation27_spill] sm:$0xff]  ;;  %v7088_v24 = vld [vmem:[#allocation30_spill] sm:$0xff]  ;;  %v7091_v32 = vld [vmem:[#allocation36_spill] sm:$0xff] }
 0x2a8   :  { %3863 = vst [vmem:[#allocation2 + $0xb0] sm:$0xff] %v3850_v55  ;;  %v3851_v56 = vadd.f32 %v3838_v27, %v3820_v16  ;;  %v3261_v40 = vpop.f32.mrf.mxu0  ;;  %v3867_v61 = vmul.f32 %v7081_v3, %v3472_v31 }
 0x2a9   :  { %v3474_v8 = vpop.f32.mrf.mxu1  ;;  %3862 = vst [vmem:[#allocation2 + $0xa8] sm:$0xff] %v3849_v48  ;;  %v3866_v27 = vmul.f32 %v7082_v9, %v3261_v40  ;;  %v7089_v48 = vld [vmem:[#allocation35_spill] sm:$0xff] }
 0x2aa   :  { %3864 = vst [vmem:[#allocation2 + $0xb8] sm:$0xff] %v3851_v56  ;;  %v3263_v22 = vpop.f32.mrf.mxu0  ;;  %v3868_v5 = vmul.f32 %v7083_v18, %v3474_v8  ;;  %v7090_v56 = vld [vmem:[#allocation31_spill] sm:$0xff]  ;;  %v7092_v18 = vld [vmem:[#allocation28_spill] sm:$0xff] }
 0x2ab   :  { %v3476_v51 = vpop.f32.mrf.mxu1  ;;  %v3869_v15 = vmul.f32 %v7084_v42, %v3263_v22  ;;  %v7093_v42 = vld [vmem:[#allocation32_spill] sm:$0xff] }
 0x2ac   :  { %v3265_v57 = vpop.f32.mrf.mxu0  ;;  %v3871_v39 = vmul.f32 %v7085_v19, %v3476_v51  ;;  %v7094_v19 = vld [vmem:[#allocation37_spill] sm:$0xff] }
 0x2ad   :  { %v3478_v63 = vpop.f32.mrf.mxu1  ;;  %v3870_v59 = vmul.f32 %v7086_v46, %v3265_v57  ;;  %v7095_v46 = vld [vmem:[#allocation23_spill] sm:$0xff] }
 0x2ae   :  { %v3269_v58 = vpop.f32.mrf.mxu0  ;;  %v3872_v55 = vmul.f32 %v7087_v25, %v3478_v63 }
 0x2af   :  { %v3482_v47 = vpop.f32.mrf.mxu1  ;;  %v3873_v9 = vmul.f32 %v7071_v35, %v3269_v58 }
 0x2b0   :  { %v3271_v28 = vpop.f32.mrf.mxu0  ;;  %v3875_v22 = vmul.f32 %v7092_v18, %v3482_v47  ;;  %v7099_v47 = vld [vmem:[#allocation39_spill] sm:$0xff] }
 0x2b1   :  { %v3484_v7 = vpop.f32.mrf.mxu1  ;;  %v6935_v63 = vmul.f32 %v7095_v46, %v3271_v28 }
 0x2b2   :  { %v3273_v11 = vpop.f32.mrf.mxu0 }
 0x2b3   :  { %v3486_v14 = vpop.f32.mrf.mxu1  ;;  %v3877_v16 = vmul.f32 %v7088_v24, %v3273_v11  ;;  %v7096_v11 = vld [vmem:[#allocation29_spill] sm:$0xff]  ;;  %v7098_v24 = vld [vmem:[#allocation38_spill] sm:$0xff] }
 0x2b4   :  { %v3275_v30 = vpop.f32.mrf.mxu0  ;;  %v3879_v50 = vmul.f32 %v7089_v48, %v3486_v14  ;;  %v6938_v25 = vmul.f32 %v7096_v11, %v3484_v7  ;;  %v7097_v14 = vld [vmem:[#allocation33_spill] sm:$0xff] }
 0x2b5   :  { %v3488_v53 = vpop.f32.mrf.mxu1  ;;  %v3878_v31 = vmul.f32 %v7090_v56, %v3275_v30 }
 0x2b6   :  { %v3279_v34 = vpop.f32.mrf.mxu0  ;;  %v3880_v40 = vmul.f32 %v7091_v32, %v3488_v53  ;;  %v3889_v32 = vadd.f32 %v3877_v16, %v3865_v0  ;;  %v3891_v28 = vadd.f32 %v3879_v50, %v3867_v61 }
 0x2b7   :  { %v3492_v49 = vpop.f32.mrf.mxu1  ;;  %v3881_v51 = vmul.f32 %v7093_v42, %v3279_v34  ;;  %v3890_v18 = vadd.f32 %v3878_v31, %v3866_v27 }
 0x2b8   :  { %v3281_v36 = vpop.f32.mrf.mxu0  ;;  %v3883_v57 = vmul.f32 %v7094_v19, %v3492_v49  ;;  %v3892_v42 = vadd.f32 %v3880_v40, %v3868_v5 }
 0x2b9   :  { %v3494_v54 = vpop.f32.mrf.mxu1  ;;  %v3882_v30 = vmul.f32 %v7097_v14, %v3281_v36  ;;  %v3893_v46 = vadd.f32 %v3881_v51, %v3869_v15  ;;  %v3944_v15 = vpop.permute.xlu0 %3943 }
 0x2ba   :  { %v3283_v17 = vpop.f32.mrf.mxu0  ;;  %v3884_v53 = vmul.f32 %v7098_v24, %v3494_v54  ;;  %v3895_v36 = vadd.f32 %v3883_v57, %v3871_v39 }
 0x2bb   :  { %v3496_v20 = vpop.f32.mrf.mxu1  ;;  %v3885_v35 = vmul.f32 %v7079_v29, %v3283_v17  ;;  %v3894_v14 = vadd.f32 %v3882_v30, %v3870_v59 }
 0x2bc   :  { %v3285_v44 = vpop.f32.mrf.mxu0  ;;  %v3887_v58 = vmul.f32 %v6775_v37, %v3496_v20  ;;  %v3896_v29 = vadd.f32 %v3884_v53, %v3872_v55 }
 0x2bd   :  { %v3498_v10 = vpop.f32.mrf.mxu1  ;;  %v3886_v27 = vmul.f32 %v6748_v4, %v3285_v44 }
 0x2be   :  { %v3289_v26 = vpop.f32.mrf.mxu0  ;;  %v3888_v5 = vmul.f32 %v6778_v41, %v3498_v10 }
 0x2bf   :  { %v3502_v23 = vpop.f32.mrf.mxu1  ;;  %v3901_v34 = vmul.f32 %v7099_v47, %v3289_v26  ;;  %v3897_v26 = vadd.f32 %v3885_v35, %v3873_v9  ;;  %v3898_v53 = vadd.f32 %v3886_v27, %v6935_v63 }
 0x2c0   :  { %v3291_v6 = vpop.f32.mrf.mxu0  ;;  %v3903_v49 = vmul.f32 %v6802_v43, %v3502_v23  ;;  %v3899_v23 = vadd.f32 %v3887_v58, %v3875_v22 }
 0x2c1   :  { %v3504_v62 = vpop.f32.mrf.mxu1  ;;  %v3902_v54 = vmul.f32 %v6788_v33, %v3291_v6  ;;  %v3913_v0 = vadd.f32 %v3901_v34, %v3889_v32 }
 0x2c2   :  { %v3293_v3 = vpop.f32.mrf.mxu0  ;;  %v3904_v11 = vmul.f32 %v6804_v45, %v3504_v62  ;;  %v3915_v61 = vadd.f32 %v3903_v49, %v3891_v28 }
 0x2c3   :  { %v3506_v8 = vpop.f32.mrf.mxu1  ;;  %v3905_v37 = vmul.f32 %v6791_v52, %v3293_v3 }
 0x2c4   :  { %v3295_v48 = vpop.f32.mrf.mxu0  ;;  %v3907_v17 = vmul.f32 %v6806_v1, %v3506_v8  ;;  %v3914_v1 = vadd.f32 %v3902_v54, %v3890_v18  ;;  %v3916_v59 = vadd.f32 %v3904_v11, %v3892_v42 }
 0x2c5   :  { %v3508_v56 = vpop.f32.mrf.mxu1  ;;  %v3906_v33 = vmul.f32 %v6794_v60, %v3295_v48  ;;  %v3917_v4 = vadd.f32 %v3905_v37, %v3893_v46  ;;  %v3900_v48 = vadd.f32 %v3888_v5, %v6938_v25 }
 0x2c6   :  { %v3299_v7 = vpop.f32.mrf.mxu0  ;;  %v3908_v45 = vmul.f32 %v6808_v38, %v3508_v56  ;;  %v3919_v44 = vadd.f32 %v3907_v17, %v3895_v36 }
 0x2c7   :  { %v3512_v19 = vpop.f32.mrf.mxu1  ;;  %v3909_v55 = vmul.f32 %v6797_v2, %v3299_v7  ;;  %v3918_v22 = vadd.f32 %v3906_v33, %v3894_v14  ;;  %v3949_v2 = vpop.permute.xlu1 %3948 }
 0x2c8   :  { %v3301_v20 = vpop.f32.mrf.mxu0  ;;  %v3911_v16 = vmul.f32 %v6810_v13, %v3512_v19  ;;  %v3920_v51 = vadd.f32 %v3908_v45, %v3896_v29  ;;  %v3954_v7 = vpop.permute.xlu0 %3953 }
 0x2c9   :  { %v3514_v43 = vpop.f32.mrf.mxu1  ;;  %v3910_v38 = vmul.f32 %v6800_v12, %v3301_v20  ;;  %v3921_v12 = vadd.f32 %v3909_v55, %v3897_v26 }
 0x2ca   :  { %v3303_v6 = vpop.f32.mrf.mxu0  ;;  %v3912_v3 = vmul.f32 %v6812_v21, %v3514_v43  ;;  %v3923_v58 = vadd.f32 %v3911_v16, %v3899_v23 }
 0x2cb   :  { %v3516_v62 = vpop.f32.mrf.mxu1  ;;  %v3925_v52 = vadd.f32 %v3913_v0, %v3303_v6  ;;  %v3922_v18 = vadd.f32 %v3910_v38, %v3898_v53 }
 0x2cc   :  { %v3927_v39 = vadd.f32 %v3915_v61, %v3516_v62  ;;  %v3305_v50 = vpop.f32.mrf.mxu0  ;;  %v3924_v42 = vadd.f32 %v3912_v3, %v3900_v48 }
 0x2cd   :  { %v3518_v31 = vpop.f32.mrf.mxu1  ;;  %v3956_v41 = vadd.f32 %v3944_v15, %v3925_v52  ;;  %v3926_v60 = vadd.f32 %v3914_v1, %v3305_v50 }
 0x2ce   :  { %v3958_v10 = vadd.f32 %v3944_v15, %v3927_v39  ;;  %v3928_v40 = vadd.f32 %v3916_v59, %v3518_v31  ;;  %v3309_v8 = vpop.f32.mrf.mxu0 }
 0x2cf   :  { %v3522_v9 = vpop.f32.mrf.mxu1  ;;  %3969 = vst [vmem:[#allocation2 + $0xc0] sm:$0xff] %v3956_v41  ;;  %v3957_v13 = vadd.f32 %v3944_v15, %v3926_v60  ;;  %v3929_v30 = vadd.f32 %v3917_v4, %v3309_v8 }
 0x2d0   :  { %3971 = vst [vmem:[#allocation2 + $0xd0] sm:$0xff] %v3958_v10  ;;  %v3959_v57 = vadd.f32 %v3944_v15, %v3928_v40  ;;  %v3931_v24 = vadd.f32 %v3919_v44, %v3522_v9  ;;  %v3311_v56 = vpop.f32.mrf.mxu0 }
 0x2d1   :  { %v3524_v35 = vpop.f32.mrf.mxu1  ;;  %3970 = vst [vmem:[#allocation2 + $0xc8] sm:$0xff] %v3957_v13  ;;  %v3960_v21 = vadd.f32 %v3949_v2, %v3929_v30  ;;  %v3930_v34 = vadd.f32 %v3918_v22, %v3311_v56 }
 0x2d2   :  { %3972 = vst [vmem:[#allocation2 + $0xd8] sm:$0xff] %v3959_v57  ;;  %v3962_v47 = vadd.f32 %v3949_v2, %v3931_v24  ;;  %v3932_v49 = vadd.f32 %v3920_v51, %v3524_v35  ;;  %v3313_v32 = vpop.f32.mrf.mxu0 }
 0x2d3   :  { %v3526_v28 = vpop.f32.mrf.mxu1  ;;  %3973 = vst [vmem:[#allocation2 + $0xe0] sm:$0xff] %v3960_v21  ;;  %v3961_v63 = vadd.f32 %v3949_v2, %v3930_v34  ;;  %v3933_v25 = vadd.f32 %v3921_v12, %v3313_v32 }
 0x2d4   :  { %3975 = vst [vmem:[#allocation2 + $0xf0] sm:$0xff] %v3962_v47  ;;  %v3963_v19 = vadd.f32 %v3949_v2, %v3932_v49  ;;  %v3935_v46 = vadd.f32 %v3923_v58, %v3526_v28  ;;  %v3315_v36 = vpop.f32.mrf.mxu0 }
 0x2d5   :  { %v3528_v54 = vpop.f32.mrf.mxu1  ;;  %3974 = vst [vmem:[#allocation2 + $0xe8] sm:$0xff] %v3961_v63  ;;  %v3964_v11 = vadd.f32 %v3954_v7, %v3933_v25  ;;  %v3934_v29 = vadd.f32 %v3922_v18, %v3315_v36 }
 0x2d6   :  { %3976 = vst [vmem:[#allocation2 + $0xf8] sm:$0xff] %v3963_v19  ;;  %v3966_v14 = vadd.f32 %v3954_v7, %v3935_v46  ;;  %v3936_v37 = vadd.f32 %v3924_v42, %v3528_v54 }
 0x2d7   :  { %3977 = vst [vmem:[#allocation2 + $0x100] sm:$0xff] %v3964_v11  ;;  %v3965_v17 = vadd.f32 %v3954_v7, %v3934_v29 }
 0x2d8   :  { %3979 = vst [vmem:[#allocation2 + $0x110] sm:$0xff] %v3966_v14  ;;  %v3967_v20 = vadd.f32 %v3954_v7, %v3936_v37 }
 0x2d9   :  { %3978 = vst [vmem:[#allocation2 + $0x108] sm:$0xff] %v3965_v17 }
 0x2da   :  { %3980 = vst [vmem:[#allocation2 + $0x118] sm:$0xff] %v3967_v20 }
 0x2db   :  { %5039 = shalt.err (!%p5036_p4)
}
 0x2dc   :  { %s5053_s23 = smov 512   ;;  %s5054_s24 = smov 32  }
 0x2dd   :  { %3992 = dma.vmem_to_hbm [thread:$0]  %s3987_s21, 4608, %s6969_s6, [#allocation3], %s5053_s23, %s5053_s23, %s5054_s24  }
 0x2de   :  { %5048 = dma.done.wait [#allocation3], 4608  }
 0x2df   :  { %5049 = vsyncadd [#allocation3], 4294962688 }
 0x2e0   :  { %3996 = vsyncpa [#allocation3], 1 }

</bundles_post_ra>
